<compile_context>
chip_gen: v7x
topology: tpu7x:2x2x1
jax: 0.10.0
libtpu: 0.0.40
codegen_flags: <defaults>
</compile_context>

<pallas_src>
import functools

import numpy as np
import jax
import jax.numpy as jnp
from jax.experimental import pallas as pl
from jax.experimental.pallas import tpu as pltpu

# ---------------- configuration (the `cfg` of the module) -------------------
NUM_KEYPOINTS = 4
KEYPOINT_WIDTH = 1.5          # gaussian sigma, in heatmap-pixel units
HEATMAP_WIDTH = 8
NUM_ENCODER_FILTERS = 8
LAYERS_PER_SCALE = 1
LEAKY_SLOPE = 0.2
IM_C, IM_H, IM_W = 3, 16, 16
NUM_ENC_OUT = NUM_ENCODER_FILTERS * IM_W // HEATMAP_WIDTH   # = 16

# ---------------- flat-image layout constants --------------------------------
# 16x16 stage: image + 1px zero 'same' border = 18x18, flattened row-major.
HP16, WP16 = IM_H + 2, IM_W + 2          # 18, 18
P16 = HP16 * WP16                        # 324
G16 = WP16 + 1                           # 19  (max |3x3 tap offset|, 16-res)
P16G = P16 + 2 * G16                     # 362 = per-frame segment, stacked layout
ENC_IN_LEN = P16 + 6 * G16               # 438 (3 encoder convs shrink 2*G16 each)
# 8x8 (heatmap) stage: 10x10 padded grid.
HP8, WP8 = HEATMAP_WIDTH + 2, HEATMAP_WIDTH + 2   # 10, 10
P8 = HP8 * WP8                           # 100
G8 = WP8 + 1                             # 11
P8G = P8 + 2 * G8                        # 122
P8PAD = 128                              # lane-dense 8x8-stage width
ENC_CIN = 8                              # first conv input channels padded 3 -> 8


# ======================= constant layout matrices / masks ====================

@functools.lru_cache(maxsize=8)
def _layout_constants(T):
    # SUB: (P16, P8G) stride-2 subsample of a full-res 'same'-conv output
    # (indexed by the 18x18 grid) into the zero-bordered, G8-guarded 8x8-stage
    # layout (matches Conv2d(k3, s2, p1)).
    sub = np.zeros((P16, P8G), np.float32)
    for oy in range(HEATMAP_WIDTH):
        for ox in range(HEATMAP_WIDTH):
            sub[(2 * oy + 1) * WP16 + (2 * ox + 1),
                G8 + (oy + 1) * WP8 + (ox + 1)] = 1.0

    # UP: (P8PAD, P16G) 2x nearest upsample from the 8x8 interior of the 10x10
    # grid into one guarded 362-wide frame segment; rows >= P8 are zero so the
    # lane-padded (16,128) activations contribute nothing.
    up = np.zeros((P8PAD, P16G), np.float32)
    for iy in range(HEATMAP_WIDTH):
        for ix in range(HEATMAP_WIDTH):
            pi = (iy + 1) * WP8 + (ix + 1)
            for ry in range(2):
                for rx in range(2):
                    up[pi, G16 + (2 * iy + ry + 1) * WP16 + (2 * ix + rx + 1)] = 1.0

    # Interior masks (replace the old R16 re-embed matmul): 1 at image-pixel
    # positions of the conv output, 0 at border ring / guards / junk.
    def interior_mask(length, base, n_frames=1, stride=0):
        m = np.zeros((1, length), np.float32)
        for t in range(n_frames):
            for y in range(1, HP16 - 1):
                for x in range(1, WP16 - 1):
                    m[0, t * stride + base + y * WP16 + x] = 1.0
        return m

    me1 = interior_mask(P16 + 4 * G16, 2 * G16)                 # (1, 400)
    me2 = interior_mask(P16 + 2 * G16, G16)                     # (1, 362)
    md1 = interior_mask(T * P16G, G16, n_frames=T, stride=P16G)  # (1, T*362)

    # COORDS: (2, P8PAD) coordinate grids on the (padded) 10x10 heatmap grid.
    #   row 0 = x: -1 (left) .. +1 (right);  row 1 = y: +1 (top) .. -1 (bottom)
    # Lanes >= P8 are zero padding (discarded downstream).
    coords = np.zeros((2, P8PAD), np.float32)
    for r in range(HP8):
        for c in range(WP8):
            coords[0, r * WP8 + c] = -1.0 + 2.0 * (c - 1) / (HEATMAP_WIDTH - 1)
            coords[1, r * WP8 + c] = 1.0 - 2.0 * (r - 1) / (HEATMAP_WIDTH - 1)

    return dict(SUB=sub, UP=up, ME1=me1, ME2=me2, MD1=md1, COORDS=coords)


# ======================= in-kernel helpers ===================================

def _leaky(v):
    return jnp.where(v >= 0.0, v, LEAKY_SLOPE * v)


def _heatmaps(kp, gx, gy, inv_kw):
    """Gaussian keypoint maps.  kp: (K, 3) rows (x, y, scale); gx/gy: (1, P)."""
    x = kp[:, 0:1]
    y = kp[:, 1:2]
    s = kp[:, 2:3]
    d2 = (gx - x) ** 2 + (gy - y) ** 2            # (K, P)
    return jnp.exp(-d2 * inv_kw) * s


def _conv3x3(x, w2, b, wrow, guard):
    """3x3 cross-correlation (+bias +LeakyReLU) on a flat (cin, L) image.

    Output position j corresponds to input position j+guard; positions whose
    3x3 neighbourhood lies in zero-bordered image interior are exact, all
    other positions hold finite garbage (masked / cropped by the caller).
    Single MXU matmul: (cout, 9*cin) @ (9*cin, L-2*guard).
    """
    nout = x.shape[1] - 2 * guard
    taps = []
    for dy in range(3):
        for dx in range(3):
            off = (dy - 1) * wrow + (dx - 1)
            lo = guard + off
            taps.append(x[:, lo:lo + nout])
    patches = jnp.concatenate(taps, axis=0)                       # (9*cin, nout)
    y = jnp.dot(w2, patches, preferred_element_type=jnp.float32) + b
    return _leaky(y)


# ======================= Pallas kernels ======================================

def _encoder_static_kernel(ff_ref, kp_ref,
                           we1_ref, be1_ref, we2_ref, be2_ref,
                           we3_ref, be3_ref, we4_ref, be4_ref,
                           wa_static_ref, ba_ref,
                           sub_ref, me1_ref, me2_ref, coords_ref,
                           ystat_ref, *, inv_kw):
    """Per batch element: appearance encoder, first-frame gaussian maps and the
    time-invariant (pre-activation) part of adjust_channels_of_decoder_input.
    Output y_static is lane-padded to 128 (zeros beyond P8)."""
    coords = coords_ref[...][:, :P8]                              # (2, 100)

    x = ff_ref[0]                                                 # (8, 438)
    h = _conv3x3(x, we1_ref[...], be1_ref[...], WP16, G16) * me1_ref[...]   # (8, 400)
    h = _conv3x3(h, we2_ref[...], be2_ref[...], WP16, G16) * me2_ref[...]   # (8, 362)
    # stride-2 layer: full-res 'same' conv, then 0/1-matmul subsample directly
    # into the guarded 8x8-stage layout.
    h = _conv3x3(h, we3_ref[...], be3_ref[...], WP16, G16)                  # (16, 324)
    h = jnp.dot(h, sub_ref[...], preferred_element_type=jnp.float32)        # (16, 122)
    feat = _conv3x3(h, we4_ref[...], be4_ref[...], WP8, G8)                 # (16, 100)

    ffg = _heatmaps(kp_ref[0], coords[0:1, :], coords[1:2, :], inv_kw)      # (4, 100)

    # fused time-invariant part of the 1x1 adjust conv: [feat; ff_gauss; coords]
    stat = jnp.concatenate([feat, ffg, coords], axis=0)                     # (22, 100)
    ystat = (jnp.dot(wa_static_ref[...], stat,
                     preferred_element_type=jnp.float32) + ba_ref[...])     # (16, 100)
    ystat_ref[0] = jnp.concatenate(
        [ystat, jnp.zeros((NUM_ENC_OUT, P8PAD - P8), jnp.float32)], axis=1)  # (16, 128)


def _decoder_seq_kernel(kp_ref, ystat_ref,
                        wa_g_ref, wd1_ref, bd1_ref, wd2_ref, bd2_ref,
                        wo_ref, bo_ref,
                        up_ref, md1_ref, coords_ref,
                        out_ref, *, inv_kw, T):
    """All T frames of one batch element, stacked along the lane (pixel) axis:
    gaussian maps -> adjust conv (+LeakyReLU) -> 2x nearest upsample ->
    two 3x3 decoder convs -> 1x1 output conv.  Emits (3, T*324) padded frames;
    crop / transpose / first-frame residual happen in the wrapper."""
    coords = coords_ref[...]                                      # (2, 128)
    ystat = ystat_ref[0]                                          # (16, 128)
    up = up_ref[...]                                              # (128, 362)
    wa_g = wa_g_ref[...]                                          # (16, 4)

    # Build the lane-stacked, guarded decoder input:
    #   [ 19 zeros | frame_0 segment (362) | ... | frame_{T-1} (362) | 19 zeros ]
    zend = jnp.zeros((NUM_ENC_OUT, G16), jnp.float32)
    pieces = [zend]
    for t in range(T):                                            # static unroll
        g = _heatmaps(kp_ref[0, t], coords[0:1, :], coords[1:2, :], inv_kw)  # (4,128)
        x0 = _leaky(ystat + jnp.dot(wa_g, g, preferred_element_type=jnp.float32))
        pieces.append(jnp.dot(x0, up, preferred_element_type=jnp.float32))   # (16,362)
    pieces.append(zend)
    xu = jnp.concatenate(pieces, axis=1)                          # (16, T*362 + 38)

    h = _conv3x3(xu, wd1_ref[...], bd1_ref[...], WP16, G16) * md1_ref[...]   # (8, T*362)
    h = _conv3x3(h, wd2_ref[...], bd2_ref[...], WP16, G16)                   # (8, T*362-38)
    img = jnp.dot(wo_ref[...], h, preferred_element_type=jnp.float32) + bo_ref[...]

    # gather the per-frame 18x18 blocks (frame t at [t*362, t*362+324))
    frames = [img[:, t * P16G: t * P16G + P16] for t in range(T)]
    out_ref[0] = jnp.concatenate(frames, axis=1)                  # (3, T*324)


# ======================= forward pass ========================================

def _const_spec(arr):
    shape = tuple(arr.shape)
    n = len(shape)
    return pl.BlockSpec(shape, lambda *_: (0,) * n)


def keyp_to_images_decoder_forward(kparams, keypoints_seq, first_frame,
                                    first_frame_keypoints):
    """keypoints_seq: [B,T,K,3]; first_frame: [B,C,H,W] (NCHW);
       first_frame_keypoints: [B,K,3].  Returns [B,T,C,H,W]."""
    B, T, K, _ = keypoints_seq.shape
    c = {k: jnp.asarray(v) for k, v in _layout_constants(T).items()}
    inv_kw = 1.0 / (2.0 * (KEYPOINT_WIDTH / HEATMAP_WIDTH) ** 2)

    ff = first_frame.astype(jnp.float32)
    # Encoder input: spatial zero 'same' border (18x18), flatten row-major,
    # extend with 3*G16 zero lanes each side (3 shrinking convs), pad ch 3->8.
    ff18 = jnp.pad(ff, ((0, 0), (0, 0), (1, 1), (1, 1))).reshape(B, IM_C, P16)
    ff_ext = jnp.pad(ff18, ((0, 0), (0, ENC_CIN - IM_C), (3 * G16, 3 * G16)))
    ffkp = first_frame_keypoints.astype(jnp.float32)
    kp_seq = keypoints_seq.astype(jnp.float32)

    # ---- kernel 1 (grid=(B,)): encoder + ff maps + static part of adjust ----
    y_static = pl.pallas_call(
        functools.partial(_encoder_static_kernel, inv_kw=inv_kw),
        out_shape=jax.ShapeDtypeStruct((B, NUM_ENC_OUT, P8PAD), jnp.float32),
        grid=(B,),
        in_specs=[
            pl.BlockSpec((1, ENC_CIN, ENC_IN_LEN), lambda b: (b, 0, 0)),
            pl.BlockSpec((1, K, 3), lambda b: (b, 0, 0)),
            _const_spec(kparams['we1']), _const_spec(kparams['be1']),
            _const_spec(kparams['we2']), _const_spec(kparams['be2']),
            _const_spec(kparams['we3']), _const_spec(kparams['be3']),
            _const_spec(kparams['we4']), _const_spec(kparams['be4']),
            _const_spec(kparams['wa_static']), _const_spec(kparams['ba']),
            _const_spec(c['SUB']), _const_spec(c['ME1']),
            _const_spec(c['ME2']), _const_spec(c['COORDS']),
        ],
        out_specs=pl.BlockSpec((1, NUM_ENC_OUT, P8PAD), lambda b: (b, 0, 0)),
        compiler_params=pltpu.CompilerParams(dimension_semantics=("parallel",)),
    )(ff_ext, ffkp,
      kparams['we1'], kparams['be1'], kparams['we2'], kparams['be2'],
      kparams['we3'], kparams['be3'], kparams['we4'], kparams['be4'],
      kparams['wa_static'], kparams['ba'],
      c['SUB'], c['ME1'], c['ME2'], c['COORDS'])

    # ---- kernel 2 (grid=(B,)): fused T-stacked per-batch decoder -------------
    out_flat = pl.pallas_call(
        functools.partial(_decoder_seq_kernel, inv_kw=inv_kw, T=T),
        out_shape=jax.ShapeDtypeStruct((B, IM_C, T * P16), jnp.float32),
        grid=(B,),
        in_specs=[
            pl.BlockSpec((1, T, K, 3), lambda b: (b, 0, 0, 0)),
            pl.BlockSpec((1, NUM_ENC_OUT, P8PAD), lambda b: (b, 0, 0)),
            _const_spec(kparams['wa_g']),
            _const_spec(kparams['wd1']), _const_spec(kparams['bd1']),
            _const_spec(kparams['wd2']), _const_spec(kparams['bd2']),
            _const_spec(kparams['wout']), _const_spec(kparams['bout']),
            _const_spec(c['UP']), _const_spec(c['MD1']), _const_spec(c['COORDS']),
        ],
        out_specs=pl.BlockSpec((1, IM_C, T * P16), lambda b: (b, 0, 0)),
        compiler_params=pltpu.CompilerParams(dimension_semantics=("parallel",)),
    )(kp_seq, y_static,
      kparams['wa_g'],
      kparams['wd1'], kparams['bd1'], kparams['wd2'], kparams['bd2'],
      kparams['wout'], kparams['bout'],
      c['UP'], c['MD1'], c['COORDS'])

    # Cheap XLA epilogue on a tiny tensor: crop the 18x18 'same' padding,
    # go to [B,T,C,H,W] and add the first-frame residual (as in the reference).
    imgs = out_flat.reshape(B, IM_C, T, HP16, WP16)[:, :, :, 1:IM_H + 1, 1:IM_W + 1]
    imgs = jnp.transpose(imgs, (0, 2, 1, 3, 4))
    return imgs + ff[:, None, :, :, :]


# ======================= parameters ==========================================

def init_params(key):
    keys = iter(jax.random.split(key, 16))

    def conv_w(k, kh, kw, cin, cout):
        return (jax.random.normal(k, (kh, kw, cin, cout), jnp.float32)
                / np.sqrt(kh * kw * cin))

    p = {}
    # ---- ImageEncoder (appearance_feature_extractor): (3,16,16) -> (16,8,8)
    enc = []
    nf = NUM_ENCODER_FILTERS
    enc.append((conv_w(next(keys), 3, 3, IM_C, nf),
                jnp.zeros((nf,), jnp.float32), 1))
    for _ in range(LAYERS_PER_SCALE):
        enc.append((conv_w(next(keys), 3, 3, nf, nf),
                    jnp.zeros((nf,), jnp.float32), 1))
    width = IM_W
    while width > HEATMAP_WIDTH:
        width //= 2
        enc.append((conv_w(next(keys), 3, 3, nf, 2 * nf),
                    jnp.zeros((2 * nf,), jnp.float32), 2))
        nf *= 2
        for _ in range(LAYERS_PER_SCALE):
            enc.append((conv_w(next(keys), 3, 3, nf, nf),
                        jnp.zeros((nf,), jnp.float32), 1))
    p['encoder'] = enc
    assert nf == NUM_ENC_OUT

    # ---- adjust_channels_of_decoder_input (1x1 conv + LeakyReLU)
    cin_adj = 2 * NUM_KEYPOINTS + NUM_ENC_OUT + 2
    p['adj_in_w'] = (jax.random.normal(next(keys), (cin_adj, NUM_ENC_OUT),
                                       jnp.float32) / np.sqrt(cin_adj))
    p['adj_in_b'] = jnp.zeros((NUM_ENC_OUT,), jnp.float32)

    # ---- ImageDecoder: (16,8,8) -> (8,16,16); each scale = upsample + convs
    dec_scales = []
    nf, width = NUM_ENC_OUT, HEATMAP_WIDTH
    while width < IM_W:
        width *= 2
        scale = [(conv_w(next(keys), 3, 3, nf, nf // 2),
                  jnp.zeros((nf // 2,), jnp.float32))]
        nf //= 2
        for _ in range(LAYERS_PER_SCALE):
            scale.append((conv_w(next(keys), 3, 3, nf, nf),
                          jnp.zeros((nf,), jnp.float32)))
        dec_scales.append(scale)
    p['decoder'] = dec_scales
    assert nf == NUM_ENCODER_FILTERS

    # ---- adjust_channels_of_output_image (1x1 conv, no activation)
    p['out_w'] = (jax.random.normal(next(keys), (NUM_ENCODER_FILTERS, IM_C),
                                    jnp.float32) / np.sqrt(NUM_ENCODER_FILTERS))
    p['out_b'] = jnp.zeros((IM_C,), jnp.float32)
    return p


def prepare_params(params):
    """Re-layout params into kernel-ready matrices (done once, on the host)."""
    def w3x3(w, cin_pad=None):
        kh, kw, cin, cout = w.shape
        if cin_pad is not None and cin_pad > cin:
            w = jnp.pad(w, ((0, 0), (0, 0), (0, cin_pad - cin), (0, 0)))
        # (kh,kw,cin,cout) -> (cout, 9*cin), taps (dy,dx) major / cin minor.
        return jnp.transpose(w, (3, 0, 1, 2)).reshape(cout, -1)

    def col(b):
        return b.reshape(-1, 1)

    enc = params['encoder']
    assert len(enc) == 4 and enc[2][2] == 2, "kernel is specialised to this cfg"
    kp = {
        'we1': w3x3(enc[0][0], cin_pad=ENC_CIN), 'be1': col(enc[0][1]),
        'we2': w3x3(enc[1][0]),                  'be2': col(enc[1][1]),
        'we3': w3x3(enc[2][0]),                  'be3': col(enc[2][1]),
        'we4': w3x3(enc[3][0]),                  'be4': col(enc[3][1]),
    }
    # adjust conv input blocks: [g(K), feat(NE), ff_gauss(K), coords(2)];
    # the time-varying g part stays separate, the rest is fused into wa_static.
    wa = params['adj_in_w'].T                    # (16, 26)
    K = NUM_KEYPOINTS
    kp['wa_g'] = wa[:, :K]                       # (16, 4)
    kp['wa_static'] = wa[:, K:]                  # (16, 22) = [feat|ffg|coords]
    kp['ba'] = col(params['adj_in_b'])

    dec = params['decoder']
    assert len(dec) == 1 and len(dec[0]) == 2, "kernel is specialised to this cfg"
    kp['wd1'], kp['bd1'] = w3x3(dec[0][0][0]), col(dec[0][0][1])
    kp['wd2'], kp['bd2'] = w3x3(dec[0][1][0]), col(dec[0][1][1])
    kp['wout'] = params['out_w'].T               # (3, 8)
    kp['bout'] = col(params['out_b'])
    return kp


# ======================= main ================================================

if __name__ == "__main__":
    key = jax.random.PRNGKey(0)
    k_kp, k_ff, k_ffk, k_par = jax.random.split(key, 4)

    B, T, K = 2, 4, NUM_KEYPOINTS
    keypoints_seq = jax.random.uniform(k_kp, (B, T, K, 3), jnp.float32,
                                       minval=-1.0, maxval=1.0)
    first_frame = jax.random.normal(k_ff, (B, IM_C, IM_H, IM_W), jnp.float32)
    first_frame_keypoints = jax.random.uniform(k_ffk, (B, K, 3), jnp.float32,
                                               minval=-1.0, maxval=1.0)

    params = init_params(k_par)
    kparams = prepare_params(params)

    fwd = jax.jit(keyp_to_images_decoder_forward)
    out = fwd(kparams, keypoints_seq, first_frame, first_frame_keypoints)
    out = jax.block_until_ready(out)

    assert out.shape == (B, T, IM_C, IM_H, IM_W), out.shape
    assert out.dtype == jnp.float32
    assert bool(jnp.all(jnp.isfinite(out)))
    print("KERNEL_OK")
</pallas_src>

<mosaic_0001>
module attributes {stable_mosaic.version = 11 : i64} {
  func.func @_encoder_static_kernel(%arg0: i32, %arg1: memref<1x8x438xf32, #tpu.memory_space<vmem>>, %arg2: memref<1x4x3xf32, #tpu.memory_space<vmem>>, %arg3: memref<8x72xf32, #tpu.memory_space<vmem>>, %arg4: memref<8x1xf32, #tpu.memory_space<vmem>>, %arg5: memref<8x72xf32, #tpu.memory_space<vmem>>, %arg6: memref<8x1xf32, #tpu.memory_space<vmem>>, %arg7: memref<16x72xf32, #tpu.memory_space<vmem>>, %arg8: memref<16x1xf32, #tpu.memory_space<vmem>>, %arg9: memref<16x144xf32, #tpu.memory_space<vmem>>, %arg10: memref<16x1xf32, #tpu.memory_space<vmem>>, %arg11: memref<16x22xf32, #tpu.memory_space<vmem>>, %arg12: memref<16x1xf32, #tpu.memory_space<vmem>>, %arg13: memref<324x122xf32, #tpu.memory_space<vmem>>, %arg14: memref<1x400xf32, #tpu.memory_space<vmem>>, %arg15: memref<1x362xf32, #tpu.memory_space<vmem>>, %arg16: memref<2x128xf32, #tpu.memory_space<vmem>>, %arg17: memref<1x16x128xf32, #tpu.memory_space<vmem>>) attributes {dimension_semantics = [#tpu.dimension_semantics<parallel>], iteration_bounds = array<i64: 2>, scalar_prefetch = 0 : i64, scratch_operands = 0 : i64, tpu.core_type = #tpu.core_type<tc>, window_params = [{transform_indices = @transform_0, window_bounds = array<i64: 1, 8, 438>}, {transform_indices = @transform_1, window_bounds = array<i64: 1, 4, 3>}, {pipeline_mode = #tpu.pipeline_mode<synchronous>, transform_indices = @transform_2, window_bounds = array<i64: 8, 72>}, {pipeline_mode = #tpu.pipeline_mode<synchronous>, transform_indices = @transform_3, window_bounds = array<i64: 8, 1>}, {pipeline_mode = #tpu.pipeline_mode<synchronous>, transform_indices = @transform_4, window_bounds = array<i64: 8, 72>}, {pipeline_mode = #tpu.pipeline_mode<synchronous>, transform_indices = @transform_5, window_bounds = array<i64: 8, 1>}, {pipeline_mode = #tpu.pipeline_mode<synchronous>, transform_indices = @transform_6, window_bounds = array<i64: 16, 72>}, {pipeline_mode = #tpu.pipeline_mode<synchronous>, transform_indices = @transform_7, window_bounds = array<i64: 16, 1>}, {pipeline_mode = #tpu.pipeline_mode<synchronous>, transform_indices = @transform_8, window_bounds = array<i64: 16, 144>}, {pipeline_mode = #tpu.pipeline_mode<synchronous>, transform_indices = @transform_9, window_bounds = array<i64: 16, 1>}, {pipeline_mode = #tpu.pipeline_mode<synchronous>, transform_indices = @transform_10, window_bounds = array<i64: 16, 22>}, {pipeline_mode = #tpu.pipeline_mode<synchronous>, transform_indices = @transform_11, window_bounds = array<i64: 16, 1>}, {pipeline_mode = #tpu.pipeline_mode<synchronous>, transform_indices = @transform_12, window_bounds = array<i64: 324, 122>}, {pipeline_mode = #tpu.pipeline_mode<synchronous>, transform_indices = @transform_13, window_bounds = array<i64: 1, 400>}, {pipeline_mode = #tpu.pipeline_mode<synchronous>, transform_indices = @transform_14, window_bounds = array<i64: 1, 362>}, {pipeline_mode = #tpu.pipeline_mode<synchronous>, transform_indices = @transform_15, window_bounds = array<i64: 2, 128>}, {transform_indices = @transform_16, window_bounds = array<i64: 1, 16, 128>}]} {
    %c0 = arith.constant 0 : index
    %c0_0 = arith.constant 0 : index
    %0 = vector.load %arg16[%c0, %c0_0] : memref<2x128xf32, #tpu.memory_space<vmem>>, vector<2x128xf32>
    %1 = vector.extract_strided_slice %0 {offsets = [0, 0], sizes = [2, 100], strides = [1, 1]} : vector<2x128xf32> to vector<2x100xf32>
    %c0_1 = arith.constant 0 : index
    %c0_2 = arith.constant 0 : index
    %c0_3 = arith.constant 0 : index
    %2 = vector.load %arg1[%c0_1, %c0_2, %c0_3] : memref<1x8x438xf32, #tpu.memory_space<vmem>>, vector<1x8x438xf32>
    %3 = vector.shape_cast %2 : vector<1x8x438xf32> to vector<8x438xf32>
    %c0_4 = arith.constant 0 : index
    %c0_5 = arith.constant 0 : index
    %4 = vector.load %arg3[%c0_4, %c0_5] : memref<8x72xf32, #tpu.memory_space<vmem>>, vector<8x72xf32>
    %c0_6 = arith.constant 0 : index
    %c0_7 = arith.constant 0 : index
    %5 = vector.load %arg4[%c0_6, %c0_7] : memref<8x1xf32, #tpu.memory_space<vmem>>, vector<8x1xf32>
    %6 = vector.extract_strided_slice %3 {offsets = [0, 0], sizes = [8, 400], strides = [1, 1]} : vector<8x438xf32> to vector<8x400xf32>
    %7 = vector.extract_strided_slice %3 {offsets = [0, 1], sizes = [8, 400], strides = [1, 1]} : vector<8x438xf32> to vector<8x400xf32>
    %8 = vector.extract_strided_slice %3 {offsets = [0, 2], sizes = [8, 400], strides = [1, 1]} : vector<8x438xf32> to vector<8x400xf32>
    %9 = vector.extract_strided_slice %3 {offsets = [0, 18], sizes = [8, 400], strides = [1, 1]} : vector<8x438xf32> to vector<8x400xf32>
    %10 = vector.extract_strided_slice %3 {offsets = [0, 19], sizes = [8, 400], strides = [1, 1]} : vector<8x438xf32> to vector<8x400xf32>
    %11 = vector.extract_strided_slice %3 {offsets = [0, 20], sizes = [8, 400], strides = [1, 1]} : vector<8x438xf32> to vector<8x400xf32>
    %12 = vector.extract_strided_slice %3 {offsets = [0, 36], sizes = [8, 400], strides = [1, 1]} : vector<8x438xf32> to vector<8x400xf32>
    %13 = vector.extract_strided_slice %3 {offsets = [0, 37], sizes = [8, 400], strides = [1, 1]} : vector<8x438xf32> to vector<8x400xf32>
    %14 = vector.extract_strided_slice %3 {offsets = [0, 38], sizes = [8, 400], strides = [1, 1]} : vector<8x438xf32> to vector<8x400xf32>
    %15 = tpu.concatenate %6, %7, %8, %9, %10, %11, %12, %13, %14 in 0 : vector<8x400xf32>, vector<8x400xf32>, vector<8x400xf32>, vector<8x400xf32>, vector<8x400xf32>, vector<8x400xf32>, vector<8x400xf32>, vector<8x400xf32>, vector<8x400xf32> -> vector<72x400xf32>
    %cst = arith.constant dense<0.000000e+00> : vector<8x400xf32>
    %16 = tpu.matmul %4, %15, %cst {dimension_numbers = #tpu.dot_dimension_numbers<[1], [0], [0], [1], [0, 0, 1, 1], [], []>} : vector<8x72xf32>, vector<72x400xf32>, vector<8x400xf32> -> vector<8x400xf32>
    %17 = vector.broadcast %5 : vector<8x1xf32> to vector<8x400xf32>
    %18 = arith.addf %16, %17 : vector<8x400xf32>
    %cst_8 = arith.constant 0.000000e+00 : f32
    %19 = vector.broadcast %cst_8 : f32 to vector<8x400xf32>
    %20 = arith.cmpf oge, %18, %19 : vector<8x400xf32>
    %cst_9 = arith.constant 2.000000e-01 : f32
    %21 = vector.broadcast %cst_9 : f32 to vector<8x400xf32>
    %22 = arith.mulf %21, %18 : vector<8x400xf32>
    %23 = arith.select %20, %18, %22 : vector<8x400xi1>, vector<8x400xf32>
    %c0_10 = arith.constant 0 : index
    %c0_11 = arith.constant 0 : index
    %24 = vector.load %arg14[%c0_10, %c0_11] : memref<1x400xf32, #tpu.memory_space<vmem>>, vector<1x400xf32>
    %25 = vector.broadcast %24 : vector<1x400xf32> to vector<8x400xf32>
    %26 = arith.mulf %23, %25 : vector<8x400xf32>
    %c0_12 = arith.constant 0 : index
    %c0_13 = arith.constant 0 : index
    %27 = vector.load %arg5[%c0_12, %c0_13] : memref<8x72xf32, #tpu.memory_space<vmem>>, vector<8x72xf32>
    %c0_14 = arith.constant 0 : index
    %c0_15 = arith.constant 0 : index
    %28 = vector.load %arg6[%c0_14, %c0_15] : memref<8x1xf32, #tpu.memory_space<vmem>>, vector<8x1xf32>
    %29 = vector.extract_strided_slice %26 {offsets = [0, 0], sizes = [8, 362], strides = [1, 1]} : vector<8x400xf32> to vector<8x362xf32>
    %30 = vector.extract_strided_slice %26 {offsets = [0, 1], sizes = [8, 362], strides = [1, 1]} : vector<8x400xf32> to vector<8x362xf32>
    %31 = vector.extract_strided_slice %26 {offsets = [0, 2], sizes = [8, 362], strides = [1, 1]} : vector<8x400xf32> to vector<8x362xf32>
    %32 = vector.extract_strided_slice %26 {offsets = [0, 18], sizes = [8, 362], strides = [1, 1]} : vector<8x400xf32> to vector<8x362xf32>
    %33 = vector.extract_strided_slice %26 {offsets = [0, 19], sizes = [8, 362], strides = [1, 1]} : vector<8x400xf32> to vector<8x362xf32>
    %34 = vector.extract_strided_slice %26 {offsets = [0, 20], sizes = [8, 362], strides = [1, 1]} : vector<8x400xf32> to vector<8x362xf32>
    %35 = vector.extract_strided_slice %26 {offsets = [0, 36], sizes = [8, 362], strides = [1, 1]} : vector<8x400xf32> to vector<8x362xf32>
    %36 = vector.extract_strided_slice %26 {offsets = [0, 37], sizes = [8, 362], strides = [1, 1]} : vector<8x400xf32> to vector<8x362xf32>
    %37 = vector.extract_strided_slice %26 {offsets = [0, 38], sizes = [8, 362], strides = [1, 1]} : vector<8x400xf32> to vector<8x362xf32>
    %38 = tpu.concatenate %29, %30, %31, %32, %33, %34, %35, %36, %37 in 0 : vector<8x362xf32>, vector<8x362xf32>, vector<8x362xf32>, vector<8x362xf32>, vector<8x362xf32>, vector<8x362xf32>, vector<8x362xf32>, vector<8x362xf32>, vector<8x362xf32> -> vector<72x362xf32>
    %cst_16 = arith.constant dense<0.000000e+00> : vector<8x362xf32>
    %39 = tpu.matmul %27, %38, %cst_16 {dimension_numbers = #tpu.dot_dimension_numbers<[1], [0], [0], [1], [0, 0, 1, 1], [], []>} : vector<8x72xf32>, vector<72x362xf32>, vector<8x362xf32> -> vector<8x362xf32>
    %40 = vector.broadcast %28 : vector<8x1xf32> to vector<8x362xf32>
    %41 = arith.addf %39, %40 : vector<8x362xf32>
    %cst_17 = arith.constant 0.000000e+00 : f32
    %42 = vector.broadcast %cst_17 : f32 to vector<8x362xf32>
    %43 = arith.cmpf oge, %41, %42 : vector<8x362xf32>
    %cst_18 = arith.constant 2.000000e-01 : f32
    %44 = vector.broadcast %cst_18 : f32 to vector<8x362xf32>
    %45 = arith.mulf %44, %41 : vector<8x362xf32>
    %46 = arith.select %43, %41, %45 : vector<8x362xi1>, vector<8x362xf32>
    %c0_19 = arith.constant 0 : index
    %c0_20 = arith.constant 0 : index
    %47 = vector.load %arg15[%c0_19, %c0_20] : memref<1x362xf32, #tpu.memory_space<vmem>>, vector<1x362xf32>
    %48 = vector.broadcast %47 : vector<1x362xf32> to vector<8x362xf32>
    %49 = arith.mulf %46, %48 : vector<8x362xf32>
    %c0_21 = arith.constant 0 : index
    %c0_22 = arith.constant 0 : index
    %50 = vector.load %arg7[%c0_21, %c0_22] : memref<16x72xf32, #tpu.memory_space<vmem>>, vector<16x72xf32>
    %c0_23 = arith.constant 0 : index
    %c0_24 = arith.constant 0 : index
    %51 = vector.load %arg8[%c0_23, %c0_24] : memref<16x1xf32, #tpu.memory_space<vmem>>, vector<16x1xf32>
    %52 = vector.extract_strided_slice %49 {offsets = [0, 0], sizes = [8, 324], strides = [1, 1]} : vector<8x362xf32> to vector<8x324xf32>
    %53 = vector.extract_strided_slice %49 {offsets = [0, 1], sizes = [8, 324], strides = [1, 1]} : vector<8x362xf32> to vector<8x324xf32>
    %54 = vector.extract_strided_slice %49 {offsets = [0, 2], sizes = [8, 324], strides = [1, 1]} : vector<8x362xf32> to vector<8x324xf32>
    %55 = vector.extract_strided_slice %49 {offsets = [0, 18], sizes = [8, 324], strides = [1, 1]} : vector<8x362xf32> to vector<8x324xf32>
    %56 = vector.extract_strided_slice %49 {offsets = [0, 19], sizes = [8, 324], strides = [1, 1]} : vector<8x362xf32> to vector<8x324xf32>
    %57 = vector.extract_strided_slice %49 {offsets = [0, 20], sizes = [8, 324], strides = [1, 1]} : vector<8x362xf32> to vector<8x324xf32>
    %58 = vector.extract_strided_slice %49 {offsets = [0, 36], sizes = [8, 324], strides = [1, 1]} : vector<8x362xf32> to vector<8x324xf32>
    %59 = vector.extract_strided_slice %49 {offsets = [0, 37], sizes = [8, 324], strides = [1, 1]} : vector<8x362xf32> to vector<8x324xf32>
    %60 = vector.extract_strided_slice %49 {offsets = [0, 38], sizes = [8, 324], strides = [1, 1]} : vector<8x362xf32> to vector<8x324xf32>
    %61 = tpu.concatenate %52, %53, %54, %55, %56, %57, %58, %59, %60 in 0 : vector<8x324xf32>, vector<8x324xf32>, vector<8x324xf32>, vector<8x324xf32>, vector<8x324xf32>, vector<8x324xf32>, vector<8x324xf32>, vector<8x324xf32>, vector<8x324xf32> -> vector<72x324xf32>
    %cst_25 = arith.constant dense<0.000000e+00> : vector<16x324xf32>
    %62 = tpu.matmul %50, %61, %cst_25 {dimension_numbers = #tpu.dot_dimension_numbers<[1], [0], [0], [1], [0, 0, 1, 1], [], []>} : vector<16x72xf32>, vector<72x324xf32>, vector<16x324xf32> -> vector<16x324xf32>
    %63 = vector.broadcast %51 : vector<16x1xf32> to vector<16x324xf32>
    %64 = arith.addf %62, %63 : vector<16x324xf32>
    %cst_26 = arith.constant 0.000000e+00 : f32
    %65 = vector.broadcast %cst_26 : f32 to vector<16x324xf32>
    %66 = arith.cmpf oge, %64, %65 : vector<16x324xf32>
    %cst_27 = arith.constant 2.000000e-01 : f32
    %67 = vector.broadcast %cst_27 : f32 to vector<16x324xf32>
    %68 = arith.mulf %67, %64 : vector<16x324xf32>
    %69 = arith.select %66, %64, %68 : vector<16x324xi1>, vector<16x324xf32>
    %c0_28 = arith.constant 0 : index
    %c0_29 = arith.constant 0 : index
    %70 = vector.load %arg13[%c0_28, %c0_29] : memref<324x122xf32, #tpu.memory_space<vmem>>, vector<324x122xf32>
    %cst_30 = arith.constant dense<0.000000e+00> : vector<16x122xf32>
    %71 = tpu.matmul %69, %70, %cst_30 {dimension_numbers = #tpu.dot_dimension_numbers<[1], [0], [0], [1], [0, 0, 1, 1], [], []>} : vector<16x324xf32>, vector<324x122xf32>, vector<16x122xf32> -> vector<16x122xf32>
    %c0_31 = arith.constant 0 : index
    %c0_32 = arith.constant 0 : index
    %72 = vector.load %arg9[%c0_31, %c0_32] : memref<16x144xf32, #tpu.memory_space<vmem>>, vector<16x144xf32>
    %c0_33 = arith.constant 0 : index
    %c0_34 = arith.constant 0 : index
    %73 = vector.load %arg10[%c0_33, %c0_34] : memref<16x1xf32, #tpu.memory_space<vmem>>, vector<16x1xf32>
    %74 = vector.extract_strided_slice %71 {offsets = [0, 0], sizes = [16, 100], strides = [1, 1]} : vector<16x122xf32> to vector<16x100xf32>
    %75 = vector.extract_strided_slice %71 {offsets = [0, 1], sizes = [16, 100], strides = [1, 1]} : vector<16x122xf32> to vector<16x100xf32>
    %76 = vector.extract_strided_slice %71 {offsets = [0, 2], sizes = [16, 100], strides = [1, 1]} : vector<16x122xf32> to vector<16x100xf32>
    %77 = vector.extract_strided_slice %71 {offsets = [0, 10], sizes = [16, 100], strides = [1, 1]} : vector<16x122xf32> to vector<16x100xf32>
    %78 = vector.extract_strided_slice %71 {offsets = [0, 11], sizes = [16, 100], strides = [1, 1]} : vector<16x122xf32> to vector<16x100xf32>
    %79 = vector.extract_strided_slice %71 {offsets = [0, 12], sizes = [16, 100], strides = [1, 1]} : vector<16x122xf32> to vector<16x100xf32>
    %80 = vector.extract_strided_slice %71 {offsets = [0, 20], sizes = [16, 100], strides = [1, 1]} : vector<16x122xf32> to vector<16x100xf32>
    %81 = vector.extract_strided_slice %71 {offsets = [0, 21], sizes = [16, 100], strides = [1, 1]} : vector<16x122xf32> to vector<16x100xf32>
    %82 = vector.extract_strided_slice %71 {offsets = [0, 22], sizes = [16, 100], strides = [1, 1]} : vector<16x122xf32> to vector<16x100xf32>
    %83 = tpu.concatenate %74, %75, %76, %77, %78, %79, %80, %81, %82 in 0 : vector<16x100xf32>, vector<16x100xf32>, vector<16x100xf32>, vector<16x100xf32>, vector<16x100xf32>, vector<16x100xf32>, vector<16x100xf32>, vector<16x100xf32>, vector<16x100xf32> -> vector<144x100xf32>
    %cst_35 = arith.constant dense<0.000000e+00> : vector<16x100xf32>
    %84 = tpu.matmul %72, %83, %cst_35 {dimension_numbers = #tpu.dot_dimension_numbers<[1], [0], [0], [1], [0, 0, 1, 1], [], []>} : vector<16x144xf32>, vector<144x100xf32>, vector<16x100xf32> -> vector<16x100xf32>
    %85 = vector.broadcast %73 : vector<16x1xf32> to vector<16x100xf32>
    %86 = arith.addf %84, %85 : vector<16x100xf32>
    %cst_36 = arith.constant 0.000000e+00 : f32
    %87 = vector.broadcast %cst_36 : f32 to vector<16x100xf32>
    %88 = arith.cmpf oge, %86, %87 : vector<16x100xf32>
    %cst_37 = arith.constant 2.000000e-01 : f32
    %89 = vector.broadcast %cst_37 : f32 to vector<16x100xf32>
    %90 = arith.mulf %89, %86 : vector<16x100xf32>
    %91 = arith.select %88, %86, %90 : vector<16x100xi1>, vector<16x100xf32>
    %c0_38 = arith.constant 0 : index
    %c0_39 = arith.constant 0 : index
    %c0_40 = arith.constant 0 : index
    %92 = vector.load %arg2[%c0_38, %c0_39, %c0_40] : memref<1x4x3xf32, #tpu.memory_space<vmem>>, vector<1x4x3xf32>
    %93 = vector.shape_cast %92 : vector<1x4x3xf32> to vector<4x3xf32>
    %94 = vector.extract_strided_slice %1 {offsets = [0, 0], sizes = [1, 100], strides = [1, 1]} : vector<2x100xf32> to vector<1x100xf32>
    %95 = vector.extract_strided_slice %1 {offsets = [1, 0], sizes = [1, 100], strides = [1, 1]} : vector<2x100xf32> to vector<1x100xf32>
    %96 = vector.extract_strided_slice %93 {offsets = [0, 0], sizes = [4, 1], strides = [1, 1]} : vector<4x3xf32> to vector<4x1xf32>
    %97 = vector.extract_strided_slice %93 {offsets = [0, 1], sizes = [4, 1], strides = [1, 1]} : vector<4x3xf32> to vector<4x1xf32>
    %98 = vector.extract_strided_slice %93 {offsets = [0, 2], sizes = [4, 1], strides = [1, 1]} : vector<4x3xf32> to vector<4x1xf32>
    %99 = vector.broadcast %94 : vector<1x100xf32> to vector<4x100xf32>
    %100 = vector.broadcast %96 : vector<4x1xf32> to vector<4x100xf32>
    %101 = arith.subf %99, %100 : vector<4x100xf32>
    %102 = arith.mulf %101, %101 : vector<4x100xf32>
    %103 = vector.broadcast %95 : vector<1x100xf32> to vector<4x100xf32>
    %104 = vector.broadcast %97 : vector<4x1xf32> to vector<4x100xf32>
    %105 = arith.subf %103, %104 : vector<4x100xf32>
    %106 = arith.mulf %105, %105 : vector<4x100xf32>
    %107 = arith.addf %102, %106 : vector<4x100xf32>
    %cst_41 = arith.constant 0.000000e+00 : f32
    %108 = vector.broadcast %cst_41 : f32 to vector<4x100xf32>
    %109 = arith.subf %108, %107 : vector<4x100xf32>
    %cst_42 = arith.constant 14.2222223 : f32
    %110 = vector.broadcast %cst_42 : f32 to vector<4x100xf32>
    %111 = arith.mulf %109, %110 : vector<4x100xf32>
    %112 = math.exp %111 : vector<4x100xf32>
    %113 = vector.broadcast %98 : vector<4x1xf32> to vector<4x100xf32>
    %114 = arith.mulf %112, %113 : vector<4x100xf32>
    %115 = tpu.concatenate %91, %114, %1 in 0 : vector<16x100xf32>, vector<4x100xf32>, vector<2x100xf32> -> vector<22x100xf32>
    %c0_43 = arith.constant 0 : index
    %c0_44 = arith.constant 0 : index
    %116 = vector.load %arg11[%c0_43, %c0_44] : memref<16x22xf32, #tpu.memory_space<vmem>>, vector<16x22xf32>
    %cst_45 = arith.constant dense<0.000000e+00> : vector<16x100xf32>
    %117 = tpu.matmul %116, %115, %cst_45 {dimension_numbers = #tpu.dot_dimension_numbers<[1], [0], [0], [1], [0, 0, 1, 1], [], []>} : vector<16x22xf32>, vector<22x100xf32>, vector<16x100xf32> -> vector<16x100xf32>
    %c0_46 = arith.constant 0 : index
    %c0_47 = arith.constant 0 : index
    %118 = vector.load %arg12[%c0_46, %c0_47] : memref<16x1xf32, #tpu.memory_space<vmem>>, vector<16x1xf32>
    %119 = vector.broadcast %118 : vector<16x1xf32> to vector<16x100xf32>
    %120 = arith.addf %117, %119 : vector<16x100xf32>
    %cst_48 = arith.constant 0.000000e+00 : f32
    %121 = vector.broadcast %cst_48 : f32 to vector<16x28xf32>
    %122 = tpu.concatenate %120, %121 in 1 : vector<16x100xf32>, vector<16x28xf32> -> vector<16x128xf32>
    %c0_49 = arith.constant 0 : index
    %c0_50 = arith.constant 0 : index
    %c0_51 = arith.constant 0 : index
    %123 = vector.load %arg17[%c0_49, %c0_50, %c0_51] : memref<1x16x128xf32, #tpu.memory_space<vmem>>, vector<1x16x128xf32>
    %124 = vector.shape_cast %123 : vector<1x16x128xf32> to vector<16x128xf32>
    %125 = vector.shape_cast %122 : vector<16x128xf32> to vector<1x16x128xf32>
    tpu.vector_store %arg17[%c0_49, %c0_50, %c0_51], %125 {strides = array<i32>} : memref<1x16x128xf32, #tpu.memory_space<vmem>>, vector<1x16x128xf32>,
    return
  }
  func.func @transform_0(%arg0: i32) -> (i32, i32, i32) {
    %c0_i32 = arith.constant 0 : i32
    %c0_i32_0 = arith.constant 0 : i32
    %c0_i32_1 = arith.constant 0 : i32
    return %arg0, %c0_i32, %c0_i32_0 : i32, i32, i32
  }
  func.func @transform_1(%arg0: i32) -> (i32, i32, i32) {
    %c0_i32 = arith.constant 0 : i32
    %c0_i32_0 = arith.constant 0 : i32
    %c0_i32_1 = arith.constant 0 : i32
    return %arg0, %c0_i32, %c0_i32_0 : i32, i32, i32
  }
  func.func @transform_2(%arg0: i32) -> (i32, i32) {
    %c0_i32 = arith.constant 0 : i32
    %c0_i32_0 = arith.constant 0 : i32
    %c0_i32_1 = arith.constant 0 : i32
    return %c0_i32, %c0_i32_0 : i32, i32
  }
  func.func @transform_3(%arg0: i32) -> (i32, i32) {
    %c0_i32 = arith.constant 0 : i32
    %c0_i32_0 = arith.constant 0 : i32
    %c0_i32_1 = arith.constant 0 : i32
    return %c0_i32, %c0_i32_0 : i32, i32
  }
  func.func @transform_4(%arg0: i32) -> (i32, i32) {
    %c0_i32 = arith.constant 0 : i32
    %c0_i32_0 = arith.constant 0 : i32
    %c0_i32_1 = arith.constant 0 : i32
    return %c0_i32, %c0_i32_0 : i32, i32
  }
  func.func @transform_5(%arg0: i32) -> (i32, i32) {
    %c0_i32 = arith.constant 0 : i32
    %c0_i32_0 = arith.constant 0 : i32
    %c0_i32_1 = arith.constant 0 : i32
    return %c0_i32, %c0_i32_0 : i32, i32
  }
  func.func @transform_6(%arg0: i32) -> (i32, i32) {
    %c0_i32 = arith.constant 0 : i32
    %c0_i32_0 = arith.constant 0 : i32
    %c0_i32_1 = arith.constant 0 : i32
    return %c0_i32, %c0_i32_0 : i32, i32
  }
  func.func @transform_7(%arg0: i32) -> (i32, i32) {
    %c0_i32 = arith.constant 0 : i32
    %c0_i32_0 = arith.constant 0 : i32
    %c0_i32_1 = arith.constant 0 : i32
    return %c0_i32, %c0_i32_0 : i32, i32
  }
  func.func @transform_8(%arg0: i32) -> (i32, i32) {
    %c0_i32 = arith.constant 0 : i32
    %c0_i32_0 = arith.constant 0 : i32
    %c0_i32_1 = arith.constant 0 : i32
    return %c0_i32, %c0_i32_0 : i32, i32
  }
  func.func @transform_9(%arg0: i32) -> (i32, i32) {
    %c0_i32 = arith.constant 0 : i32
    %c0_i32_0 = arith.constant 0 : i32
    %c0_i32_1 = arith.constant 0 : i32
    return %c0_i32, %c0_i32_0 : i32, i32
  }
  func.func @transform_10(%arg0: i32) -> (i32, i32) {
    %c0_i32 = arith.constant 0 : i32
    %c0_i32_0 = arith.constant 0 : i32
    %c0_i32_1 = arith.constant 0 : i32
    return %c0_i32, %c0_i32_0 : i32, i32
  }
  func.func @transform_11(%arg0: i32) -> (i32, i32) {
    %c0_i32 = arith.constant 0 : i32
    %c0_i32_0 = arith.constant 0 : i32
    %c0_i32_1 = arith.constant 0 : i32
    return %c0_i32, %c0_i32_0 : i32, i32
  }
  func.func @transform_12(%arg0: i32) -> (i32, i32) {
    %c0_i32 = arith.constant 0 : i32
    %c0_i32_0 = arith.constant 0 : i32
    %c0_i32_1 = arith.constant 0 : i32
    return %c0_i32, %c0_i32_0 : i32, i32
  }
  func.func @transform_13(%arg0: i32) -> (i32, i32) {
    %c0_i32 = arith.constant 0 : i32
    %c0_i32_0 = arith.constant 0 : i32
    %c0_i32_1 = arith.constant 0 : i32
    return %c0_i32, %c0_i32_0 : i32, i32
  }
  func.func @transform_14(%arg0: i32) -> (i32, i32) {
    %c0_i32 = arith.constant 0 : i32
    %c0_i32_0 = arith.constant 0 : i32
    %c0_i32_1 = arith.constant 0 : i32
    return %c0_i32, %c0_i32_0 : i32, i32
  }
  func.func @transform_15(%arg0: i32) -> (i32, i32) {
    %c0_i32 = arith.constant 0 : i32
    %c0_i32_0 = arith.constant 0 : i32
    %c0_i32_1 = arith.constant 0 : i32
    return %c0_i32, %c0_i32_0 : i32, i32
  }
  func.func @transform_16(%arg0: i32) -> (i32, i32, i32) {
    %c0_i32 = arith.constant 0 : i32
    %c0_i32_0 = arith.constant 0 : i32
    %c0_i32_1 = arith.constant 0 : i32
    return %arg0, %c0_i32, %c0_i32_0 : i32, i32, i32
  }
}

module attributes {stable_mosaic.version = 11 : i64} {
  func.func @_decoder_seq_kernel(%arg0: i32, %arg1: memref<1x4x4x3xf32, #tpu.memory_space<vmem>>, %arg2: memref<1x16x128xf32, #tpu.memory_space<vmem>>, %arg3: memref<16x4xf32, #tpu.memory_space<vmem>>, %arg4: memref<8x144xf32, #tpu.memory_space<vmem>>, %arg5: memref<8x1xf32, #tpu.memory_space<vmem>>, %arg6: memref<8x72xf32, #tpu.memory_space<vmem>>, %arg7: memref<8x1xf32, #tpu.memory_space<vmem>>, %arg8: memref<3x8xf32, #tpu.memory_space<vmem>>, %arg9: memref<3x1xf32, #tpu.memory_space<vmem>>, %arg10: memref<128x362xf32, #tpu.memory_space<vmem>>, %arg11: memref<1x1448xf32, #tpu.memory_space<vmem>>, %arg12: memref<2x128xf32, #tpu.memory_space<vmem>>, %arg13: memref<1x3x1296xf32, #tpu.memory_space<vmem>>) attributes {dimension_semantics = [#tpu.dimension_semantics<parallel>], iteration_bounds = array<i64: 2>, scalar_prefetch = 0 : i64, scratch_operands = 0 : i64, tpu.core_type = #tpu.core_type<tc>, window_params = [{transform_indices = @transform_0, window_bounds = array<i64: 1, 4, 4, 3>}, {transform_indices = @transform_1, window_bounds = array<i64: 1, 16, 128>}, {pipeline_mode = #tpu.pipeline_mode<synchronous>, transform_indices = @transform_2, window_bounds = array<i64: 16, 4>}, {pipeline_mode = #tpu.pipeline_mode<synchronous>, transform_indices = @transform_3, window_bounds = array<i64: 8, 144>}, {pipeline_mode = #tpu.pipeline_mode<synchronous>, transform_indices = @transform_4, window_bounds = array<i64: 8, 1>}, {pipeline_mode = #tpu.pipeline_mode<synchronous>, transform_indices = @transform_5, window_bounds = array<i64: 8, 72>}, {pipeline_mode = #tpu.pipeline_mode<synchronous>, transform_indices = @transform_6, window_bounds = array<i64: 8, 1>}, {pipeline_mode = #tpu.pipeline_mode<synchronous>, transform_indices = @transform_7, window_bounds = array<i64: 3, 8>}, {pipeline_mode = #tpu.pipeline_mode<synchronous>, transform_indices = @transform_8, window_bounds = array<i64: 3, 1>}, {pipeline_mode = #tpu.pipeline_mode<synchronous>, transform_indices = @transform_9, window_bounds = array<i64: 128, 362>}, {pipeline_mode = #tpu.pipeline_mode<synchronous>, transform_indices = @transform_10, window_bounds = array<i64: 1, 1448>}, {pipeline_mode = #tpu.pipeline_mode<synchronous>, transform_indices = @transform_11, window_bounds = array<i64: 2, 128>}, {transform_indices = @transform_12, window_bounds = array<i64: 1, 3, 1296>}]} {
    %c0 = arith.constant 0 : index
    %c0_0 = arith.constant 0 : index
    %0 = vector.load %arg12[%c0, %c0_0] : memref<2x128xf32, #tpu.memory_space<vmem>>, vector<2x128xf32>
    %c0_1 = arith.constant 0 : index
    %c0_2 = arith.constant 0 : index
    %c0_3 = arith.constant 0 : index
    %1 = vector.load %arg2[%c0_1, %c0_2, %c0_3] : memref<1x16x128xf32, #tpu.memory_space<vmem>>, vector<1x16x128xf32>
    %2 = vector.shape_cast %1 : vector<1x16x128xf32> to vector<16x128xf32>
    %c0_4 = arith.constant 0 : index
    %c0_5 = arith.constant 0 : index
    %3 = vector.load %arg10[%c0_4, %c0_5] : memref<128x362xf32, #tpu.memory_space<vmem>>, vector<128x362xf32>
    %c0_6 = arith.constant 0 : index
    %c0_7 = arith.constant 0 : index
    %4 = vector.load %arg3[%c0_6, %c0_7] : memref<16x4xf32, #tpu.memory_space<vmem>>, vector<16x4xf32>
    %cst = arith.constant 0.000000e+00 : f32
    %5 = vector.broadcast %cst : f32 to vector<16x19xf32>
    %c0_8 = arith.constant 0 : index
    %c0_9 = arith.constant 0 : index
    %c0_10 = arith.constant 0 : index
    %c0_11 = arith.constant 0 : index
    %6 = vector.load %arg1[%c0_8, %c0_9, %c0_10, %c0_11] : memref<1x4x4x3xf32, #tpu.memory_space<vmem>>, vector<1x1x4x3xf32>
    %7 = vector.shape_cast %6 : vector<1x1x4x3xf32> to vector<4x3xf32>
    %8 = vector.extract_strided_slice %0 {offsets = [0, 0], sizes = [1, 128], strides = [1, 1]} : vector<2x128xf32> to vector<1x128xf32>
    %9 = vector.extract_strided_slice %0 {offsets = [1, 0], sizes = [1, 128], strides = [1, 1]} : vector<2x128xf32> to vector<1x128xf32>
    %10 = vector.extract_strided_slice %7 {offsets = [0, 0], sizes = [4, 1], strides = [1, 1]} : vector<4x3xf32> to vector<4x1xf32>
    %11 = vector.extract_strided_slice %7 {offsets = [0, 1], sizes = [4, 1], strides = [1, 1]} : vector<4x3xf32> to vector<4x1xf32>
    %12 = vector.extract_strided_slice %7 {offsets = [0, 2], sizes = [4, 1], strides = [1, 1]} : vector<4x3xf32> to vector<4x1xf32>
    %13 = vector.broadcast %8 : vector<1x128xf32> to vector<4x128xf32>
    %14 = vector.broadcast %10 : vector<4x1xf32> to vector<4x128xf32>
    %15 = arith.subf %13, %14 : vector<4x128xf32>
    %16 = arith.mulf %15, %15 : vector<4x128xf32>
    %17 = vector.broadcast %9 : vector<1x128xf32> to vector<4x128xf32>
    %18 = vector.broadcast %11 : vector<4x1xf32> to vector<4x128xf32>
    %19 = arith.subf %17, %18 : vector<4x128xf32>
    %20 = arith.mulf %19, %19 : vector<4x128xf32>
    %21 = arith.addf %16, %20 : vector<4x128xf32>
    %cst_12 = arith.constant 0.000000e+00 : f32
    %22 = vector.broadcast %cst_12 : f32 to vector<4x128xf32>
    %23 = arith.subf %22, %21 : vector<4x128xf32>
    %cst_13 = arith.constant 14.2222223 : f32
    %24 = vector.broadcast %cst_13 : f32 to vector<4x128xf32>
    %25 = arith.mulf %23, %24 : vector<4x128xf32>
    %26 = math.exp %25 : vector<4x128xf32>
    %27 = vector.broadcast %12 : vector<4x1xf32> to vector<4x128xf32>
    %28 = arith.mulf %26, %27 : vector<4x128xf32>
    %cst_14 = arith.constant dense<0.000000e+00> : vector<16x128xf32>
    %29 = tpu.matmul %4, %28, %cst_14 {dimension_numbers = #tpu.dot_dimension_numbers<[1], [0], [0], [1], [0, 0, 1, 1], [], []>} : vector<16x4xf32>, vector<4x128xf32>, vector<16x128xf32> -> vector<16x128xf32>
    %30 = arith.addf %2, %29 : vector<16x128xf32>
    %cst_15 = arith.constant 0.000000e+00 : f32
    %31 = vector.broadcast %cst_15 : f32 to vector<16x128xf32>
    %32 = arith.cmpf oge, %30, %31 : vector<16x128xf32>
    %cst_16 = arith.constant 2.000000e-01 : f32
    %33 = vector.broadcast %cst_16 : f32 to vector<16x128xf32>
    %34 = arith.mulf %33, %30 : vector<16x128xf32>
    %35 = arith.select %32, %30, %34 : vector<16x128xi1>, vector<16x128xf32>
    %cst_17 = arith.constant dense<0.000000e+00> : vector<16x362xf32>
    %36 = tpu.matmul %35, %3, %cst_17 {dimension_numbers = #tpu.dot_dimension_numbers<[1], [0], [0], [1], [0, 0, 1, 1], [], []>} : vector<16x128xf32>, vector<128x362xf32>, vector<16x362xf32> -> vector<16x362xf32>
    %c0_18 = arith.constant 0 : index
    %c1 = arith.constant 1 : index
    %c0_19 = arith.constant 0 : index
    %c0_20 = arith.constant 0 : index
    %37 = vector.load %arg1[%c0_18, %c1, %c0_19, %c0_20] : memref<1x4x4x3xf32, #tpu.memory_space<vmem>>, vector<1x1x4x3xf32>
    %38 = vector.shape_cast %37 : vector<1x1x4x3xf32> to vector<4x3xf32>
    %39 = vector.extract_strided_slice %0 {offsets = [0, 0], sizes = [1, 128], strides = [1, 1]} : vector<2x128xf32> to vector<1x128xf32>
    %40 = vector.extract_strided_slice %0 {offsets = [1, 0], sizes = [1, 128], strides = [1, 1]} : vector<2x128xf32> to vector<1x128xf32>
    %41 = vector.extract_strided_slice %38 {offsets = [0, 0], sizes = [4, 1], strides = [1, 1]} : vector<4x3xf32> to vector<4x1xf32>
    %42 = vector.extract_strided_slice %38 {offsets = [0, 1], sizes = [4, 1], strides = [1, 1]} : vector<4x3xf32> to vector<4x1xf32>
    %43 = vector.extract_strided_slice %38 {offsets = [0, 2], sizes = [4, 1], strides = [1, 1]} : vector<4x3xf32> to vector<4x1xf32>
    %44 = vector.broadcast %39 : vector<1x128xf32> to vector<4x128xf32>
    %45 = vector.broadcast %41 : vector<4x1xf32> to vector<4x128xf32>
    %46 = arith.subf %44, %45 : vector<4x128xf32>
    %47 = arith.mulf %46, %46 : vector<4x128xf32>
    %48 = vector.broadcast %40 : vector<1x128xf32> to vector<4x128xf32>
    %49 = vector.broadcast %42 : vector<4x1xf32> to vector<4x128xf32>
    %50 = arith.subf %48, %49 : vector<4x128xf32>
    %51 = arith.mulf %50, %50 : vector<4x128xf32>
    %52 = arith.addf %47, %51 : vector<4x128xf32>
    %cst_21 = arith.constant 0.000000e+00 : f32
    %53 = vector.broadcast %cst_21 : f32 to vector<4x128xf32>
    %54 = arith.subf %53, %52 : vector<4x128xf32>
    %cst_22 = arith.constant 14.2222223 : f32
    %55 = vector.broadcast %cst_22 : f32 to vector<4x128xf32>
    %56 = arith.mulf %54, %55 : vector<4x128xf32>
    %57 = math.exp %56 : vector<4x128xf32>
    %58 = vector.broadcast %43 : vector<4x1xf32> to vector<4x128xf32>
    %59 = arith.mulf %57, %58 : vector<4x128xf32>
    %cst_23 = arith.constant dense<0.000000e+00> : vector<16x128xf32>
    %60 = tpu.matmul %4, %59, %cst_23 {dimension_numbers = #tpu.dot_dimension_numbers<[1], [0], [0], [1], [0, 0, 1, 1], [], []>} : vector<16x4xf32>, vector<4x128xf32>, vector<16x128xf32> -> vector<16x128xf32>
    %61 = arith.addf %2, %60 : vector<16x128xf32>
    %cst_24 = arith.constant 0.000000e+00 : f32
    %62 = vector.broadcast %cst_24 : f32 to vector<16x128xf32>
    %63 = arith.cmpf oge, %61, %62 : vector<16x128xf32>
    %cst_25 = arith.constant 2.000000e-01 : f32
    %64 = vector.broadcast %cst_25 : f32 to vector<16x128xf32>
    %65 = arith.mulf %64, %61 : vector<16x128xf32>
    %66 = arith.select %63, %61, %65 : vector<16x128xi1>, vector<16x128xf32>
    %cst_26 = arith.constant dense<0.000000e+00> : vector<16x362xf32>
    %67 = tpu.matmul %66, %3, %cst_26 {dimension_numbers = #tpu.dot_dimension_numbers<[1], [0], [0], [1], [0, 0, 1, 1], [], []>} : vector<16x128xf32>, vector<128x362xf32>, vector<16x362xf32> -> vector<16x362xf32>
    %c0_27 = arith.constant 0 : index
    %c2 = arith.constant 2 : index
    %c0_28 = arith.constant 0 : index
    %c0_29 = arith.constant 0 : index
    %68 = vector.load %arg1[%c0_27, %c2, %c0_28, %c0_29] : memref<1x4x4x3xf32, #tpu.memory_space<vmem>>, vector<1x1x4x3xf32>
    %69 = vector.shape_cast %68 : vector<1x1x4x3xf32> to vector<4x3xf32>
    %70 = vector.extract_strided_slice %0 {offsets = [0, 0], sizes = [1, 128], strides = [1, 1]} : vector<2x128xf32> to vector<1x128xf32>
    %71 = vector.extract_strided_slice %0 {offsets = [1, 0], sizes = [1, 128], strides = [1, 1]} : vector<2x128xf32> to vector<1x128xf32>
    %72 = vector.extract_strided_slice %69 {offsets = [0, 0], sizes = [4, 1], strides = [1, 1]} : vector<4x3xf32> to vector<4x1xf32>
    %73 = vector.extract_strided_slice %69 {offsets = [0, 1], sizes = [4, 1], strides = [1, 1]} : vector<4x3xf32> to vector<4x1xf32>
    %74 = vector.extract_strided_slice %69 {offsets = [0, 2], sizes = [4, 1], strides = [1, 1]} : vector<4x3xf32> to vector<4x1xf32>
    %75 = vector.broadcast %70 : vector<1x128xf32> to vector<4x128xf32>
    %76 = vector.broadcast %72 : vector<4x1xf32> to vector<4x128xf32>
    %77 = arith.subf %75, %76 : vector<4x128xf32>
    %78 = arith.mulf %77, %77 : vector<4x128xf32>
    %79 = vector.broadcast %71 : vector<1x128xf32> to vector<4x128xf32>
    %80 = vector.broadcast %73 : vector<4x1xf32> to vector<4x128xf32>
    %81 = arith.subf %79, %80 : vector<4x128xf32>
    %82 = arith.mulf %81, %81 : vector<4x128xf32>
    %83 = arith.addf %78, %82 : vector<4x128xf32>
    %cst_30 = arith.constant 0.000000e+00 : f32
    %84 = vector.broadcast %cst_30 : f32 to vector<4x128xf32>
    %85 = arith.subf %84, %83 : vector<4x128xf32>
    %cst_31 = arith.constant 14.2222223 : f32
    %86 = vector.broadcast %cst_31 : f32 to vector<4x128xf32>
    %87 = arith.mulf %85, %86 : vector<4x128xf32>
    %88 = math.exp %87 : vector<4x128xf32>
    %89 = vector.broadcast %74 : vector<4x1xf32> to vector<4x128xf32>
    %90 = arith.mulf %88, %89 : vector<4x128xf32>
    %cst_32 = arith.constant dense<0.000000e+00> : vector<16x128xf32>
    %91 = tpu.matmul %4, %90, %cst_32 {dimension_numbers = #tpu.dot_dimension_numbers<[1], [0], [0], [1], [0, 0, 1, 1], [], []>} : vector<16x4xf32>, vector<4x128xf32>, vector<16x128xf32> -> vector<16x128xf32>
    %92 = arith.addf %2, %91 : vector<16x128xf32>
    %cst_33 = arith.constant 0.000000e+00 : f32
    %93 = vector.broadcast %cst_33 : f32 to vector<16x128xf32>
    %94 = arith.cmpf oge, %92, %93 : vector<16x128xf32>
    %cst_34 = arith.constant 2.000000e-01 : f32
    %95 = vector.broadcast %cst_34 : f32 to vector<16x128xf32>
    %96 = arith.mulf %95, %92 : vector<16x128xf32>
    %97 = arith.select %94, %92, %96 : vector<16x128xi1>, vector<16x128xf32>
    %cst_35 = arith.constant dense<0.000000e+00> : vector<16x362xf32>
    %98 = tpu.matmul %97, %3, %cst_35 {dimension_numbers = #tpu.dot_dimension_numbers<[1], [0], [0], [1], [0, 0, 1, 1], [], []>} : vector<16x128xf32>, vector<128x362xf32>, vector<16x362xf32> -> vector<16x362xf32>
    %c0_36 = arith.constant 0 : index
    %c3 = arith.constant 3 : index
    %c0_37 = arith.constant 0 : index
    %c0_38 = arith.constant 0 : index
    %99 = vector.load %arg1[%c0_36, %c3, %c0_37, %c0_38] : memref<1x4x4x3xf32, #tpu.memory_space<vmem>>, vector<1x1x4x3xf32>
    %100 = vector.shape_cast %99 : vector<1x1x4x3xf32> to vector<4x3xf32>
    %101 = vector.extract_strided_slice %0 {offsets = [0, 0], sizes = [1, 128], strides = [1, 1]} : vector<2x128xf32> to vector<1x128xf32>
    %102 = vector.extract_strided_slice %0 {offsets = [1, 0], sizes = [1, 128], strides = [1, 1]} : vector<2x128xf32> to vector<1x128xf32>
    %103 = vector.extract_strided_slice %100 {offsets = [0, 0], sizes = [4, 1], strides = [1, 1]} : vector<4x3xf32> to vector<4x1xf32>
    %104 = vector.extract_strided_slice %100 {offsets = [0, 1], sizes = [4, 1], strides = [1, 1]} : vector<4x3xf32> to vector<4x1xf32>
    %105 = vector.extract_strided_slice %100 {offsets = [0, 2], sizes = [4, 1], strides = [1, 1]} : vector<4x3xf32> to vector<4x1xf32>
    %106 = vector.broadcast %101 : vector<1x128xf32> to vector<4x128xf32>
    %107 = vector.broadcast %103 : vector<4x1xf32> to vector<4x128xf32>
    %108 = arith.subf %106, %107 : vector<4x128xf32>
    %109 = arith.mulf %108, %108 : vector<4x128xf32>
    %110 = vector.broadcast %102 : vector<1x128xf32> to vector<4x128xf32>
    %111 = vector.broadcast %104 : vector<4x1xf32> to vector<4x128xf32>
    %112 = arith.subf %110, %111 : vector<4x128xf32>
    %113 = arith.mulf %112, %112 : vector<4x128xf32>
    %114 = arith.addf %109, %113 : vector<4x128xf32>
    %cst_39 = arith.constant 0.000000e+00 : f32
    %115 = vector.broadcast %cst_39 : f32 to vector<4x128xf32>
    %116 = arith.subf %115, %114 : vector<4x128xf32>
    %cst_40 = arith.constant 14.2222223 : f32
    %117 = vector.broadcast %cst_40 : f32 to vector<4x128xf32>
    %118 = arith.mulf %116, %117 : vector<4x128xf32>
    %119 = math.exp %118 : vector<4x128xf32>
    %120 = vector.broadcast %105 : vector<4x1xf32> to vector<4x128xf32>
    %121 = arith.mulf %119, %120 : vector<4x128xf32>
    %cst_41 = arith.constant dense<0.000000e+00> : vector<16x128xf32>
    %122 = tpu.matmul %4, %121, %cst_41 {dimension_numbers = #tpu.dot_dimension_numbers<[1], [0], [0], [1], [0, 0, 1, 1], [], []>} : vector<16x4xf32>, vector<4x128xf32>, vector<16x128xf32> -> vector<16x128xf32>
    %123 = arith.addf %2, %122 : vector<16x128xf32>
    %cst_42 = arith.constant 0.000000e+00 : f32
    %124 = vector.broadcast %cst_42 : f32 to vector<16x128xf32>
    %125 = arith.cmpf oge, %123, %124 : vector<16x128xf32>
    %cst_43 = arith.constant 2.000000e-01 : f32
    %126 = vector.broadcast %cst_43 : f32 to vector<16x128xf32>
    %127 = arith.mulf %126, %123 : vector<16x128xf32>
    %128 = arith.select %125, %123, %127 : vector<16x128xi1>, vector<16x128xf32>
    %cst_44 = arith.constant dense<0.000000e+00> : vector<16x362xf32>
    %129 = tpu.matmul %128, %3, %cst_44 {dimension_numbers = #tpu.dot_dimension_numbers<[1], [0], [0], [1], [0, 0, 1, 1], [], []>} : vector<16x128xf32>, vector<128x362xf32>, vector<16x362xf32> -> vector<16x362xf32>
    %130 = tpu.concatenate %5, %36, %67, %98, %129, %5 in 1 : vector<16x19xf32>, vector<16x362xf32>, vector<16x362xf32>, vector<16x362xf32>, vector<16x362xf32>, vector<16x19xf32> -> vector<16x1486xf32>
    %c0_45 = arith.constant 0 : index
    %c0_46 = arith.constant 0 : index
    %131 = vector.load %arg4[%c0_45, %c0_46] : memref<8x144xf32, #tpu.memory_space<vmem>>, vector<8x144xf32>
    %c0_47 = arith.constant 0 : index
    %c0_48 = arith.constant 0 : index
    %132 = vector.load %arg5[%c0_47, %c0_48] : memref<8x1xf32, #tpu.memory_space<vmem>>, vector<8x1xf32>
    %133 = vector.extract_strided_slice %130 {offsets = [0, 0], sizes = [16, 1448], strides = [1, 1]} : vector<16x1486xf32> to vector<16x1448xf32>
    %134 = vector.extract_strided_slice %130 {offsets = [0, 1], sizes = [16, 1448], strides = [1, 1]} : vector<16x1486xf32> to vector<16x1448xf32>
    %135 = vector.extract_strided_slice %130 {offsets = [0, 2], sizes = [16, 1448], strides = [1, 1]} : vector<16x1486xf32> to vector<16x1448xf32>
    %136 = vector.extract_strided_slice %130 {offsets = [0, 18], sizes = [16, 1448], strides = [1, 1]} : vector<16x1486xf32> to vector<16x1448xf32>
    %137 = vector.extract_strided_slice %130 {offsets = [0, 19], sizes = [16, 1448], strides = [1, 1]} : vector<16x1486xf32> to vector<16x1448xf32>
    %138 = vector.extract_strided_slice %130 {offsets = [0, 20], sizes = [16, 1448], strides = [1, 1]} : vector<16x1486xf32> to vector<16x1448xf32>
    %139 = vector.extract_strided_slice %130 {offsets = [0, 36], sizes = [16, 1448], strides = [1, 1]} : vector<16x1486xf32> to vector<16x1448xf32>
    %140 = vector.extract_strided_slice %130 {offsets = [0, 37], sizes = [16, 1448], strides = [1, 1]} : vector<16x1486xf32> to vector<16x1448xf32>
    %141 = vector.extract_strided_slice %130 {offsets = [0, 38], sizes = [16, 1448], strides = [1, 1]} : vector<16x1486xf32> to vector<16x1448xf32>
    %142 = tpu.concatenate %133, %134, %135, %136, %137, %138, %139, %140, %141 in 0 : vector<16x1448xf32>, vector<16x1448xf32>, vector<16x1448xf32>, vector<16x1448xf32>, vector<16x1448xf32>, vector<16x1448xf32>, vector<16x1448xf32>, vector<16x1448xf32>, vector<16x1448xf32> -> vector<144x1448xf32>
    %cst_49 = arith.constant dense<0.000000e+00> : vector<8x1448xf32>
    %143 = tpu.matmul %131, %142, %cst_49 {dimension_numbers = #tpu.dot_dimension_numbers<[1], [0], [0], [1], [0, 0, 1, 1], [], []>} : vector<8x144xf32>, vector<144x1448xf32>, vector<8x1448xf32> -> vector<8x1448xf32>
    %144 = vector.broadcast %132 : vector<8x1xf32> to vector<8x1448xf32>
    %145 = arith.addf %143, %144 : vector<8x1448xf32>
    %cst_50 = arith.constant 0.000000e+00 : f32
    %146 = vector.broadcast %cst_50 : f32 to vector<8x1448xf32>
    %147 = arith.cmpf oge, %145, %146 : vector<8x1448xf32>
    %cst_51 = arith.constant 2.000000e-01 : f32
    %148 = vector.broadcast %cst_51 : f32 to vector<8x1448xf32>
    %149 = arith.mulf %148, %145 : vector<8x1448xf32>
    %150 = arith.select %147, %145, %149 : vector<8x1448xi1>, vector<8x1448xf32>
    %c0_52 = arith.constant 0 : index
    %c0_53 = arith.constant 0 : index
    %151 = vector.load %arg11[%c0_52, %c0_53] : memref<1x1448xf32, #tpu.memory_space<vmem>>, vector<1x1448xf32>
    %152 = vector.broadcast %151 : vector<1x1448xf32> to vector<8x1448xf32>
    %153 = arith.mulf %150, %152 : vector<8x1448xf32>
    %c0_54 = arith.constant 0 : index
    %c0_55 = arith.constant 0 : index
    %154 = vector.load %arg6[%c0_54, %c0_55] : memref<8x72xf32, #tpu.memory_space<vmem>>, vector<8x72xf32>
    %c0_56 = arith.constant 0 : index
    %c0_57 = arith.constant 0 : index
    %155 = vector.load %arg7[%c0_56, %c0_57] : memref<8x1xf32, #tpu.memory_space<vmem>>, vector<8x1xf32>
    %156 = vector.extract_strided_slice %153 {offsets = [0, 0], sizes = [8, 1410], strides = [1, 1]} : vector<8x1448xf32> to vector<8x1410xf32>
    %157 = vector.extract_strided_slice %153 {offsets = [0, 1], sizes = [8, 1410], strides = [1, 1]} : vector<8x1448xf32> to vector<8x1410xf32>
    %158 = vector.extract_strided_slice %153 {offsets = [0, 2], sizes = [8, 1410], strides = [1, 1]} : vector<8x1448xf32> to vector<8x1410xf32>
    %159 = vector.extract_strided_slice %153 {offsets = [0, 18], sizes = [8, 1410], strides = [1, 1]} : vector<8x1448xf32> to vector<8x1410xf32>
    %160 = vector.extract_strided_slice %153 {offsets = [0, 19], sizes = [8, 1410], strides = [1, 1]} : vector<8x1448xf32> to vector<8x1410xf32>
    %161 = vector.extract_strided_slice %153 {offsets = [0, 20], sizes = [8, 1410], strides = [1, 1]} : vector<8x1448xf32> to vector<8x1410xf32>
    %162 = vector.extract_strided_slice %153 {offsets = [0, 36], sizes = [8, 1410], strides = [1, 1]} : vector<8x1448xf32> to vector<8x1410xf32>
    %163 = vector.extract_strided_slice %153 {offsets = [0, 37], sizes = [8, 1410], strides = [1, 1]} : vector<8x1448xf32> to vector<8x1410xf32>
    %164 = vector.extract_strided_slice %153 {offsets = [0, 38], sizes = [8, 1410], strides = [1, 1]} : vector<8x1448xf32> to vector<8x1410xf32>
    %165 = tpu.concatenate %156, %157, %158, %159, %160, %161, %162, %163, %164 in 0 : vector<8x1410xf32>, vector<8x1410xf32>, vector<8x1410xf32>, vector<8x1410xf32>, vector<8x1410xf32>, vector<8x1410xf32>, vector<8x1410xf32>, vector<8x1410xf32>, vector<8x1410xf32> -> vector<72x1410xf32>
    %cst_58 = arith.constant dense<0.000000e+00> : vector<8x1410xf32>
    %166 = tpu.matmul %154, %165, %cst_58 {dimension_numbers = #tpu.dot_dimension_numbers<[1], [0], [0], [1], [0, 0, 1, 1], [], []>} : vector<8x72xf32>, vector<72x1410xf32>, vector<8x1410xf32> -> vector<8x1410xf32>
    %167 = vector.broadcast %155 : vector<8x1xf32> to vector<8x1410xf32>
    %168 = arith.addf %166, %167 : vector<8x1410xf32>
    %cst_59 = arith.constant 0.000000e+00 : f32
    %169 = vector.broadcast %cst_59 : f32 to vector<8x1410xf32>
    %170 = arith.cmpf oge, %168, %169 : vector<8x1410xf32>
    %cst_60 = arith.constant 2.000000e-01 : f32
    %171 = vector.broadcast %cst_60 : f32 to vector<8x1410xf32>
    %172 = arith.mulf %171, %168 : vector<8x1410xf32>
    %173 = arith.select %170, %168, %172 : vector<8x1410xi1>, vector<8x1410xf32>
    %c0_61 = arith.constant 0 : index
    %c0_62 = arith.constant 0 : index
    %174 = vector.load %arg8[%c0_61, %c0_62] : memref<3x8xf32, #tpu.memory_space<vmem>>, vector<3x8xf32>
    %cst_63 = arith.constant dense<0.000000e+00> : vector<3x1410xf32>
    %175 = tpu.matmul %174, %173, %cst_63 {dimension_numbers = #tpu.dot_dimension_numbers<[1], [0], [0], [1], [0, 0, 1, 1], [], []>} : vector<3x8xf32>, vector<8x1410xf32>, vector<3x1410xf32> -> vector<3x1410xf32>
    %c0_64 = arith.constant 0 : index
    %c0_65 = arith.constant 0 : index
    %176 = vector.load %arg9[%c0_64, %c0_65] : memref<3x1xf32, #tpu.memory_space<vmem>>, vector<3x1xf32>
    %177 = vector.broadcast %176 : vector<3x1xf32> to vector<3x1410xf32>
    %178 = arith.addf %175, %177 : vector<3x1410xf32>
    %179 = vector.extract_strided_slice %178 {offsets = [0, 0], sizes = [3, 324], strides = [1, 1]} : vector<3x1410xf32> to vector<3x324xf32>
    %180 = vector.extract_strided_slice %178 {offsets = [0, 362], sizes = [3, 324], strides = [1, 1]} : vector<3x1410xf32> to vector<3x324xf32>
    %181 = vector.extract_strided_slice %178 {offsets = [0, 724], sizes = [3, 324], strides = [1, 1]} : vector<3x1410xf32> to vector<3x324xf32>
    %182 = vector.extract_strided_slice %178 {offsets = [0, 1086], sizes = [3, 324], strides = [1, 1]} : vector<3x1410xf32> to vector<3x324xf32>
    %183 = tpu.concatenate %179, %180, %181, %182 in 1 : vector<3x324xf32>, vector<3x324xf32>, vector<3x324xf32>, vector<3x324xf32> -> vector<3x1296xf32>
    %c0_66 = arith.constant 0 : index
    %c0_67 = arith.constant 0 : index
    %c0_68 = arith.constant 0 : index
    %184 = vector.load %arg13[%c0_66, %c0_67, %c0_68] : memref<1x3x1296xf32, #tpu.memory_space<vmem>>, vector<1x3x1296xf32>
    %185 = vector.shape_cast %184 : vector<1x3x1296xf32> to vector<3x1296xf32>
    %186 = vector.shape_cast %183 : vector<3x1296xf32> to vector<1x3x1296xf32>
    tpu.vector_store %arg13[%c0_66, %c0_67, %c0_68], %186 {strides = array<i32>} : memref<1x3x1296xf32, #tpu.memory_space<vmem>>, vector<1x3x1296xf32>,
    return
  }
  func.func @transform_0(%arg0: i32) -> (i32, i32, i32, i32) {
    %c0_i32 = arith.constant 0 : i32
    %c0_i32_0 = arith.constant 0 : i32
    %c0_i32_1 = arith.constant 0 : i32
    %c0_i32_2 = arith.constant 0 : i32
    return %arg0, %c0_i32, %c0_i32_0, %c0_i32_1 : i32, i32, i32, i32
  }
  func.func @transform_1(%arg0: i32) -> (i32, i32, i32) {
    %c0_i32 = arith.constant 0 : i32
    %c0_i32_0 = arith.constant 0 : i32
    %c0_i32_1 = arith.constant 0 : i32
    return %arg0, %c0_i32, %c0_i32_0 : i32, i32, i32
  }
  func.func @transform_2(%arg0: i32) -> (i32, i32) {
    %c0_i32 = arith.constant 0 : i32
    %c0_i32_0 = arith.constant 0 : i32
    %c0_i32_1 = arith.constant 0 : i32
    return %c0_i32, %c0_i32_0 : i32, i32
  }
  func.func @transform_3(%arg0: i32) -> (i32, i32) {
    %c0_i32 = arith.constant 0 : i32
    %c0_i32_0 = arith.constant 0 : i32
    %c0_i32_1 = arith.constant 0 : i32
    return %c0_i32, %c0_i32_0 : i32, i32
  }
  func.func @transform_4(%arg0: i32) -> (i32, i32) {
    %c0_i32 = arith.constant 0 : i32
    %c0_i32_0 = arith.constant 0 : i32
    %c0_i32_1 = arith.constant 0 : i32
    return %c0_i32, %c0_i32_0 : i32, i32
  }
  func.func @transform_5(%arg0: i32) -> (i32, i32) {
    %c0_i32 = arith.constant 0 : i32
    %c0_i32_0 = arith.constant 0 : i32
    %c0_i32_1 = arith.constant 0 : i32
    return %c0_i32, %c0_i32_0 : i32, i32
  }
  func.func @transform_6(%arg0: i32) -> (i32, i32) {
    %c0_i32 = arith.constant 0 : i32
    %c0_i32_0 = arith.constant 0 : i32
    %c0_i32_1 = arith.constant 0 : i32
    return %c0_i32, %c0_i32_0 : i32, i32
  }
  func.func @transform_7(%arg0: i32) -> (i32, i32) {
    %c0_i32 = arith.constant 0 : i32
    %c0_i32_0 = arith.constant 0 : i32
    %c0_i32_1 = arith.constant 0 : i32
    return %c0_i32, %c0_i32_0 : i32, i32
  }
  func.func @transform_8(%arg0: i32) -> (i32, i32) {
    %c0_i32 = arith.constant 0 : i32
    %c0_i32_0 = arith.constant 0 : i32
    %c0_i32_1 = arith.constant 0 : i32
    return %c0_i32, %c0_i32_0 : i32, i32
  }
  func.func @transform_9(%arg0: i32) -> (i32, i32) {
    %c0_i32 = arith.constant 0 : i32
    %c0_i32_0 = arith.constant 0 : i32
    %c0_i32_1 = arith.constant 0 : i32
    return %c0_i32, %c0_i32_0 : i32, i32
  }
  func.func @transform_10(%arg0: i32) -> (i32, i32) {
    %c0_i32 = arith.constant 0 : i32
    %c0_i32_0 = arith.constant 0 : i32
    %c0_i32_1 = arith.constant 0 : i32
    return %c0_i32, %c0_i32_0 : i32, i32
  }
  func.func @transform_11(%arg0: i32) -> (i32, i32) {
    %c0_i32 = arith.constant 0 : i32
    %c0_i32_0 = arith.constant 0 : i32
    %c0_i32_1 = arith.constant 0 : i32
    return %c0_i32, %c0_i32_0 : i32, i32
  }
  func.func @transform_12(%arg0: i32) -> (i32, i32, i32) {
    %c0_i32 = arith.constant 0 : i32
    %c0_i32_0 = arith.constant 0 : i32
    %c0_i32_1 = arith.constant 0 : i32
    return %arg0, %c0_i32, %c0_i32_0 : i32, i32, i32
  }
}

</mosaic_0001>

<bundles_post_ra>
// kernel: keyp_to_images_decoder_forward.2
= control target key start
LH: loop header
LB: loop body
LE: loop exit
PB: predicated region body
PF: predicated region fallthrough
CT: control target
= control target key end

     0   :  { %s2678_s21 = smov 0   ;;  %s3100_s0 = inlined_call_operand.vmem [shape: f32[2,8,438], index: 0, kind: input, shape index: {}]   ;;  %s3101_s1 = inlined_call_operand.vmem [shape: f32[2,4,3], index: 1, kind: input, shape index: {}]   ;;  %s3102_s2 = inlined_call_operand.vmem [shape: f32[8,72], index: 2, kind: input, shape index: {}]   ;;  %s3103_s3 = inlined_call_operand.vmem [shape: f32[8,1], index: 3, kind: input, shape index: {}]   ;;  %s3104_s4 = inlined_call_operand.vmem [shape: f32[8,72], index: 4, kind: input, shape index: {}]   ;;  %s3105_s5 = inlined_call_operand.vmem [shape: f32[8,1], index: 5, kind: input, shape index: {}]   ;;  %s3106_s6 = inlined_call_operand.vmem [shape: f32[16,72], index: 6, kind: input, shape index: {}]   ;;  %s3107_s7 = inlined_call_operand.vmem [shape: f32[16,1], index: 7, kind: input, shape index: {}]   ;;  %s3108_s8 = inlined_call_operand.vmem [shape: f32[16,144], index: 8, kind: input, shape index: {}]   ;;  %s3109_s9 = inlined_call_operand.vmem [shape: f32[16,1], index: 9, kind: input, shape index: {}]   ;;  %s3110_s10 = inlined_call_operand.vmem [shape: f32[16,22], index: 10, kind: input, shape index: {}]   ;;  %s3111_s11 = inlined_call_operand.vmem [shape: f32[16,1], index: 11, kind: input, shape index: {}]   ;;  %s3112_s12 = inlined_call_operand.vmem [shape: f32[324,122], index: 12, kind: input, shape index: {}]   ;;  %s3113_s13 = inlined_call_operand.vmem [shape: f32[1,400], index: 13, kind: input, shape index: {}]   ;;  %s3114_s14 = inlined_call_operand.vmem [shape: f32[1,362], index: 14, kind: input, shape index: {}]   ;;  %s3115_s15 = inlined_call_operand.vmem [shape: f32[2,128], index: 15, kind: input, shape index: {}]   ;;  %s3116_s16 = inlined_call_operand.vmem [shape: f32[2,16,128], index: 16, kind: output, shape index: {}]  }
   0x1   :  { %3117 = sst [smem:[#allocation2_spill]] %s3100_s0 }
   0x2 LB: > { %s1993_s22 = sadd.s32 4294967295, %s2572_s21   ;;  %p1997_p0 = scmp.ge.s32.totalorder %s2572_s21, 1  ;;  %s2572_s21 = sphi %s2678_s21, %s26_s21  }
   0x3   : > { %p471_p1 = scmp.lt.s32.totalorder %s2572_s21, 3 }
   0x5   : > { %p472_p2 = pnand %p1997_p0, %p471_p1 }
   0x6   : > { %p525_p3 = scmp.lt.s32.totalorder (!%p472_p2), %s1993_s22, 1  ;;  %s3118_s26 = sld [smem:[#allocation2_spill]] (!%p472_p2)  ;;  %v2581_v6 = vmov (!%p472_p2), 0.0   ;;  %v2582_v7 = vmov (!%p472_p2), 0   ;;  %v545_v8 = vld [vmem:[%s3103_s3] sm:$0xff] (!%p472_p2)  ;;  %vm558_vm0 = vcmask (!%p472_p2), 1039360  }
   0x7   : > { %475 = sbr.rel (%p472_p2) target bundleno = 1961 (0x7a9), region = 84  ;;  %s2574_s28 = smov (!%p472_p2), 126   ;;  %751 = vmatprep.mubr.f32.mxu0 (!%p472_p2), %v2581_v6  ;;  %822 = vmatprep.mubr.f32.mxu1 (!%p472_p2), %v2581_v6  ;;  %vm574_vm1 = vcmask (!%p472_p2), 1031168   ;;  %vm590_vm2 = vcmask (!%p472_p2), 900096   ;;  %vm606_vm3 = vcmask (!%p472_p2), 891904   ;;  %vm622_vm4 = vcmask (!%p472_p2), 883712  }
   0x8   : > { %s2575_s29 = smov (!%p472_p2), 127   ;;  %s2576_s30 = smov (!%p472_p2), 110   ;;  %2438 = vset.pattern.permute.xlu0 (!%p472_p2), %v2582_v7  ;;  %2519 = vset.pattern.permute.xlu1 (!%p472_p2), %v2582_v7  ;;  %vm638_vm5 = vcmask (!%p472_p2), 752640   ;;  %vm654_vm6 = vcmask (!%p472_p2), 744448   ;;  %vm670_vm7 = vcmask (!%p472_p2), 736256   ;;  %vm683_vm8 = vcmask (!%p472_p2), 588800  }
   0x9   : > { %s2577_s0 = smov (!%p472_p2), 108   ;;  %s2578_s17 = smov (!%p472_p2), 109   ;;  %vm2585_vm13 = vmmov (!%p472_p2), 0  }
   0xa   : > { %s2579_s18 = smov (!%p472_p2), 91   ;;  %s2580_s19 = smov (!%p472_p2), 92  }
   0xb   : > { %s2583_s20 = smov (!%p472_p2), 90   ;;  %s2587_s25 = smov (!%p472_p2), 117  }
   0xe   : > { %s3120_s22 = smov (!%p525_p3, %s1993_s22), 1 }
   0xf   : > { %s2021_s23 = sshll.u32 %s3120_s22, 5 }
  0x10   : > { %s529_s27 = scalar_lea.vmem %s3118_s26, %s2021_s23  ;;  %s2588_s26 = smov 118  }
  0x11   : > { %v541_v0 = vld [vmem:[%s529_s27 + $0x8] sm:$0xff]  ;;  %v2692_v1 = vld [vmem:[%s529_s27 + $0x10] sm:$0xff]  ;;  %v2694_v2 = vld [vmem:[%s529_s27] sm:$0xff]  ;;  %s2022_s23 = sshll.u32 %s3120_s22, 4 }
  0x12   : > { %v2378_v3 = vpack.i.bf16 %v2692_v1, %v541_v0  ;;  %v543_v4 = vld [vmem:[%s529_s27 + $0x18] sm:$0xff] }
  0x13   : > { %v2373_v5 = vpack.i.bf16 %v543_v4, %v2694_v2 }
  0x14   : > { %2379 = vrot.lane.b32.xlu1 %v2378_v3, %s2574_s28  ;;  %2369 = vrot.lane.b32.xlu0 %v2378_v3, %s2575_s29 }
  0x18   : > { %2384 = vrot.lane.b32.xlu1 %v2378_v3, %s2576_s30  ;;  %2374 = vrot.lane.b32.xlu0 %v2373_v5, %s2575_s29 }
  0x1c   : > { %2394 = vrot.lane.b32.xlu1 %v2373_v5, %s2576_s30  ;;  %2389 = vrot.lane.b32.xlu0 %v2373_v5, %s2574_s28 }
  0x20   : > { %2404 = vrot.lane.b32.xlu1 %v2378_v3, %s2577_s0  ;;  %2399 = vrot.lane.b32.xlu0 %v2378_v3, %s2578_s17 }
  0x24   : > { %2414 = vrot.lane.b32.xlu1 %v2373_v5, %s2577_s0  ;;  %2409 = vrot.lane.b32.xlu0 %v2373_v5, %s2578_s17 }
  0x28   : > { %2424 = vrot.lane.b32.xlu1 %v2378_v3, %s2579_s18  ;;  %2419 = vrot.lane.b32.xlu0 %v2378_v3, %s2580_s19 }
  0x2c   : > { %2434 = vrot.lane.b32.xlu1 %v2373_v5, %s2579_s18  ;;  %2429 = vrot.lane.b32.xlu0 %v2373_v5, %s2580_s19 }
  0x30   : > { %666 = vrot.lane.b32.xlu1 %v2692_v1, %s2583_s20  ;;  %664 = vrot.lane.b32.xlu0 %v541_v0, %s2583_s20 }
  0x34   : > { %668 = vrot.lane.b32.xlu1 %v543_v4, %s2583_s20  ;;  %662 = vrot.lane.b32.xlu0 %v2694_v2, %s2583_s20 }
  0x38   : > { %680 = vperm.xlu0 %2438, %v545_v8  }
  0x86   : > { %v2380_v9 = vpop.permute.xlu1 %2379  ;;  %v2370_v10 = vpop.permute.xlu0 %2369 }
  0x87   : > { %v2372_v11 = vunpack.i.h.bf16 %v2370_v10  ;;  %v2371_v12 = vunpack.i.l.bf16 %v2370_v10  ;;  %v2382_v13 = vunpack.i.h.bf16 %v2380_v9  ;;  %v2381_v14 = vunpack.i.l.bf16 %v2380_v9 }
  0x89   : > { %v560_v15 = vsel %vm558_vm0, %v2371_v12, %v2372_v11  ;;  %v576_v23 = vsel %vm574_vm1, %v2381_v14, %v2382_v13 }
  0x8a   : > { %v2385_v16 = vpop.permute.xlu1 %2384  ;;  %v2375_v17 = vpop.permute.xlu0 %2374  ;;  %v2170_v18 = vpack.c.bf16 %v560_v15, %v541_v0 }
  0x8b   : > { %v2387_v19 = vunpack.i.h.bf16 %v2385_v16  ;;  %v2386_v20 = vunpack.i.l.bf16 %v2385_v16  ;;  %v2377_v21 = vunpack.i.h.bf16 %v2375_v17  ;;  %v2376_v22 = vunpack.i.l.bf16 %v2375_v17 }
  0x8c   : > { %2171 = vmatprep.subr.bf16.mxu0 %v2170_v18 }
  0x8d   : > { %v2186_v24 = vpack.c.bf16 %v2377_v21, %v543_v4  ;;  %v559_v25 = vsel %vm558_vm0, %v2376_v22, %v2371_v12  ;;  %v561_v26 = vsel %vm558_vm0, %v2372_v11, %v2377_v21  ;;  %v592_v27 = vsel %vm590_vm2, %v2386_v20, %v2387_v19 }
  0x8e   : > { %v2395_v28 = vpop.permute.xlu1 %2394  ;;  %v2390_v29 = vpop.permute.xlu0 %2389  ;;  %v2172_v30 = vpack.c.bf16 %v559_v25, %v2694_v2  ;;  %v2188_v31 = vpack.c.bf16 %v561_v26, %v2692_v1  ;;  %v2174_v32 = vpack.c.bf16 %v592_v27, %v576_v23 }
  0x8f   : > { %v2397_v33 = vunpack.i.h.bf16 %v2395_v28  ;;  %v2396_v34 = vunpack.i.l.bf16 %v2395_v28  ;;  %v2392_v35 = vunpack.i.h.bf16 %v2390_v29  ;;  %v2391_v36 = vunpack.i.l.bf16 %v2390_v29  ;;  %2187 = vmatprep.subr.bf16.mxu1 %v2186_v24 }
  0x90   : > { %2173 = vmatpush1.bf16.msra.mxu0 %v2172_v30  ;;  %2189 = vmatpush1.bf16.msra.mxu1 %v2188_v31  ;;  %v544_v31 = vld [vmem:[%s3102_s2] sm:$0xff] }
  0x91   : > { %v2190_v37 = vpack.c.bf16 %v2397_v33, %v2392_v35  ;;  %2175 = vmatprep.subr.bf16.mxu0 %v2174_v32  ;;  %v575_v38 = vsel %vm574_vm1, %v2391_v36, %v2381_v14  ;;  %v591_v39 = vsel %vm590_vm2, %v2396_v34, %v2386_v20  ;;  %v577_v40 = vsel %vm574_vm1, %v2382_v13, %v2392_v35 }
  0x92   : > { %v2405_v41 = vpop.permute.xlu1 %2404  ;;  %v2400_v42 = vpop.permute.xlu0 %2399  ;;  %v2176_v43 = vpack.c.bf16 %v591_v39, %v575_v38  ;;  %v593_v44 = vsel %vm590_vm2, %v2387_v19, %v2397_v33  ;;  %v843_v34 = vlaneseq  ;;  %v841_v38 = vld [vmem:[%s3113_s13] sm:$0xf] }
  0x93   : > { %v2407_v45 = vunpack.i.h.bf16 %v2405_v41  ;;  %v2406_v46 = vunpack.i.l.bf16 %v2405_v41  ;;  %v2402_v47 = vunpack.i.h.bf16 %v2400_v42  ;;  %v2401_v48 = vunpack.i.l.bf16 %v2400_v42  ;;  %2191 = vmatprep.subr.bf16.mxu1 %v2190_v37 }
  0x94   : > { %2177 = vmatpush1.bf16.msra.mxu0 %v2176_v43  ;;  %v2192_v49 = vpack.c.bf16 %v593_v44, %v577_v40  ;;  %v2757_v35 = vshrl.u32 %v843_v34, 7 }
  0x95   : > { %v608_v50 = vsel %vm606_vm3, %v2401_v48, %v2402_v47  ;;  %v624_v51 = vsel %vm622_vm4, %v2406_v46, %v2407_v45 }
  0x96   : > { %2193 = vmatpush1.bf16.msra.mxu1 %v2192_v49  ;;  %v2415_v52 = vpop.permute.xlu1 %2414  ;;  %v2410_v53 = vpop.permute.xlu0 %2409  ;;  %v2178_v54 = vpack.c.bf16 %v624_v51, %v608_v50  ;;  %v2760_v37 = vsub.s32 0, %v2757_v35 }
  0x97   : > { %v2417_v55 = vunpack.i.h.bf16 %v2415_v52  ;;  %v2416_v56 = vunpack.i.l.bf16 %v2415_v52  ;;  %v2412_v57 = vunpack.i.h.bf16 %v2410_v53  ;;  %v2411_v58 = vunpack.i.l.bf16 %v2410_v53 }
  0x98   : > { %2179 = vmatprep.subr.bf16.mxu0 %v2178_v54  ;;  %v846_v43 = vrot.slane %v841_v38, %v2760_v37  ;;  %v853_v53 = vsub.s32 2, %v2757_v35  ;;  %v2771_v54 = vsub.s32 1, %v2757_v35 }
  0x99   : > { %v2194_v59 = vpack.c.bf16 %v2417_v55, %v2412_v57  ;;  %v607_v60 = vsel %vm606_vm3, %v2411_v58, %v2401_v48  ;;  %v623_v61 = vsel %vm622_vm4, %v2416_v56, %v2406_v46  ;;  %v609_v62 = vsel %vm606_vm3, %v2402_v47, %v2412_v57 }
  0x9a   : > { %v2425_v63 = vpop.permute.xlu1 %2424  ;;  %v2420_v0 = vpop.permute.xlu0 %2419  ;;  %v2180_v1 = vpack.c.bf16 %v623_v61, %v607_v60  ;;  %v625_v2 = vsel %vm622_vm4, %v2407_v45, %v2417_v55  ;;  %v857_v46 = vsub.s32 3, %v2757_v35  ;;  %v850_v60 = vrot.slane %v841_v38, %v2771_v54  ;;  %v2866_v35 = vld [vmem:[%s3106_s6] sm:$0xff] }
  0x9b   : > { %v2427_v3 = vunpack.i.h.bf16 %v2425_v63  ;;  %v2426_v4 = vunpack.i.l.bf16 %v2425_v63  ;;  %v2422_v5 = vunpack.i.h.bf16 %v2420_v0  ;;  %v2421_v8 = vunpack.i.l.bf16 %v2420_v0  ;;  %2195 = vmatprep.subr.bf16.mxu1 %v2194_v59 }
  0x9c   : > { %2181 = vmatpush1.bf16.msra.mxu0 %v2180_v1  ;;  %v2196_v9 = vpack.c.bf16 %v625_v2, %v609_v62  ;;  %v858_v55 = vrot.slane %v841_v38, %v857_v46  ;;  %v854_v59 = vrot.slane %v841_v38, %v853_v53 }
  0x9d   : > { %v640_v10 = vsel %vm638_vm5, %v2421_v8, %v2422_v5  ;;  %v656_v11 = vsel %vm654_vm6, %v2426_v4, %v2427_v3 }
  0x9e   : > { %2197 = vmatpush1.bf16.msra.mxu1 %v2196_v9  ;;  %v2435_v12 = vpop.permute.xlu1 %2434  ;;  %v2430_v13 = vpop.permute.xlu0 %2429  ;;  %v2182_v14 = vpack.c.bf16 %v656_v11, %v640_v10 }
  0x9f   : > { %v2437_v15 = vunpack.i.h.bf16 %v2435_v12  ;;  %v2436_v16 = vunpack.i.l.bf16 %v2435_v12  ;;  %v2432_v17 = vunpack.i.h.bf16 %v2430_v13  ;;  %v2431_v18 = vunpack.i.l.bf16 %v2430_v13 }
  0xa0   : > { %2183 = vmatprep.subr.bf16.mxu0 %v2182_v14 }
  0xa1   : > { %v2198_v19 = vpack.c.bf16 %v2437_v15, %v2432_v17  ;;  %v639_v20 = vsel %vm638_vm5, %v2431_v18, %v2421_v8  ;;  %v655_v21 = vsel %vm654_vm6, %v2436_v16, %v2426_v4  ;;  %v641_v22 = vsel %vm638_vm5, %v2422_v5, %v2432_v17  ;;  %v868_v5 = vld [vmem:[%s3105_s5] sm:$0xff] }
  0xa2   : > { %v667_v23 = vpop.permute.xlu1 %666  ;;  %v665_v24 = vpop.permute.xlu0 %664  ;;  %v2184_v25 = vpack.c.bf16 %v655_v21, %v639_v20  ;;  %v657_v26 = vsel %vm654_vm6, %v2427_v3, %v2437_v15  ;;  %v2584_v3 = vmov 0.0|0.0  }
  0xa3   : > { %2199 = vmatprep.subr.bf16.mxu1 %v2198_v19  ;;  %v2200_v27 = vpack.c.bf16 %v657_v26, %v641_v22  ;;  %v672_v28 = vsel %vm670_vm7, %v665_v24, %v667_v23 }
  0xa4   : > { %2185 = vmatpush1.bf16.msra.mxu0 %v2184_v25 }
  0xa5   : > { %2201 = vmatpush1.bf16.msra.mxu1 %v2200_v27  ;;  %703 = vmatprep.subr.mxu0 %v672_v28 }
  0xa6   : > { %v669_v29 = vpop.permute.xlu1 %668  ;;  %v663_v30 = vpop.permute.xlu0 %662 }
  0xa7   : > { %774 = vmatprep.subr.mxu1 %v669_v29  ;;  %v671_v32 = vsel %vm670_vm7, %v663_v30, %v665_v24  ;;  %v673_v33 = vsel %vm670_vm7, %v667_v23, %v669_v29 }
  0xa8   : > { %704 = vmatpush1.msra.mxu0 %v671_v32 }
  0xa9   : > { %775 = vmatpush1.msra.mxu1 %v673_v33  ;;  %2003 = vmatmul.mubr.msk.f32.vlgmr.msra.gmra.mrb[0].mxu0 %vm683_vm8, %v544_v31 }
  0xaa   : > { %2004 = vmatmul.mubr.msk.f32.vlgmr.msra.gmra.mrb[0].mxu1 %vm683_vm8, %v544_v31  ;;  %1042 = vmatprep.mubr.f32.mxu0 %v2581_v6 }
  0xab   : > { %2218 = vmatprep.subr.bf16.mxu1 %v2584_v3  ;;  %2116 = vmatprep.mubr.msk.f32.mxu1 %vm2585_vm13, %v2581_v6  ;;  %vm1842_vm13 = vcmask 1045504  }
  0xb7   : > { %v681_v36 = vpop.permute.xlu0 %680 }
 0x17c   : > { %v753_v39 = vpop.f32.mrb[0].mxu0 }
 0x17d   : > { %v754_v40 = vadd.f32 %v753_v39, %v681_v36  ;;  %v824_v41 = vpop.f32.mrb[0].mxu1  ;;  %v755_v42 = vpop.f32.mrb[1].mxu0 }
 0x17e   : > { %v825_v44 = vadd.f32 %v824_v41, %v681_v36  ;;  %v826_v45 = vpop.f32.mrb[1].mxu1  ;;  %v756_v48 = vadd.f32 %v755_v42, %v681_v36 }
 0x17f   : > { %vm829_vm9 = vcmp.ge.f32.partialorder %v754_v40, 0.0  ;;  %v833_v47 = vmul.f32 0.2, %v754_v40  ;;  %v827_v49 = vadd.f32 %v826_v45, %v681_v36 }
 0x180   : > { %v835_v56 = vmul.f32 0.2, %v825_v44  ;;  %v834_v57 = vmul.f32 0.2, %v756_v48  ;;  %vm831_vm11 = vcmp.ge.f32.partialorder %v825_v44, 0.0  ;;  %vm830_vm12 = vcmp.ge.f32.partialorder %v756_v48, 0.0 }
 0x181   : > { %v837_v50 = vsel %vm829_vm9, %v754_v40, %v833_v47  ;;  %vm832_vm10 = vcmp.ge.f32.partialorder %v827_v49, 0.0  ;;  %v836_v51 = vmul.f32 0.2, %v827_v49 }
 0x182   : > { %v2767_v52 = vmul.f32 %v846_v43, %v837_v50  ;;  %v839_v62 = vsel %vm831_vm11, %v825_v44, %v835_v56  ;;  %v838_v63 = vsel %vm830_vm12, %v756_v48, %v834_v57 }
 0x183   : > { %v840_v58 = vsel %vm832_vm10, %v827_v49, %v836_v51  ;;  %v865_v0 = vmul.f32 %v854_v59, %v839_v62  ;;  %v864_v1 = vmul.f32 %v850_v60, %v838_v63  ;;  %vm1835_vm10 = vcmask 179200  }
 0x184   : > { %883 = vrot.lane.b32.xlu0 %v2767_v52, %s2574_s28  ;;  %872 = vrot.lane.b32.xlu1 %v2767_v52, %s2575_s29  ;;  %v866_v61 = vmul.f32 %v858_v55, %v840_v58 }
 0x185   : > { %v2454_v4 = vpack.i.bf16 %v865_v0, %v864_v1 }
 0x186   : > { %v2439_v2 = vpack.i.bf16 %v866_v61, %v2767_v52 }
 0x188   : > { %905 = vrot.lane.b32.xlu0 %v2767_v52, %s2578_s17  ;;  %894 = vrot.lane.b32.xlu1 %v2767_v52, %s2576_s30 }
 0x18c   : > { %2440 = vrot.lane.b32.xlu0 %v2439_v2, %s2580_s19  ;;  %916 = vrot.lane.b32.xlu1 %v2767_v52, %s2577_s0 }
 0x190   : > { %2455 = vrot.lane.b32.xlu0 %v2454_v4, %s2574_s28  ;;  %2445 = vrot.lane.b32.xlu1 %v2439_v2, %s2579_s18 }
 0x194   : > { %2465 = vrot.lane.b32.xlu0 %v2454_v4, %s2578_s17  ;;  %2450 = vrot.lane.b32.xlu1 %v2454_v4, %s2575_s29 }
 0x198   : > { %2475 = vrot.lane.b32.xlu0 %v2454_v4, %s2580_s19  ;;  %2460 = vrot.lane.b32.xlu1 %v2454_v4, %s2576_s30 }
 0x19c   : > { %958 = vrot.lane.b32.xlu0 %v864_v1, %s2583_s20  ;;  %2470 = vrot.lane.b32.xlu1 %v2454_v4, %s2577_s0 }
 0x1a0   : > { %956 = vrot.lane.b32.xlu0 %v2767_v52, %s2583_s20  ;;  %2480 = vrot.lane.b32.xlu1 %v2454_v4, %s2579_s18 }
 0x1a4   : > { %972 = vperm.xlu0 %2438, %v868_v5   ;;  %960 = vrot.lane.b32.xlu1 %v865_v0, %s2583_s20 }
 0x1a8   : > { %962 = vrot.lane.b32.xlu1 %v866_v61, %s2583_s20 }
 0x1f6   : > { %v884_v8 = vpop.permute.xlu0 %883  ;;  %v873_v9 = vpop.permute.xlu1 %872 }
 0x1fa   : > { %v906_v10 = vpop.permute.xlu0 %905  ;;  %v895_v11 = vpop.permute.xlu1 %894 }
 0x1fe   : > { %v2441_v12 = vpop.permute.xlu0 %2440  ;;  %v917_v13 = vpop.permute.xlu1 %916 }
 0x1ff   : > { %v2442_v55 = vunpack.i.l.bf16 %v2441_v12 }
 0x202   : > { %v2456_v14 = vpop.permute.xlu0 %2455  ;;  %v2446_v15 = vpop.permute.xlu1 %2445 }
 0x203   : > { %v2457_v20 = vunpack.i.l.bf16 %v2456_v14  ;;  %v2458_v24 = vunpack.i.h.bf16 %v2456_v14  ;;  %v2448_v59 = vunpack.i.h.bf16 %v2446_v15  ;;  %v2447_v60 = vunpack.i.l.bf16 %v2446_v15 }
 0x205   : > { %v889_v31 = vsel %vm574_vm1, %v884_v8, %v2457_v20  ;;  %v890_v40 = vsel %vm574_vm1, %v2457_v20, %v2458_v24  ;;  %v1128_v20 = vld [vmem:[%s3114_s14] sm:$0x7] }
 0x206   : > { %v2451_v16 = vpop.permute.xlu1 %2450  ;;  %v2466_v17 = vpop.permute.xlu0 %2465 }
 0x207   : > { %v2453_v18 = vunpack.i.h.bf16 %v2451_v16  ;;  %v2452_v19 = vunpack.i.l.bf16 %v2451_v16  ;;  %v2467_v30 = vunpack.i.l.bf16 %v2466_v17  ;;  %v2468_v32 = vunpack.i.h.bf16 %v2466_v17  ;;  %v867_v16 = vld [vmem:[%s3104_s4] sm:$0xff] }
 0x209   : > { %v2219_v21 = vpack.c.bf16 %v2453_v18, %v865_v0  ;;  %v878_v22 = vsel %vm558_vm0, %v873_v9, %v2452_v19  ;;  %v879_v23 = vsel %vm558_vm0, %v2452_v19, %v2453_v18  ;;  %v911_v45 = vsel %vm606_vm3, %v906_v10, %v2467_v30 }
 0x20a   : > { %v2204_v25 = vpack.c.bf16 %v878_v22, %v2767_v52  ;;  %v2461_v26 = vpop.permute.xlu1 %2460  ;;  %v2202_v27 = vpack.c.bf16 %v879_v23, %v864_v1  ;;  %v2476_v33 = vpop.permute.xlu0 %2475  ;;  %v912_v50 = vsel %vm606_vm3, %v2467_v30, %v2468_v32  ;;  %v2443_v52 = vunpack.i.h.bf16 %v2441_v12 }
 0x20b   : > { %v2463_v28 = vunpack.i.h.bf16 %v2461_v26  ;;  %v2462_v29 = vunpack.i.l.bf16 %v2461_v26  ;;  %2220 = vmatpush3.bf16.msra.mxu1 %v2219_v21  ;;  %v2478_v46 = vunpack.i.h.bf16 %v2476_v33  ;;  %v2477_v47 = vunpack.i.l.bf16 %v2476_v33 }
 0x20c   : > { %2203 = vmatprep.subr.bf16.mxu0 %v2202_v27  ;;  %2221 = vmatprep.subr.bf16.mxu1 %v2584_v3  ;;  %v1133_v26 = vrot.slane %v1128_v20, %v2760_v37 }
 0x20d   : > { %v2222_v34 = vpack.c.bf16 %v2463_v28, %v2458_v24  ;;  %v900_v36 = vsel %vm590_vm2, %v895_v11, %v2462_v29  ;;  %2205 = vmatpush1.bf16.msra.mxu0 %v2204_v25  ;;  %v901_v41 = vsel %vm590_vm2, %v2462_v29, %v2463_v28  ;;  %v936_v63 = vsel %vm638_vm5, %v2442_v55, %v2477_v47 }
 0x20e   : > { %v2208_v38 = vpack.c.bf16 %v900_v36, %v889_v31  ;;  %v2471_v39 = vpop.permute.xlu1 %2470  ;;  %v2206_v44 = vpack.c.bf16 %v901_v41, %v890_v40  ;;  %v938_v0 = vsel %vm638_vm5, %v2478_v46, %v2443_v52  ;;  %v959_v1 = vpop.permute.xlu0 %958  ;;  %v937_v5 = vsel %vm638_vm5, %v2477_v47, %v2478_v46 }
 0x20f   : > { %v2473_v42 = vunpack.i.h.bf16 %v2471_v39  ;;  %v2472_v43 = vunpack.i.l.bf16 %v2471_v39  ;;  %2223 = vmatpush3.bf16.msra.mxu1 %v2222_v34  ;;  %v1137_v34 = vrot.slane %v1128_v20, %v2771_v54 }
 0x210   : > { %2224 = vmatprep.subr.bf16.mxu1 %v2584_v3  ;;  %2207 = vmatprep.subr.bf16.mxu0 %v2206_v44 }
 0x211   : > { %v2225_v48 = vpack.c.bf16 %v2473_v42, %v2468_v32  ;;  %v922_v49 = vsel %vm622_vm4, %v917_v13, %v2472_v43  ;;  %v923_v51 = vsel %vm622_vm4, %v2472_v43, %v2473_v42  ;;  %2209 = vmatpush1.bf16.msra.mxu0 %v2208_v38  ;;  %v1141_v38 = vrot.slane %v1128_v20, %v853_v53  ;;  %v1150_v53 = vld [vmem:[%s3107_s7] sm:$0xff]  ;;  %v1151_v43 = vld [vmem:[%s3107_s7 + $0x8] sm:$0xff] }
 0x212   : > { %v2212_v56 = vpack.c.bf16 %v922_v49, %v911_v45  ;;  %v2481_v57 = vpop.permute.xlu1 %2480  ;;  %v2210_v58 = vpack.c.bf16 %v923_v51, %v912_v50  ;;  %v957_v13 = vpop.permute.xlu0 %956 }
 0x213   : > { %v2483_v61 = vunpack.i.h.bf16 %v2481_v57  ;;  %v2482_v62 = vunpack.i.l.bf16 %v2481_v57  ;;  %2226 = vmatpush3.bf16.msra.mxu1 %v2225_v48  ;;  %v964_v18 = vsel %vm670_vm7, %v957_v13, %v959_v1 }
 0x214   : > { %2211 = vmatprep.subr.bf16.mxu0 %v2210_v58  ;;  %2227 = vmatprep.subr.bf16.mxu1 %v2584_v3 }
 0x215   : > { %v950_v2 = vsel %vm654_vm6, %v2447_v60, %v2482_v62  ;;  %v952_v4 = vsel %vm654_vm6, %v2483_v61, %v2448_v59  ;;  %v951_v8 = vsel %vm654_vm6, %v2482_v62, %v2483_v61  ;;  %2213 = vmatpush1.bf16.msra.mxu0 %v2212_v56 }
 0x216   : > { %v2216_v9 = vpack.c.bf16 %v950_v2, %v936_v63  ;;  %v2228_v10 = vpack.c.bf16 %v952_v4, %v938_v0  ;;  %v961_v11 = vpop.permute.xlu1 %960  ;;  %v2214_v12 = vpack.c.bf16 %v951_v8, %v937_v5 }
 0x217   : > { %v965_v15 = vsel %vm670_vm7, %v959_v1, %v961_v11 }
 0x218   : > { %2215 = vmatprep.subr.bf16.mxu0 %v2214_v12  ;;  %2229 = vmatpush3.bf16.msra.mxu1 %v2228_v10 }
 0x219   : > { %2114 = vmatprep.subr.mxu1 %v2581_v6  ;;  %2217 = vmatpush1.bf16.msra.mxu0 %v2216_v9 }
 0x21a   : > { %v963_v14 = vpop.permute.xlu1 %962  ;;  %994 = vmatprep.subr.mxu0 %v965_v15 }
 0x21b   : > { %v966_v17 = vsel %vm670_vm7, %v961_v11, %v963_v14 }
 0x21c   : > { %2115 = vmatpush3.msra.mxu1 %v966_v17 }
 0x21d   : > { %2117 = vmatmul.mubr.msk.f32.vlgmr.msra.gmra.mrb[2].mxu1 %vm683_vm8, %v867_v16  ;;  %995 = vmatpush1.msra.mxu0 %v964_v18 }
 0x21e   : > { %2005 = vmatmul.mubr.msk.f32.vlgmr.msra.gmra.mrb[2].mxu0 %vm683_vm8, %v867_v16  ;;  %2137 = vmatprep.mubr.msk.f32.mxu1 %vm683_vm8, %v2866_v35 }
 0x21f   : > { %1323 = vmatprep.mubr.f32.mxu0 %v2581_v6 }
 0x223   : > { %v973_v22 = vpop.permute.xlu0 %972 }
 0x2f0   : > { %v1115_v19 = vpop.f32.mrb[2].mxu1 }
 0x2f1   : > { %v2118_v21 = vpop.f32.mrb[3].mxu1  ;;  %v1044_v23 = vpop.f32.mrb[2].mxu0  ;;  %v1116_v29 = vadd.f32 %v1115_v19, %v973_v22 }
 0x2f2   : > { %v1045_v24 = vadd.f32 %v1044_v23, %v973_v22  ;;  %v1046_v25 = vpop.f32.mrb[3].mxu0 }
 0x2f3   : > { %v1047_v28 = vadd.f32 %v1046_v25, %v973_v22  ;;  %v1124_v33 = vmul.f32 0.2, %v1116_v29  ;;  %vm1121_vm9 = vcmp.ge.f32.partialorder %v1116_v29, 0.0 }
 0x2f4   : > { %vm1119_vm14 = vcmp.ge.f32.partialorder %v1045_v24, 0.0  ;;  %v1122_v27 = vmul.f32 0.2, %v1045_v24 }
 0x2f5   : > { %v1123_v32 = vmul.f32 0.2, %v1047_v28  ;;  %vm1120_vm15 = vcmp.ge.f32.partialorder %v1047_v28, 0.0  ;;  %v1127_v39 = vsel %vm1121_vm9, %v1116_v29, %v1124_v33 }
 0x2f6   : > { %v1125_v30 = vsel %vm1119_vm14, %v1045_v24, %v1122_v27  ;;  %v1147_v41 = vmul.f32 %v1141_v38, %v1127_v39  ;;  %vm1921_vm14 = vcmask 818176  }
 0x2f7   : > { %v2840_v31 = vmul.f32 %v1133_v26, %v1125_v30  ;;  %v1126_v36 = vsel %vm1120_vm15, %v1047_v28, %v1123_v32 }
 0x2f8   : > { %v1146_v40 = vmul.f32 %v1137_v34, %v1126_v36 }
 0x2f9   : > { %1166 = vrot.lane.b32.xlu1 %v2840_v31, %s2574_s28  ;;  %1155 = vrot.lane.b32.xlu0 %v2840_v31, %s2575_s29 }
 0x2fa   : > { %v2484_v42 = vpack.i.bf16 %v1147_v41, %v1146_v40 }
 0x2fd   : > { %1188 = vrot.lane.b32.xlu1 %v2840_v31, %s2578_s17  ;;  %1177 = vrot.lane.b32.xlu0 %v2840_v31, %s2576_s30 }
 0x301   : > { %1210 = vrot.lane.b32.xlu1 %v2840_v31, %s2580_s19  ;;  %1199 = vrot.lane.b32.xlu0 %v2840_v31, %s2577_s0 }
 0x305   : > { %2485 = vrot.lane.b32.xlu1 %v2484_v42, %s2575_s29  ;;  %2495 = vrot.lane.b32.xlu0 %v2484_v42, %s2576_s30  ;;  %s2000_s30 = sshll.u32 %s3120_s22, 2 }
 0x309   : > { %2490 = vrot.lane.b32.xlu1 %v2484_v42, %s2574_s28  ;;  %2505 = vrot.lane.b32.xlu0 %v2484_v42, %s2577_s0 }
 0x30d   : > { %2500 = vrot.lane.b32.xlu1 %v2484_v42, %s2578_s17  ;;  %2515 = vrot.lane.b32.xlu0 %v2484_v42, %s2579_s18  ;;  %s2589_s17 = smov 116  }
 0x311   : > { %2510 = vrot.lane.b32.xlu1 %v2484_v42, %s2580_s19  ;;  %1221 = vrot.lane.b32.xlu0 %v2840_v31, %s2579_s18  ;;  %s533_s18 = scalar_lea.vmem %s3101_s1, %s2000_s30  ;;  %s2590_s19 = smov 106  }
 0x315   : > { %1234 = vrot.lane.b32.xlu1 %v1146_v40, %s2583_s20  ;;  %1236 = vrot.lane.b32.xlu0 %v1147_v41, %s2583_s20 }
 0x319   : > { %1232 = vrot.lane.b32.xlu1 %v2840_v31, %s2583_s20  ;;  %1245 = vperm.xlu0 %2438, %v1150_v53   ;;  %v1445_v53 = vld [vmem:[%s3112_s12 + $0x80] sm:$0xff] }
 0x31d   : > { %1250 = vperm.xlu1 %2519, %v1151_v43   ;;  %v1446_v43 = vld [vmem:[%s3112_s12 + $0x88] sm:$0xff] }
 0x36b   : > { %v1167_v44 = vpop.permute.xlu1 %1166  ;;  %v1156_v45 = vpop.permute.xlu0 %1155 }
 0x36f   : > { %v1189_v46 = vpop.permute.xlu1 %1188  ;;  %v1178_v47 = vpop.permute.xlu0 %1177 }
 0x373   : > { %v1211_v48 = vpop.permute.xlu1 %1210  ;;  %v1200_v49 = vpop.permute.xlu0 %1199 }
 0x377   : > { %v2486_v50 = vpop.permute.xlu1 %2485  ;;  %v2496_v51 = vpop.permute.xlu0 %2495 }
 0x378   : > { %v2488_v52 = vunpack.i.h.bf16 %v2486_v50  ;;  %v2487_v55 = vunpack.i.l.bf16 %v2486_v50  ;;  %v2498_v56 = vunpack.i.h.bf16 %v2496_v51  ;;  %v2497_v57 = vunpack.i.l.bf16 %v2496_v51  ;;  %v1149_v50 = vld [vmem:[%s3106_s6 + $0x8] sm:$0xff] }
 0x379   : > { %v2262_v51 = vpack.c.bf16 %v1446_v43, %v1445_v53 }
 0x37a   : > { %v2246_v58 = vpack.c.bf16 %v2488_v52, %v1147_v41  ;;  %v1161_v59 = vsel %vm558_vm0, %v1156_v45, %v2487_v55  ;;  %v1162_v60 = vsel %vm558_vm0, %v2487_v55, %v2488_v52  ;;  %v1183_v4 = vsel %vm590_vm2, %v1178_v47, %v2497_v57  ;;  %v1430_v45 = vld [vmem:[%s3112_s12 + $0x8] sm:$0xff]  ;;  %v1447_v47 = vld [vmem:[%s3112_s12 + $0x90] sm:$0xff] }
 0x37b   : > { %v2232_v61 = vpack.c.bf16 %v1161_v59, %v2840_v31  ;;  %v2491_v62 = vpop.permute.xlu1 %2490  ;;  %v2506_v63 = vpop.permute.xlu0 %2505  ;;  %v2230_v0 = vpack.c.bf16 %v1162_v60, %v1146_v40  ;;  %v1184_v8 = vsel %vm590_vm2, %v2497_v57, %v2498_v56  ;;  %v1431_v57 = vld [vmem:[%s3112_s12 + $0x10] sm:$0xff]  ;;  %v1449_v59 = vld [vmem:[%s3112_s12 + $0xa0] sm:$0xff]  ;;  %v1450_v60 = vld [vmem:[%s3112_s12 + $0xa8] sm:$0xff] }
 0x37c   : > { %v2493_v1 = vunpack.i.h.bf16 %v2491_v62  ;;  %v2492_v2 = vunpack.i.l.bf16 %v2491_v62  ;;  %2247 = vmatprep.subr.bf16.mxu1 %v2246_v58  ;;  %v2507_v5 = vunpack.i.l.bf16 %v2506_v63  ;;  %v2508_v11 = vunpack.i.h.bf16 %v2506_v63  ;;  %v1433_v63 = vld [vmem:[%s3112_s12 + $0x20] sm:$0xff] }
 0x37d   : > { %2231 = vmatprep.subr.bf16.mxu0 %v2230_v0  ;;  %2249 = vmatpush3.bf16.msra.mxu1 %v2246_v58  ;;  %v1432_v58 = vld [vmem:[%s3112_s12 + $0x18] sm:$0xff]  ;;  %v2270_v62 = vpack.c.bf16 %v1450_v60, %v1449_v59  ;;  %v1434_v0 = vld [vmem:[%s3112_s12 + $0x28] sm:$0xff]  ;;  %v1465_v60 = vld [vmem:[%s3112_s12 + $0x120] sm:$0xff] }
 0x37e   : > { %v1172_v9 = vsel %vm574_vm1, %v1167_v44, %v2492_v2  ;;  %v2250_v10 = vpack.c.bf16 %v2498_v56, %v2493_v1  ;;  %2233 = vmatpush1.bf16.msra.mxu0 %v2232_v61  ;;  %v1173_v12 = vsel %vm574_vm1, %v2492_v2, %v2493_v1  ;;  %v1205_v19 = vsel %vm622_vm4, %v1200_v49, %v2507_v5  ;;  %v1429_v44 = vld [vmem:[%s3112_s12] sm:$0xff] }
 0x37f   : > { %v2236_v13 = vpack.c.bf16 %v1183_v4, %v1172_v9  ;;  %v2501_v14 = vpop.permute.xlu1 %2500  ;;  %v2516_v15 = vpop.permute.xlu0 %2515  ;;  %v2234_v16 = vpack.c.bf16 %v1184_v8, %v1173_v12  ;;  %v1206_v25 = vsel %vm622_vm4, %v2507_v5, %v2508_v11  ;;  %v2264_v55 = vpack.c.bf16 %v1430_v45, %v1429_v44  ;;  %v1435_v4 = vld [vmem:[%s3112_s12 + $0x30] sm:$0xff]  ;;  %v1436_v5 = vld [vmem:[%s3112_s12 + $0x38] sm:$0xff]  ;;  %v1453_v8 = vld [vmem:[%s3112_s12 + $0xc0] sm:$0xff] }
 0x380   : > { %v2503_v17 = vunpack.i.h.bf16 %v2501_v14  ;;  %v2502_v18 = vunpack.i.l.bf16 %v2501_v14  ;;  %2251 = vmatprep.subr.bf16.mxu1 %v2250_v10  ;;  %v2518_v20 = vunpack.i.h.bf16 %v2516_v15  ;;  %v2517_v21 = vunpack.i.l.bf16 %v2516_v15  ;;  %v1454_v9 = vld [vmem:[%s3112_s12 + $0xc8] sm:$0xff]  ;;  %v1437_v12 = vld [vmem:[%s3112_s12 + $0x40] sm:$0xff]  ;;  %v1455_v14 = vld [vmem:[%s3112_s12 + $0xd0] sm:$0xff] }
 0x381   : > { %2235 = vmatprep.subr.bf16.mxu0 %v2234_v16  ;;  %2253 = vmatpush3.bf16.msra.mxu1 %v2250_v10  ;;  %v2268_v61 = vpack.c.bf16 %v1432_v58, %v1431_v57  ;;  %v2272_v1 = vpack.c.bf16 %v1434_v0, %v1433_v63  ;;  %v2276_v10 = vpack.c.bf16 %v1436_v5, %v1435_v4  ;;  %v1456_v15 = vld [vmem:[%s3112_s12 + $0xd8] sm:$0xff] }
 0x382   : > { %v1194_v22 = vsel %vm606_vm3, %v1189_v46, %v2502_v18  ;;  %v2254_v23 = vpack.c.bf16 %v2508_v11, %v2503_v17  ;;  %2237 = vmatpush1.bf16.msra.mxu0 %v2236_v13  ;;  %v1195_v24 = vsel %vm606_vm3, %v2502_v18, %v2503_v17  ;;  %v1228_v32 = vsel %vm654_vm6, %v2517_v21, %v2518_v20  ;;  %v1438_v13 = vld [vmem:[%s3112_s12 + $0x48] sm:$0xff]  ;;  %v1439_v18 = vld [vmem:[%s3112_s12 + $0x50] sm:$0xff] }
 0x383   : > { %v2240_v26 = vpack.c.bf16 %v1205_v19, %v1194_v22  ;;  %v2511_v27 = vpop.permute.xlu1 %2510  ;;  %v1222_v28 = vpop.permute.xlu0 %1221  ;;  %v2238_v29 = vpack.c.bf16 %v1206_v25, %v1195_v24  ;;  %v2278_v11 = vpack.c.bf16 %v1454_v9, %v1453_v8  ;;  %v2280_v16 = vpack.c.bf16 %v1438_v13, %v1437_v12  ;;  %v1440_v19 = vld [vmem:[%s3112_s12 + $0x58] sm:$0xff]  ;;  %v1458_v22 = vld [vmem:[%s3112_s12 + $0xe8] sm:$0xff]  ;;  %v1441_v24 = vld [vmem:[%s3112_s12 + $0x60] sm:$0xff] }
 0x384   : > { %v2513_v30 = vunpack.i.h.bf16 %v2511_v27  ;;  %v2512_v31 = vunpack.i.l.bf16 %v2511_v27  ;;  %2255 = vmatprep.subr.bf16.mxu1 %v2254_v23  ;;  %v1227_v36 = vsel %vm654_vm6, %v1222_v28, %v2517_v21  ;;  %v2282_v17 = vpack.c.bf16 %v1456_v15, %v1455_v14  ;;  %v1457_v21 = vld [vmem:[%s3112_s12 + $0xe0] sm:$0xff]  ;;  %v1442_v25 = vld [vmem:[%s3112_s12 + $0x68] sm:$0xff]  ;;  %v1459_v27 = vld [vmem:[%s3112_s12 + $0xf0] sm:$0xff] }
 0x385   : > { %2239 = vmatprep.subr.bf16.mxu0 %v2238_v29  ;;  %2257 = vmatpush3.bf16.msra.mxu1 %v2254_v23  ;;  %v2286_v23 = vpack.c.bf16 %v1458_v22, %v1457_v21  ;;  %v1460_v28 = vld [vmem:[%s3112_s12 + $0xf8] sm:$0xff]  ;;  %v1469_v9 = vld [vmem:[%s3112_s12 + $0x140] sm:$0xf]  ;;  %vm1477_vm6 = vcmask 1043456   ;;  %v2586_v12 = vmov 1  }
 0x386   : > { %v2258_v33 = vpack.c.bf16 %v2518_v20, %v2513_v30  ;;  %v1216_v34 = vsel %vm638_vm5, %v1211_v48, %v2512_v31  ;;  %2241 = vmatpush1.bf16.msra.mxu0 %v2240_v26  ;;  %v1217_v38 = vsel %vm638_vm5, %v2512_v31, %v2513_v30  ;;  %v1448_v48 = vld [vmem:[%s3112_s12 + $0x98] sm:$0xff]  ;;  %v2284_v20 = vpack.c.bf16 %v1440_v19, %v1439_v18  ;;  %v1443_v30 = vld [vmem:[%s3112_s12 + $0x70] sm:$0xff] }
 0x387   : > { %v2244_v39 = vpack.c.bf16 %v1227_v36, %v1216_v34  ;;  %v1235_v40 = vpop.permute.xlu1 %1234  ;;  %v1237_v41 = vpop.permute.xlu0 %1236  ;;  %v2242_v42 = vpack.c.bf16 %v1228_v32, %v1217_v38  ;;  %v2266_v56 = vpack.c.bf16 %v1448_v48, %v1447_v47  ;;  %v2288_v26 = vpack.c.bf16 %v1442_v25, %v1441_v24  ;;  %v1444_v31 = vld [vmem:[%s3112_s12 + $0x78] sm:$0xff]  ;;  %v1462_v34 = vld [vmem:[%s3112_s12 + $0x108] sm:$0xff]  ;;  %2560 = vset.pattern.permute.xlu1 %v2586_v12  ;;  %v1785_v25 = vld [vmem:[%s533_s18] sm:$0xf] }
 0x388   : > { %2259 = vmatprep.subr.bf16.mxu1 %v2258_v33  ;;  %v1239_v46 = vsel %vm670_vm7, %v1235_v40, %v1237_v41  ;;  %v2290_v29 = vpack.c.bf16 %v1460_v28, %v1459_v27  ;;  %v2292_v32 = vpack.c.bf16 %v1444_v31, %v1443_v30  ;;  %v1464_v47 = vld [vmem:[%s3112_s12 + $0x118] sm:$0xff]  ;;  %vm1470_vm5 = vcmask 556032   ;;  %v1632_v27 = vld [vmem:[%s3108_s8 + $0x8] sm:$0xff]  ;;  %v1823_v30 = vld [vmem:[%s3111_s11] sm:$0xff] }
 0x389   : > { %2243 = vmatprep.subr.bf16.mxu0 %v2242_v42  ;;  %2261 = vmatpush3.bf16.msra.mxu1 %v2258_v33  ;;  %v1461_v33 = vld [vmem:[%s3112_s12 + $0x100] sm:$0xff]  ;;  %v2592_v28 = vmov 2   ;;  %v1824_v31 = vld [vmem:[%s3111_s11 + $0x8] sm:$0xff] }
 0x38a   : > { %2245 = vmatpush1.bf16.msra.mxu0 %v2244_v39  ;;  %2135 = vmatprep.subr.mxu1 %v1237_v41  ;;  %v2294_v36 = vpack.c.bf16 %v1462_v34, %v1461_v33 }
 0x38b   : > { %v1233_v49 = vpop.permute.xlu1 %1232  ;;  %1275 = vmatprep.subr.mxu0 %v1239_v46  ;;  %v1463_v46 = vld [vmem:[%s3112_s12 + $0x110] sm:$0xff] }
 0x38c   : > { %v1238_v52 = vsel %vm670_vm7, %v1233_v49, %v1235_v40  ;;  %v2298_v57 = vpack.c.bf16 %v1464_v47, %v1463_v46 }
 0x38d   : > { %2136 = vmatpush3.msra.mxu1 %v1237_v41 }
 0x38e   : > { %1276 = vmatpush1.msra.mxu0 %v1238_v52  ;;  %2138 = vmatmul.mubr.msk.f32.vlgmr.msra.gmra.mrb[4].mxu1 %vm683_vm8, %v1149_v50 }
 0x38f   : > { %2007 = vmatmul.mubr.msk.f32.vlgmr.msra.gmra.mrb[4].mxu0 %vm683_vm8, %v2866_v35  ;;  %2263 = vmatprep.subr.bf16.mxu0 %v2262_v51  ;;  %v1451_v35 = vld [vmem:[%s3112_s12 + $0xb0] sm:$0xff] }
 0x390   : > { %1329 = vmatprep.mubr.f32.mxu0 %v2581_v6  ;;  %2265 = vmatpush3.bf16.msra.mxu0 %v2264_v55  ;;  %v1452_v6 = vld [vmem:[%s3112_s12 + $0xb8] sm:$0xff] }
 0x391   : > { %2267 = vmatprep.subr.bf16.mxu0 %v2266_v56  ;;  %2310 = vmatprep.subr.bf16.mxu1 %v2584_v3  ;;  %v2274_v2 = vpack.c.bf16 %v1452_v6, %v1451_v35 }
 0x393   : > { %2008 = vmatmul.mubr.msk.f32.gmra.mrb[6].mxu0 %vm683_vm8, %v1149_v50  ;;  %vm1697_vm8 = vcmask 130048  }
 0x394   : > { %2269 = vmatpush3.bf16.msra.mxu0 %v2268_v61  ;;  %v1466_v61 = vld [vmem:[%s3112_s12 + $0x128] sm:$0xff]  ;;  %2014 = vmatprep.mubr.msk.f32.mxu1 %vm1697_vm8, %v1632_v27 }
 0x395   : > { %2271 = vmatprep.subr.bf16.mxu0 %v2270_v62  ;;  %v2302_v6 = vpack.c.bf16 %v1466_v61, %v1465_v60 }
 0x398   : > { %2273 = vmatpush3.bf16.msra.mxu0 %v2272_v1  ;;  %v1246_v38 = vpop.permute.xlu0 %1245  ;;  %v1467_v1 = vld [vmem:[%s3112_s12 + $0x130] sm:$0xff] }
 0x399   : > { %2275 = vmatprep.subr.bf16.mxu0 %v2274_v2  ;;  %v1468_v2 = vld [vmem:[%s3112_s12 + $0x138] sm:$0xff] }
 0x39a   : > { %v2306_v5 = vpack.c.bf16 %v1468_v2, %v1467_v1  ;;  %v1634_v1 = vld [vmem:[%s3108_s8 + $0x18] sm:$0xff]  ;;  %v1633_v2 = vld [vmem:[%s3108_s8 + $0x10] sm:$0xff] }
 0x39c   : > { %2277 = vmatpush3.bf16.msra.mxu0 %v2276_v10  ;;  %v1251_v44 = vpop.permute.xlu1 %1250 }
 0x39d   : > { %2279 = vmatprep.subr.bf16.mxu0 %v2278_v11 }
 0x3a0   : > { %2281 = vmatpush3.bf16.msra.mxu0 %v2280_v16 }
 0x3a1   : > { %2283 = vmatprep.subr.bf16.mxu0 %v2282_v17 }
 0x3a4   : > { %2285 = vmatpush3.bf16.msra.mxu0 %v2284_v20 }
 0x3a5   : > { %2287 = vmatprep.subr.bf16.mxu0 %v2286_v23 }
 0x3a8   : > { %2289 = vmatpush3.bf16.msra.mxu0 %v2288_v26  ;;  %v1635_v26 = vld [vmem:[%s3109_s9] sm:$0xff] }
 0x3a9   : > { %2291 = vmatprep.subr.bf16.mxu0 %v2290_v29  ;;  %v1636_v29 = vld [vmem:[%s3109_s9 + $0x8] sm:$0xff] }
 0x3ac   : > { %2293 = vmatpush3.bf16.msra.mxu0 %v2292_v32 }
 0x3ad   : > { %2295 = vmatprep.subr.bf16.mxu0 %v2294_v36 }
 0x461   : > { %v2139_v39 = vpop.f32.mrb[4].mxu1 }
 0x462   : > { %v1325_v40 = vpop.f32.mrb[4].mxu0  ;;  %v1402_v41 = vpop.f32.mrb[5].mxu1  ;;  %v1408_v8 = vadd.f32 %v2139_v39, %v1251_v44 }
 0x463   : > { %v1326_v42 = vadd.f32 %v1325_v40, %v1246_v38  ;;  %v1327_v53 = vpop.f32.mrb[5].mxu0  ;;  %v1403_v48 = vadd.f32 %v1402_v41, %v1246_v38 }
 0x464   : > { %v1328_v43 = vadd.f32 %v1327_v53, %v1246_v38  ;;  %v1422_v10 = vmul.f32 0.2, %v1408_v8  ;;  %vm1416_vm7 = vcmp.ge.f32.partialorder %v1408_v8, 0.0 }
 0x465   : > { %v1417_v45 = vmul.f32 0.2, %v1326_v42  ;;  %vm1411_vm0 = vcmp.ge.f32.partialorder %v1326_v42, 0.0  ;;  %v1419_v62 = vmul.f32 0.2, %v1403_v48  ;;  %vm1413_vm4 = vcmp.ge.f32.partialorder %v1403_v48, 0.0 }
 0x466   : > { %v1418_v49 = vmul.f32 0.2, %v1328_v43  ;;  %v1331_v50 = vpop.f32.mrb[6].mxu0  ;;  %vm1412_vm1 = vcmp.ge.f32.partialorder %v1328_v43, 0.0  ;;  %v1428_v11 = vsel %vm1416_vm7, %v1408_v8, %v1422_v10 }
 0x467   : > { %v1332_v51 = vadd.f32 %v1331_v50, %v1251_v44  ;;  %v1333_v52 = vpop.f32.mrb[7].mxu0  ;;  %v1423_v58 = vsel %vm1411_vm0, %v1326_v42, %v1417_v45  ;;  %v1425_v4 = vsel %vm1413_vm4, %v1403_v48, %v1419_v62 }
 0x468   : > { %v1334_v55 = vadd.f32 %v1333_v52, %v1251_v44  ;;  %v1424_v56 = vsel %vm1412_vm1, %v1328_v43, %v1418_v49 }
 0x469   : > { %1545 = vmatprep.mubr.f32.mxu0 %v1424_v56  ;;  %vm1414_vm2 = vcmp.ge.f32.partialorder %v1332_v51, 0.0  ;;  %v1420_v59 = vmul.f32 0.2, %v1332_v51 }
 0x46a   : > { %v1421_v63 = vmul.f32 0.2, %v1334_v55  ;;  %1546 = vmatmul.mubr.f32.vlgmr.msra.gmra.mrb[8].mxu0 %v1423_v58  ;;  %vm1415_vm3 = vcmp.ge.f32.partialorder %v1334_v55, 0.0 }
 0x46b   : > { %2297 = vmatpush3.bf16.msra.mxu0 %v2294_v36  ;;  %v1426_v0 = vsel %vm1414_vm2, %v1332_v51, %v1420_v59 }
 0x46c   : > { %v1427_v35 = vsel %vm1415_vm3, %v1334_v55, %v1421_v63  ;;  %2299 = vmatprep.subr.bf16.mxu0 %v2298_v57 }
 0x46d   : > { %1550 = vmatprep.mubr.f32.mxu0 %v1427_v35 }
 0x46e   : > { %1551 = vmatmul.mubr.f32.gmra.mrb[10].mxu0 %v1426_v0 }
 0x46f   : > { %2301 = vmatpush3.bf16.msra.mxu0 %v2298_v57  ;;  %2158 = vmatprep.mubr.msk.f32.mxu0 %vm1470_vm5, %v1425_v4  ;;  %v539_v4 = vld [vmem:[%s3115_s15] sm:$0x3] }
 0x470   : > { %2303 = vmatprep.subr.bf16.mxu0 %v2302_v6  ;;  %v1789_v8 = vrot.slane %v539_v4, %v2760_v37 }
 0x473   : > { %2305 = vmatpush3.bf16.msra.mxu0 %v2302_v6  ;;  %v1631_v6 = vld [vmem:[%s3108_s8] sm:$0xff] }
 0x474   : > { %2307 = vmatprep.subr.bf16.mxu0 %v2306_v5 }
 0x477   : > { %2309 = vmatpush3.bf16.msra.mxu0 %v2306_v5  ;;  %v1800_v5 = vrot.slane %v539_v4, %v2771_v54 }
 0x478   : > { %2156 = vmatprep.subr.msk.mxu0 %vm1477_vm6, %v1469_v9 }
 0x47b   : > { %2157 = vmatpush3.msk.msra.mxu0 %vm1477_vm6, %v1469_v9 }
 0x47c   : > { %2159 = vmatmul.mubr.msk.f32.vlgmr.msra.gmra.mrb[12].mxu0 %vm1470_vm5, %v1428_v11 }
 0x53d   : > { %v2076_v13 = vpop.f32.mrb[8].mxu0 }
 0x53e   : > { %v2077_v14 = vpop.f32.mrb[9].mxu0 }
 0x53f   : > { %v2078_v15 = vadd.f32 %v2077_v14, %v2076_v13 }
 0x541   : > { %v2079_v16 = vpop.f32.mrb[10].mxu0 }
 0x542   : > { %v2080_v17 = vpop.f32.mrb[11].mxu0 }
 0x543   : > { %v2081_v18 = vadd.f32 %v2080_v17, %v2079_v16 }
 0x54f   : > { %v2160_v19 = vpop.f32.mrb[12].mxu0 }
 0x550   : > { %v1628_v20 = vadd.f32 %v2160_v19, %v2081_v18  ;;  %v1622_v21 = vpop.f32.mrb[13].mxu0 }
 0x551   : > { %v1623_v22 = vadd.f32 %v2078_v15, %v1622_v21 }
 0x553   : > { %v2525_v23 = vpack.i.bf16 %v1628_v20, %v1623_v22  ;;  %v2311_v24 = vpack.c.bf16 %v1628_v20, %v1623_v22 }
 0x555   : > { %2526 = vrot.lane.b32.xlu1 %v2525_v23, %s2574_s28  ;;  %2521 = vrot.lane.b32.xlu0 %v2525_v23, %s2575_s29  ;;  %s2591_s28 = smov 107  }
 0x556   : > { %2312 = vmatpush1.bf16.msra.mxu1 %v2311_v24 }
 0x557   : > { %2313 = vmatprep.subr.bf16.mxu1 %v2584_v3 }
 0x559   : > { %2536 = vrot.lane.b32.xlu1 %v2525_v23, %s2587_s25  ;;  %2531 = vrot.lane.b32.xlu0 %v2525_v23, %s2588_s26 }
 0x55d   : > { %2546 = vrot.lane.b32.xlu1 %v2525_v23, %s2577_s0  ;;  %2541 = vrot.lane.b32.xlu0 %v2525_v23, %s2589_s17 }
 0x561   : > { %2556 = vrot.lane.b32.xlu1 %v2525_v23, %s2590_s19  ;;  %2551 = vrot.lane.b32.xlu0 %v2525_v23, %s2591_s28  ;;  %s538_s28 = scalar_lea.vmem %s3116_s16, %s2022_s23 }
 0x565   : > { %1802 = vperm.xlu1 %2560, %v1785_v25   ;;  %1792 = vperm.xlu0 %2438, %v1785_v25  }
 0x569   : > { %1689 = vperm.xlu0 %2438, %v1635_v26   ;;  %2561 = vset.pattern.permute.xlu1 %v2582_v7 }
 0x56a   : > { %1694 = vperm.xlu1 %2561, %v1636_v29   ;;  %v1818_v29 = vrot.slane %v539_v4, 4 }
 0x56d   : > { %2562 = vset.pattern.permute.xlu0 %v2592_v28 }
 0x56e   : > { %1813 = vperm.xlu0 %2562, %v1785_v25   ;;  %1827 = vperm.xlu1 %2561, %v1823_v30  }
 0x572   : > { %2563 = vset.pattern.permute.xlu0 %v2582_v7  ;;  %1832 = vperm.xlu1 %2561, %v1824_v31  }
 0x5c7   : > { %v2527_v32 = vpop.permute.xlu1 %2526  ;;  %v2522_v33 = vpop.permute.xlu0 %2521 }
 0x5c8   : > { %v2524_v34 = vunpack.i.h.bf16 %v2522_v33  ;;  %v2523_v36 = vunpack.i.l.bf16 %v2522_v33  ;;  %v2529_v7 = vunpack.i.h.bf16 %v2527_v32  ;;  %v2528_v38 = vunpack.i.l.bf16 %v2527_v32 }
 0x5ca   : > { %v2314_v39 = vpack.c.bf16 %v2524_v34, %v2523_v36  ;;  %v2317_v41 = vpack.c.bf16 %v2529_v7, %v2528_v38  ;;  %v1822_v36 = vld [vmem:[%s3110_s10 + $0x8] sm:$0xff] }
 0x5cb   : > { %v2532_v40 = vpop.permute.xlu0 %2531  ;;  %v2537_v43 = vpop.permute.xlu1 %2536 }
 0x5cc   : > { %2315 = vmatpush1.bf16.msra.mxu1 %v2314_v39  ;;  %v2534_v42 = vunpack.i.h.bf16 %v2532_v40  ;;  %v2533_v53 = vunpack.i.l.bf16 %v2532_v40  ;;  %v2539_v44 = vunpack.i.h.bf16 %v2537_v43  ;;  %v2538_v45 = vunpack.i.l.bf16 %v2537_v43 }
 0x5cd   : > { %2316 = vmatprep.subr.bf16.mxu1 %v2584_v3 }
 0x5ce   : > { %v2320_v46 = vpack.c.bf16 %v2534_v42, %v2533_v53  ;;  %v2323_v48 = vpack.c.bf16 %v2539_v44, %v2538_v45 }
 0x5cf   : > { %v2542_v47 = vpop.permute.xlu0 %2541  ;;  %v2547_v51 = vpop.permute.xlu1 %2546 }
 0x5d0   : > { %2318 = vmatpush1.bf16.msra.mxu1 %v2317_v41  ;;  %v2544_v49 = vunpack.i.h.bf16 %v2542_v47  ;;  %v2543_v50 = vunpack.i.l.bf16 %v2542_v47  ;;  %v2549_v52 = vunpack.i.h.bf16 %v2547_v51  ;;  %v2548_v55 = vunpack.i.l.bf16 %v2547_v51 }
 0x5d1   : > { %2319 = vmatprep.subr.bf16.mxu1 %v2584_v3 }
 0x5d2   : > { %v2326_v56 = vpack.c.bf16 %v2544_v49, %v2543_v50  ;;  %v2329_v58 = vpack.c.bf16 %v2549_v52, %v2548_v55 }
 0x5d3   : > { %v2552_v57 = vpop.permute.xlu0 %2551  ;;  %v2557_v61 = vpop.permute.xlu1 %2556 }
 0x5d4   : > { %2321 = vmatpush1.bf16.msra.mxu1 %v2320_v46  ;;  %v2554_v59 = vunpack.i.h.bf16 %v2552_v57  ;;  %v2553_v60 = vunpack.i.l.bf16 %v2552_v57  ;;  %v2559_v62 = vunpack.i.h.bf16 %v2557_v61  ;;  %v2558_v63 = vunpack.i.l.bf16 %v2557_v61 }
 0x5d5   : > { %2322 = vmatprep.subr.bf16.mxu1 %v2584_v3 }
 0x5d6   : > { %v2332_v0 = vpack.c.bf16 %v2554_v59, %v2553_v60  ;;  %v2335_v35 = vpack.c.bf16 %v2559_v62, %v2558_v63 }
 0x5d8   : > { %2324 = vmatpush1.bf16.msra.mxu1 %v2323_v48 }
 0x5d9   : > { %2325 = vmatprep.subr.bf16.mxu1 %v2584_v3 }
 0x5dc   : > { %2327 = vmatpush1.bf16.msra.mxu1 %v2326_v56 }
 0x5dd   : > { %2328 = vmatprep.subr.bf16.mxu1 %v2584_v3 }
 0x5e0   : > { %2330 = vmatpush1.bf16.msra.mxu1 %v2329_v58 }
 0x5e1   : > { %2331 = vmatprep.subr.bf16.mxu1 %v2584_v3 }
 0x5e4   : > { %2333 = vmatpush1.bf16.msra.mxu1 %v2332_v0  ;;  %v1803_v9 = vpop.permute.xlu1 %1802  ;;  %v1793_v10 = vpop.permute.xlu0 %1792 }
 0x5e5   : > { %2334 = vmatprep.subr.bf16.mxu1 %v2584_v3  ;;  %v1821_v3 = vld [vmem:[%s3110_s10] sm:$0xff]  ;;  %v1805_v11 = vsub.f32 %v1800_v5, %v1803_v9  ;;  %v1795_v12 = vsub.f32 %v1789_v8, %v1793_v10 }
 0x5e7   : > { %v1806_v13 = vmul.f32 %v1805_v11, %v1805_v11  ;;  %v1796_v14 = vmul.f32 %v1795_v12, %v1795_v12 }
 0x5e8   : > { %2336 = vmatpush1.bf16.msra.mxu1 %v2335_v35  ;;  %v1690_v19 = vpop.permute.xlu0 %1689 }
 0x5e9   : > { %v1807_v15 = vadd.f32 %v1806_v13, %v1796_v14  ;;  %v1695_v23 = vpop.permute.xlu1 %1694 }
 0x5eb   : > { %1769 = vmatmul.mubr.f32.vlgmr.msra.gmra.mrb[6].mxu1 %v1631_v6  ;;  %v1808_v16 = vsub.f32 0.0, %v1807_v15 }
 0x5ec   : > { %2015 = vmatprep.mubr.msk.f32.mxu1 %vm1697_vm8, %v1634_v1 }
 0x5ed   : > { %v1809_v17 = vmul.f32 14.222222, %v1808_v16  ;;  %v1814_v27 = vpop.permute.xlu0 %1813  ;;  %v1828_v7 = vpop.permute.xlu1 %1827 }
 0x5ef   : > { %1774 = vmatmul.mubr.f32.gmra.mrb[8].mxu1 %v1633_v2  ;;  %v1810_v18 = vmul.f32 1.442695, %v1809_v17 }
 0x5f0   : > { %2167 = vmatprep.mubr.msk.f32.mxu1 %vm1835_vm10, %v1821_v3 }
 0x5f1   : > { %2564 = vpow2.f32 %v1810_v18  ;;  %v1833_v38 = vpop.permute.xlu1 %1832 }
 0x5fb   : > { %v2565_v26 = vpop.eup %2564 }
 0x5fc   : > { %v1816_v30 = vmul.f32 %v2565_v26, %v1814_v27 }
 0x5fe   : > { %v1820_v34 = vsel %vm1477_vm6, %v1816_v30, %v1818_v29 }
 0x6be   : > { %v1770_v20 = vpop.f32.mrb[6].mxu1 }
 0x6bf   : > { %v1771_v21 = vadd.f32 %v1770_v20, %v1690_v19  ;;  %v1772_v22 = vpop.f32.mrb[7].mxu1 }
 0x6c1   : > { %v1781_v54 = vmul.f32 0.2, %v1771_v21  ;;  %vm1779_vm11 = vcmp.ge.f32.partialorder %v1771_v21, 0.0 }
 0x6c2   : > { %v1775_v24 = vpop.f32.mrb[8].mxu1 }
 0x6c3   : > { %v1776_v25 = vadd.f32 %v1775_v24, %v1695_v23  ;;  %v1777_v37 = vpop.f32.mrb[9].mxu1  ;;  %v1783_v31 = vsel %vm1779_vm11, %v1771_v21, %v1781_v54 }
 0x6c5   : > { %vm1780_vm12 = vcmp.ge.f32.partialorder %v1776_v25, 0.0  ;;  %v1782_v28 = vmul.f32 0.2, %v1776_v25 }
 0x6c7   : > { %v1784_v32 = vsel %vm1780_vm12, %v1776_v25, %v1782_v28 }
 0x6c8   : > { %v2337_v33 = vpack.c.bf16 %v1784_v32, %v1783_v31 }
 0x6ca   : > { %2338 = vmatprep.subr.bf16.mxu1 %v2337_v33 }
 0x6cb   : > { %2340 = vmatpush3.bf16.msra.mxu1 %v2337_v33 }
 0x6cc   : > { %2165 = vmatprep.subr.msk.mxu1 %vm1842_vm13, %v1820_v34 }
 0x6cf   : > { %2166 = vmatpush3.msk.msra.mxu1 %vm1842_vm13, %v1820_v34 }
 0x6d0   : > { %2168 = vmatmul.mubr.msk.f32.vlgmr.msra.gmra.mrb[10].mxu1 %vm1835_vm10, %v1822_v36 }
 0x7a3   : > { %v2169_v39 = vpop.f32.mrb[10].mxu1 }
 0x7a4   : > { %v1918_v40 = vadd.f32 %v2169_v39, %v1833_v38  ;;  %v1912_v41 = vpop.f32.mrb[11].mxu1 }
 0x7a5   : > { %v1913_v42 = vadd.f32 %v1912_v41, %v1828_v7 }
 0x7a6   : > { %v1923_v53 = vsel %vm1921_vm14, %v1918_v40, 0.0 }
 0x7a7   : > { %1925 = vst [vmem:[%s538_s28 + $0x8] sm:$0xff] %v1923_v53  ;;  %v1922_v43 = vsel %vm1921_vm14, %v1913_v42, 0.0 }
 0x7a8   : > { %1924 = vst [vmem:[%s538_s28] sm:$0xff] %v1922_v43 }
 0x7a9 PF: > { %s26_s21 = sadd.s32 1, %s2572_s21  }
 0x7aa   : > { %p23_p4 = scmp.ge.s32.totalorder %s26_s21, 4  }
 0x7ac   :  { %25 = sbr.rel (!%p23_p4) target bundleno = 2 (0x2), region = 117 }

// kernel: keyp_to_images_decoder_forward.3
= control target key start
LH: loop header
LB: loop body
LE: loop exit
PB: predicated region body
PF: predicated region fallthrough
CT: control target
= control target key end

     0   :  { %s6193_s21 = smov 0   ;;  %s8457_s0 = inlined_call_operand.vmem [shape: f32[2,4,4,3], index: 0, kind: input, shape index: {}]   ;;  %s8458_s1 = inlined_call_operand.vmem [shape: f32[2,16,128], index: 1, kind: input, shape index: {}]   ;;  %s8459_s2 = inlined_call_operand.vmem [shape: f32[16,4], index: 2, kind: input, shape index: {}]   ;;  %s8460_s3 = inlined_call_operand.vmem [shape: f32[8,144], index: 3, kind: input, shape index: {}]   ;;  %s8461_s4 = inlined_call_operand.vmem [shape: f32[8,1], index: 4, kind: input, shape index: {}]   ;;  %s8462_s5 = inlined_call_operand.vmem [shape: f32[8,72], index: 5, kind: input, shape index: {}]   ;;  %s8463_s6 = inlined_call_operand.vmem [shape: f32[8,1], index: 6, kind: input, shape index: {}]   ;;  %s8464_s7 = inlined_call_operand.vmem [shape: f32[3,8], index: 7, kind: input, shape index: {}]   ;;  %s8465_s8 = inlined_call_operand.vmem [shape: f32[3,1], index: 8, kind: input, shape index: {}]   ;;  %s8466_s9 = inlined_call_operand.vmem [shape: f32[128,362], index: 9, kind: input, shape index: {}]   ;;  %s8467_s10 = inlined_call_operand.vmem [shape: f32[1,1448], index: 10, kind: input, shape index: {}]   ;;  %s8468_s11 = inlined_call_operand.vmem [shape: f32[2,128], index: 11, kind: input, shape index: {}]   ;;  %s8469_s12 = inlined_call_operand.vmem [shape: f32[2,3,1296], index: 12, kind: output, shape index: {}]  }
   0x1 LB: > { %s4450_s22 = sadd.s32 4294967295, %s6108_s21   ;;  %p4454_p0 = scmp.ge.s32.totalorder %s6108_s21, 1  ;;  %s6108_s21 = sphi %s6193_s21, %s22_s21  }
   0x2   : > { %p372_p1 = scmp.lt.s32.totalorder %s6108_s21, 3 }
   0x4   : > { %p373_p2 = pnand %p4454_p0, %p372_p1 }
   0x5   : > { %p419_p3 = scmp.lt.s32.totalorder (!%p373_p2), %s4450_s22, 1  ;;  %v6110_v0 = vmov (!%p373_p2), 0   ;;  %v6111_v1 = vmov (!%p373_p2), 2   ;;  %v6112_v3 = vmov (!%p373_p2), 1   ;;  %v6219_v4 = vld [vmem:[%s8459_s2] sm:$0xff] (!%p373_p2)  ;;  %vm519_vm0 = vcmask (!%p373_p2), 31744  }
   0x6   : > { %376 = sbr.rel (%p373_p2) target bundleno = 2546 (0x9f2), region = 68  ;;  %5344 = vset.pattern.permute.xlu0 (!%p373_p2), %v6110_v0  ;;  %5346 = vset.pattern.permute.xlu1 (!%p373_p2), %v6111_v1  ;;  %v438_v6 = vld [vmem:[%s8466_s9 + $0x8] sm:$0xff] (!%p373_p2)  ;;  %v441_v7 = vld [vmem:[%s8466_s9 + $0x20] sm:$0xff] (!%p373_p2)  ;;  %v440_v11 = vld [vmem:[%s8466_s9 + $0x18] sm:$0xff] (!%p373_p2)  ;;  %v488_v49 = vlaneseq (!%p373_p2)  ;;  %vm526_vm1 = vcmask (!%p373_p2), 1043456   ;;  %vm1572_vm6 = vcmask (!%p373_p2), 154624  }
   0x7   : > { %4589 = vmatprep.mubr.msk.f32.mxu0 (!%p373_p2), %vm519_vm0, %v6219_v4  ;;  %v437_v8 = vld [vmem:[%s8466_s9] sm:$0xff] (!%p373_p2)  ;;  %v6234_v10 = vpack.c.bf16 (!%p373_p2), %v441_v7, %v438_v6  ;;  %v444_v13 = vld [vmem:[%s8466_s9 + $0x38] sm:$0xff] (!%p373_p2)  ;;  %v447_v14 = vld [vmem:[%s8466_s9 + $0x50] sm:$0xff] (!%p373_p2)  ;;  %s6116_s16 = smov (!%p373_p2), 126   ;;  %s6117_s17 = smov (!%p373_p2), 110   ;;  %vm1601_vm9 = vcmask (!%p373_p2), 1022976  }
   0x8   : > { %v6239_v12 = vpack.c.bf16 (!%p373_p2), %v440_v11, %v437_v8  ;;  %v443_v15 = vld [vmem:[%s8466_s9 + $0x30] sm:$0xff] (!%p373_p2)  ;;  %v6253_v16 = vpack.c.bf16 (!%p373_p2), %v447_v14, %v444_v13  ;;  %v446_v17 = vld [vmem:[%s8466_s9 + $0x48] sm:$0xff] (!%p373_p2)  ;;  %v453_v20 = vld [vmem:[%s8466_s9 + $0x80] sm:$0xff] (!%p373_p2)  ;;  %v6353_v50 = vshrl.u32 (!%p373_p2), %v488_v49, 7  ;;  %s6118_s18 = smov (!%p373_p2), 109   ;;  %s6119_s19 = smov (!%p373_p2), 108  }
   0x9   : > { %4748 = vmatprep.subr.bf16.mxu1 (!%p373_p2), %v6234_v10  ;;  %v6258_v18 = vpack.c.bf16 (!%p373_p2), %v446_v17, %v443_v15  ;;  %v450_v19 = vld [vmem:[%s8466_s9 + $0x68] sm:$0xff] (!%p373_p2)  ;;  %v449_v21 = vld [vmem:[%s8466_s9 + $0x60] sm:$0xff] (!%p373_p2)  ;;  %v452_v23 = vld [vmem:[%s8466_s9 + $0x78] sm:$0xff] (!%p373_p2)  ;;  %s6120_s20 = smov (!%p373_p2), 92   ;;  %s6121_s24 = smov (!%p373_p2), 91   ;;  %vm2465_vm14 = vcmask (!%p373_p2), 130048  }
   0xa   : > { %4750 = vmatpush1.bf16.msra.mxu1 (!%p373_p2), %v6239_v12  ;;  %v6271_v22 = vpack.c.bf16 (!%p373_p2), %v453_v20, %v450_v19  ;;  %v6277_v24 = vpack.c.bf16 (!%p373_p2), %v452_v23, %v449_v21  ;;  %v456_v25 = vld [vmem:[%s8466_s9 + $0x98] sm:$0xff] (!%p373_p2)  ;;  %v459_v26 = vld [vmem:[%s8466_s9 + $0xb0] sm:$0xff] (!%p373_p2)  ;;  %v458_v29 = vld [vmem:[%s8466_s9 + $0xa8] sm:$0xff] (!%p373_p2)  ;;  %v6356_v51 = vsub.s32 (!%p373_p2), 0, %v6353_v50  ;;  %v6362_v53 = vsub.s32 (!%p373_p2), 1, %v6353_v50  ;;  %s6122_s25 = smov (!%p373_p2), 90  }
   0xb   : > { %4752 = vmatprep.subr.bf16.mxu1 (!%p373_p2), %v6253_v16  ;;  %v455_v27 = vld [vmem:[%s8466_s9 + $0x90] sm:$0xff] (!%p373_p2)  ;;  %v6290_v28 = vpack.c.bf16 (!%p373_p2), %v459_v26, %v456_v25  ;;  %v462_v31 = vld [vmem:[%s8466_s9 + $0xc8] sm:$0xff] (!%p373_p2)  ;;  %v465_v32 = vld [vmem:[%s8466_s9 + $0xe0] sm:$0xff] (!%p373_p2)  ;;  %s6123_s27 = smov (!%p373_p2), 125   ;;  %s6124_s28 = smov (!%p373_p2), 103   ;;  %vm1748_vm15 = vcmask (!%p373_p2), 1039360  }
   0xc   : > { %v6295_v30 = vpack.c.bf16 (!%p373_p2), %v458_v29, %v455_v27  ;;  %v461_v33 = vld [vmem:[%s8466_s9 + $0xc0] sm:$0xff] (!%p373_p2)  ;;  %v6307_v34 = vpack.c.bf16 (!%p373_p2), %v465_v32, %v462_v31  ;;  %v464_v35 = vld [vmem:[%s8466_s9 + $0xd8] sm:$0xff] (!%p373_p2)  ;;  %v471_v38 = vld [vmem:[%s8466_s9 + $0x110] sm:$0xff] (!%p373_p2) }
   0xd   : > { %s8536_s22 = smov (!%p419_p3, %s4450_s22), 1  ;;  %v6313_v36 = vpack.c.bf16 %v464_v35, %v461_v33  ;;  %v468_v37 = vld [vmem:[%s8466_s9 + $0xf8] sm:$0xff]  ;;  %v467_v40 = vld [vmem:[%s8466_s9 + $0xf0] sm:$0xff]  ;;  %v470_v41 = vld [vmem:[%s8466_s9 + $0x108] sm:$0xff] }
   0xe   : > { %s4501_s23 = sshll.u32 %s8536_s22, 4  ;;  %4754 = vmatpush1.bf16.msra.mxu1 %v6258_v18  ;;  %v6322_v39 = vpack.c.bf16 %v471_v38, %v468_v37  ;;  %v474_v42 = vld [vmem:[%s8466_s9 + $0x128] sm:$0xff]  ;;  %v477_v43 = vld [vmem:[%s8466_s9 + $0x140] sm:$0xff]  ;;  %v6337_v44 = vpack.c.bf16 %v470_v41, %v467_v40  ;;  %v476_v47 = vld [vmem:[%s8466_s9 + $0x138] sm:$0xff] }
   0xf   : > { %s6211_s26 = scalar_lea.vmem %s8457_s0, %s4501_s23  ;;  %4756 = vmatprep.subr.bf16.mxu1 %v6271_v22  ;;  %v6340_v45 = vpack.c.bf16 %v477_v43, %v474_v42  ;;  %v473_v46 = vld [vmem:[%s8466_s9 + $0x120] sm:$0xff]  ;;  %v439_v6 = vld [vmem:[%s8466_s9 + $0x10] sm:$0xff]  ;;  %v442_v7 = vld [vmem:[%s8466_s9 + $0x28] sm:$0xff]  ;;  %s428_s15 = scalar_lea.vmem %s8458_s1, %s4501_s23 }
  0x10   : > { %v487_v2 = vld [vmem:[%s6211_s26] sm:$0xf]  ;;  %v4463_v5 = vld [vmem:[%s6211_s26 + $0x4] sm:$0xf]  ;;  %v4467_v9 = vld [vmem:[%s6211_s26 + $0x8] sm:$0xf]  ;;  %v6349_v48 = vpack.c.bf16 %v476_v47, %v473_v46  ;;  %v6384_v14 = vpack.c.bf16 %v442_v7, %v439_v6 }
  0x11   : > { %494 = vperm.xlu0 %5344, %v487_v2   ;;  %515 = vperm.xlu1 %5346, %v487_v2   ;;  %v434_v52 = vld [vmem:[%s8468_s11] sm:$0x3]  ;;  %v448_v11 = vld [vmem:[%s8466_s9 + $0x58] sm:$0xff]  ;;  %v6389_v15 = vld [vmem:[%s8459_s2 + $0x8] sm:$0xff]  ;;  %s6114_s23 = smov 19  }
  0x12   : > { %4758 = vmatpush1.bf16.msra.mxu1 %v6277_v24  ;;  %v6365_v54 = vrot.slane %v434_v52, %v6356_v51  ;;  %v6368_v56 = vrot.slane %v434_v52, %v6362_v53  ;;  %v451_v19 = vld [vmem:[%s8466_s9 + $0x70] sm:$0xff]  ;;  %v454_v20 = vld [vmem:[%s8466_s9 + $0x88] sm:$0xff]  ;;  %v457_v23 = vld [vmem:[%s8466_s9 + $0xa0] sm:$0xff] }
  0x13   : > { %4760 = vmatprep.subr.bf16.mxu1 %v6290_v28  ;;  %v6406_v21 = vpack.c.bf16 %v454_v20, %v451_v19  ;;  %v460_v25 = vld [vmem:[%s8466_s9 + $0xb8] sm:$0xff]  ;;  %v463_v27 = vld [vmem:[%s8466_s9 + $0xd0] sm:$0xff]  ;;  %v466_v29 = vld [vmem:[%s8466_s9 + $0xe8] sm:$0xff] }
  0x14   : > { %v6416_v26 = vpack.c.bf16 %v460_v25, %v457_v23  ;;  %v6426_v31 = vpack.c.bf16 %v466_v29, %v463_v27  ;;  %v469_v32 = vld [vmem:[%s8466_s9 + $0x100] sm:$0xff]  ;;  %v472_v33 = vld [vmem:[%s8466_s9 + $0x118] sm:$0xff]  ;;  %v475_v37 = vld [vmem:[%s8466_s9 + $0x130] sm:$0xff] }
  0x15   : > { %5345 = vset.pattern.permute.xlu0 %v6112_v3  ;;  %5347 = vset.pattern.permute.xlu1 %v6110_v0  ;;  %v6436_v35 = vpack.c.bf16 %v472_v33, %v469_v32  ;;  %v478_v38 = vld [vmem:[%s8466_s9 + $0x148] sm:$0xff]  ;;  %v484_v6 = vld [vmem:[%s8466_s9 + $0x178] sm:$0xff]  ;;  %v6497_v29 = vld [vmem:[%s428_s15] sm:$0xff] }
  0x16   : > { %504 = vperm.xlu0 %5345, %v487_v2   ;;  %769 = vperm.xlu1 %5347, %v4463_v5   ;;  %v6446_v40 = vpack.c.bf16 %v478_v38, %v475_v37  ;;  %v6495_v27 = vld [vmem:[%s428_s15 + $0x8] sm:$0xff]  ;;  %vm4475_vm10 = vmneg %vm1572_vm6  ;;  %s6125_s15 = smov 81  }
  0x17   : > { %4762 = vmatpush1.bf16.msra.mxu1 %v6295_v30  ;;  %vm5006_vm13 = vmpackc.low %vm4475_vm10, %vm4475_vm10 }
  0x18   : > { %4764 = vmatprep.subr.bf16.mxu1 %v6307_v34 }
  0x1a   : > { %5349 = vset.pattern.permute.xlu0 %v6111_v1  ;;  %5348 = vset.pattern.permute.xlu1 %v6112_v3 }
  0x1b   : > { %786 = vperm.xlu0 %5349, %v4463_v5   ;;  %775 = vperm.xlu1 %5348, %v4463_v5  }
  0x1c   : > { %4766 = vmatpush1.bf16.msra.mxu1 %v6313_v36 }
  0x1d   : > { %4768 = vmatprep.subr.bf16.mxu1 %v6322_v39 }
  0x1f   : > { %1049 = vperm.xlu0 %5349, %v4467_v9   ;;  %5350 = vset.pattern.permute.xlu1 %v6110_v0 }
  0x20   : > { %1032 = vperm.xlu1 %5350, %v4467_v9   ;;  %4770 = vmatpush1.bf16.msra.mxu1 %v6337_v44 }
  0x21   : > { %4772 = vmatprep.subr.bf16.mxu1 %v6340_v45 }
  0x23   : > { %5353 = vset.pattern.permute.xlu0 %v6112_v3 }
  0x24   : > { %5351 = vset.pattern.permute.xlu1 %v6112_v3  ;;  %4774 = vmatpush1.bf16.msra.mxu1 %v6349_v48 }
  0x25   : > { %1038 = vperm.xlu1 %5351, %v4467_v9   ;;  %v445_v9 = vld [vmem:[%s8466_s9 + $0x40] sm:$0xff] }
  0x26   : > { %v6392_v17 = vpack.c.bf16 %v448_v11, %v445_v9  ;;  %v8470_v11 = vmov 0.0  }
  0x27   : > { %677 = vmatprep.mubr.f32.mxu1 %v8470_v11 }
  0x29   : > { %5352 = vset.pattern.permute.xlu1 %v6110_v0 }
  0x90   : > { %v495_v55 = vpop.permute.xlu0 %494  ;;  %v516_v5 = vpop.permute.xlu1 %515 }
  0x91   : > { %v497_v57 = vsub.f32 %v6365_v54, %v495_v55 }
  0x93   : > { %v498_v60 = vmul.f32 %v497_v57, %v497_v57 }
  0x95   : > { %v505_v58 = vpop.permute.xlu0 %504  ;;  %v770_v41 = vpop.permute.xlu1 %769 }
  0x96   : > { %v507_v59 = vsub.f32 %v6368_v56, %v505_v58  ;;  %v772_v43 = vsub.f32 %v6365_v54, %v770_v41 }
  0x98   : > { %v508_v61 = vmul.f32 %v507_v59, %v507_v59  ;;  %v773_v47 = vmul.f32 %v772_v43, %v772_v43  ;;  %v480_v59 = vld [vmem:[%s8466_s9 + $0x158] sm:$0xff] }
  0x9a   : > { %v509_v62 = vadd.f32 %v508_v61, %v498_v60  ;;  %v776_v42 = vpop.permute.xlu1 %775  ;;  %v483_v60 = vld [vmem:[%s8466_s9 + $0x170] sm:$0xff]  ;;  %v787_v7 = vpop.permute.xlu0 %786 }
  0x9b   : > { %v778_v46 = vsub.f32 %v6368_v56, %v776_v42 }
  0x9c   : > { %v510_v63 = vsub.f32 0.0, %v509_v62  ;;  %v6459_v62 = vpack.c.bf16 %v483_v60, %v480_v59 }
  0x9d   : > { %v779_v49 = vmul.f32 %v778_v46, %v778_v46 }
  0x9e   : > { %v511_v2 = vmul.f32 14.222222, %v510_v63  ;;  %v479_v63 = vld [vmem:[%s8466_s9 + $0x150] sm:$0xff]  ;;  %4776 = vmatprep.subr.bf16.mxu1 %v6459_v62 }
  0x9f   : > { %v780_v52 = vadd.f32 %v779_v49, %v773_v47  ;;  %v1033_v19 = vpop.permute.xlu1 %1032 }
  0xa0   : > { %v512_v3 = vmul.f32 1.442695, %v511_v2  ;;  %v482_v2 = vld [vmem:[%s8466_s9 + $0x168] sm:$0xff]  ;;  %v1035_v23 = vsub.f32 %v6365_v54, %v1033_v19 }
  0xa1   : > { %v781_v55 = vsub.f32 0.0, %v780_v52 }
  0xa2   : > { %6092 = vpow2.f32 %v512_v3  ;;  %v481_v3 = vld [vmem:[%s8466_s9 + $0x160] sm:$0xff] }
  0xa3   : > { %v782_v57 = vmul.f32 14.222222, %v781_v55 }
  0xa4   : > { %v1039_v20 = vpop.permute.xlu1 %1038 }
  0xa5   : > { %v783_v58 = vmul.f32 1.442695, %v782_v57  ;;  %v1041_v25 = vsub.f32 %v6368_v56, %v1039_v20 }
  0xa7   : > { %6094 = vpow2.f32 %v783_v58  ;;  %v1042_v37 = vmul.f32 %v1041_v25, %v1041_v25  ;;  %v1050_v58 = vpop.permute.xlu0 %1049 }
  0xac   : > { %v6093_v8 = vpop.eup %6092 }
  0xad   : > { %v518_v13 = vmul.f32 %v6093_v8, %v516_v5  ;;  %v6470_v5 = vpack.c.bf16 %v482_v2, %v479_v63  ;;  %v6476_v8 = vpack.c.bf16 %v484_v6, %v481_v3 }
  0xaf   : > { %4587 = vmatprep.subr.msk.mxu0 %vm526_vm1, %v518_v13  ;;  %4778 = vmatpush1.bf16.msra.mxu1 %v6470_v5 }
  0xb0   : > { %4588 = vmatpush3.msk.msra.mxu0 %vm526_vm1, %v518_v13  ;;  %4812 = vmatprep.subr.bf16.mxu1 %v6234_v10  ;;  %v4471_v13 = vld [vmem:[%s6211_s26 + $0xc] sm:$0xf]  ;;  %s6115_s26 = smov 127  }
  0xb1   : > { %4590 = vmatmul.mubr.msk.f32.vlgmr.msra.gmra.mrb[0].mxu0 %vm519_vm0, %v6389_v15  ;;  %4780 = vmatprep.subr.bf16.mxu0 %v6384_v14  ;;  %v6095_v61 = vpop.eup %6094 }
  0xb2   : > { %4782 = vmatpush3.bf16.msra.mxu0 %v6384_v14  ;;  %v789_v9 = vmul.f32 %v6095_v61, %v787_v7  ;;  %1295 = vperm.xlu1 %5352, %v4471_v13  }
  0xb3   : > { %4784 = vmatprep.subr.bf16.mxu0 %v6392_v17  ;;  %1301 = vperm.xlu0 %5353, %v4471_v13  }
  0xb6   : > { %4786 = vmatpush3.bf16.msra.mxu0 %v6392_v17  ;;  %5354 = vset.pattern.permute.xlu1 %v6111_v1 }
  0xb7   : > { %4788 = vmatprep.subr.bf16.mxu0 %v6406_v21  ;;  %6091 = vset.pattern.permute.xlu0 %v6110_v0 }
  0xb8   : > { %1312 = vperm.xlu1 %5354, %v4471_v13  }
  0xba   : > { %4790 = vmatpush3.bf16.msra.mxu0 %v6406_v21 }
  0xbb   : > { %4792 = vmatprep.subr.bf16.mxu0 %v6416_v26 }
  0xbc   : > { %5895 = vset.pattern.permute.xlu1 %v6110_v0  ;;  %v1036_v0 = vmul.f32 %v1035_v23, %v1035_v23 }
  0xbe   : > { %4794 = vmatpush3.bf16.msra.mxu0 %v6416_v26  ;;  %v1043_v43 = vadd.f32 %v1042_v37, %v1036_v0 }
  0xbf   : > { %4796 = vmatprep.subr.bf16.mxu0 %v6426_v31 }
  0xc0   : > { %v1044_v49 = vsub.f32 0.0, %v1043_v43 }
  0xc2   : > { %4798 = vmatpush3.bf16.msra.mxu0 %v6426_v31  ;;  %v1045_v52 = vmul.f32 14.222222, %v1044_v49 }
  0xc3   : > { %4800 = vmatprep.subr.bf16.mxu0 %v6436_v35 }
  0xc4   : > { %v1046_v55 = vmul.f32 1.442695, %v1045_v52 }
  0xc6   : > { %4802 = vmatpush3.bf16.msra.mxu0 %v6436_v35  ;;  %6096 = vpow2.f32 %v1046_v55 }
  0xc7   : > { %4804 = vmatprep.subr.bf16.mxu0 %v6446_v40 }
  0xca   : > { %4806 = vmatpush3.bf16.msra.mxu0 %v6446_v40 }
  0xcb   : > { %4808 = vmatprep.subr.bf16.mxu0 %v6476_v8 }
  0xce   : > { %4810 = vmatpush3.bf16.msra.mxu0 %v6476_v8 }
  0xcf   : > { %4627 = vmatprep.subr.msk.mxu0 %vm526_vm1, %v789_v9 }
  0xd0   : > { %v6097_v57 = vpop.eup %6096 }
  0xd1   : > { %v1052_v59 = vmul.f32 %v6097_v57, %v1050_v58 }
 0x131   : > { %v1296_v37 = vpop.permute.xlu1 %1295 }
 0x137   : > { %v1313_v57 = vpop.permute.xlu1 %1312 }
 0x184   : > { %v4591_v1 = vpop.f32.mrb[0].mxu0 }
 0x185   : > { %v606_v32 = vadd.f32 %v4591_v1, %v6495_v27  ;;  %v596_v33 = vpop.f32.mrb[1].mxu0 }
 0x186   : > { %v605_v38 = vadd.f32 %v596_v33, %v6497_v29 }
 0x187   : > { %v610_v41 = vmul.f32 0.2, %v606_v32  ;;  %vm608_vm2 = vcmp.ge.f32.partialorder %v606_v32, 0.0 }
 0x188   : > { %v609_v42 = vmul.f32 0.2, %v605_v38  ;;  %vm607_vm3 = vcmp.ge.f32.partialorder %v605_v38, 0.0 }
 0x189   : > { %v612_v47 = vsel %vm608_vm2, %v606_v32, %v610_v41  ;;  %v1298_v41 = vsub.f32 %v6365_v54, %v1296_v37  ;;  %vm1938_vm2 = vcmask 900096  }
 0x18a   : > { %v611_v46 = vsel %vm607_vm3, %v605_v38, %v609_v42  ;;  %v1302_v38 = vpop.permute.xlu0 %1301  ;;  %vm2223_vm3 = vcmask 752640  }
 0x18b   : > { %678 = vmatmul.mubr.f32.vlgmr.msra.gmra.mrb[0].mxu1 %v611_v46  ;;  %4624 = vmatprep.mubr.f32.mxu0 %v611_v46  ;;  %v1304_v42 = vsub.f32 %v6368_v56, %v1302_v38  ;;  %v1299_v43 = vmul.f32 %v1298_v41, %v1298_v41 }
 0x18c   : > { %4814 = vmatpush1.bf16.msra.mxu1 %v6239_v12  ;;  %4625 = vmatmul.mubr.f32.vlgmr.msra.gmra.mrb[2].mxu0 %v612_v47 }
 0x18d   : > { %4628 = vmatpush3.msk.msra.mxu0 %vm526_vm1, %v789_v9  ;;  %683 = vmatprep.mubr.f32.mxu1 %v8470_v11  ;;  %v1305_v46 = vmul.f32 %v1304_v42, %v1304_v42 }
 0x18e   : > { %4816 = vmatprep.subr.bf16.mxu1 %v6253_v16  ;;  %4629 = vmatprep.mubr.msk.f32.mxu0 %vm519_vm0, %v6219_v4 }
 0x18f   : > { %684 = vmatmul.mubr.f32.gmra.mrb[2].mxu1 %v612_v47  ;;  %4844 = vmatprep.subr.bf16.mxu0 %v6384_v14  ;;  %v1306_v47 = vadd.f32 %v1305_v46, %v1299_v43 }
 0x190   : > { %4818 = vmatpush1.bf16.msra.mxu1 %v6258_v18  ;;  %4630 = vmatmul.mubr.msk.f32.vlgmr.msra.gmra.mrb[4].mxu0 %vm519_vm0, %v6389_v15 }
 0x191   : > { %4820 = vmatprep.subr.bf16.mxu1 %v6271_v22  ;;  %4846 = vmatpush3.bf16.msra.mxu0 %v6384_v14  ;;  %v1307_v49 = vsub.f32 0.0, %v1306_v47 }
 0x192   : > { %4848 = vmatprep.subr.bf16.mxu0 %v6392_v17  ;;  %940 = vmatprep.mubr.f32.mxu1 %v8470_v11 }
 0x193   : > { %v1308_v52 = vmul.f32 14.222222, %v1307_v49 }
 0x194   : > { %4822 = vmatpush1.bf16.msra.mxu1 %v6277_v24 }
 0x195   : > { %4824 = vmatprep.subr.bf16.mxu1 %v6290_v28  ;;  %4850 = vmatpush3.bf16.msra.mxu0 %v6392_v17  ;;  %v1309_v55 = vmul.f32 1.442695, %v1308_v52 }
 0x196   : > { %4852 = vmatprep.subr.bf16.mxu0 %v6406_v21 }
 0x197   : > { %6098 = vpow2.f32 %v1309_v55 }
 0x198   : > { %4826 = vmatpush1.bf16.msra.mxu1 %v6295_v30 }
 0x199   : > { %4828 = vmatprep.subr.bf16.mxu1 %v6307_v34  ;;  %4854 = vmatpush3.bf16.msra.mxu0 %v6406_v21 }
 0x19a   : > { %4856 = vmatprep.subr.bf16.mxu0 %v6416_v26 }
 0x19c   : > { %4830 = vmatpush1.bf16.msra.mxu1 %v6313_v36 }
 0x19d   : > { %4832 = vmatprep.subr.bf16.mxu1 %v6322_v39  ;;  %4858 = vmatpush3.bf16.msra.mxu0 %v6416_v26 }
 0x19e   : > { %4860 = vmatprep.subr.bf16.mxu0 %v6426_v31 }
 0x1a0   : > { %4834 = vmatpush1.bf16.msra.mxu1 %v6337_v44 }
 0x1a1   : > { %4836 = vmatprep.subr.bf16.mxu1 %v6340_v45  ;;  %4862 = vmatpush3.bf16.msra.mxu0 %v6426_v31 }
 0x1a2   : > { %4864 = vmatprep.subr.bf16.mxu0 %v6436_v35 }
 0x1a4   : > { %4838 = vmatpush1.bf16.msra.mxu1 %v6349_v48 }
 0x1a5   : > { %4840 = vmatprep.subr.bf16.mxu1 %v6459_v62  ;;  %4866 = vmatpush3.bf16.msra.mxu0 %v6436_v35 }
 0x1a6   : > { %4868 = vmatprep.subr.bf16.mxu0 %v6446_v40 }
 0x1a8   : > { %4842 = vmatpush1.bf16.msra.mxu1 %v6470_v5 }
 0x1a9   : > { %4667 = vmatprep.subr.msk.mxu1 %vm526_vm1, %v1052_v59  ;;  %4870 = vmatpush3.bf16.msra.mxu0 %v6446_v40 }
 0x1aa   : > { %4872 = vmatprep.subr.bf16.mxu0 %v6476_v8 }
 0x1ad   : > { %4874 = vmatpush3.bf16.msra.mxu0 %v6476_v8 }
 0x1ae   : > { %4876 = vmatprep.subr.bf16.mxu0 %v6234_v10 }
 0x25e   : > { %v679_v60 = vpop.f32.mrb[0].mxu1 }
 0x25f   : > { %v681_v61 = vpop.f32.mrb[1].mxu1  ;;  %v4626_v63 = vpop.f32.mrb[2].mxu0 }
 0x260   : > { %v756_v2 = vpop.f32.mrb[3].mxu0 }
 0x261   : > { %v5355_v3 = vpack.i.bf16 %v756_v2, %v681_v61 }
 0x262   : > { %v685_v6 = vpop.f32.mrb[2].mxu1 }
 0x263   : > { %v5360_v7 = vpack.i.bf16 %v685_v6, %v679_v60  ;;  %5356 = vrot.lane.b32.xlu1 %v5355_v3, %s6114_s23  ;;  %v687_v9 = vpop.f32.mrb[3].mxu1  ;;  %v4631_v13 = vpop.f32.mrb[4].mxu0 }
 0x264   : > { %v5365_v19 = vpack.i.bf16 %v4626_v63, %v687_v9  ;;  %v869_v20 = vadd.f32 %v4631_v13, %v6495_v27  ;;  %v859_v23 = vpop.f32.mrb[5].mxu0 }
 0x265   : > { %v868_v25 = vadd.f32 %v859_v23, %v6497_v29 }
 0x266   : > { %v873_v1 = vmul.f32 0.2, %v869_v20  ;;  %5366 = vrot.lane.b32.xlu0 %v5365_v19, %s6114_s23  ;;  %vm871_vm4 = vcmp.ge.f32.partialorder %v869_v20, 0.0 }
 0x267   : > { %vm870_vm5 = vcmp.ge.f32.partialorder %v868_v25, 0.0  ;;  %v872_v32 = vmul.f32 0.2, %v868_v25  ;;  %5361 = vrot.lane.b32.xlu1 %v5360_v7, %s6114_s23 }
 0x268   : > { %v875_v0 = vsel %vm871_vm4, %v869_v20, %v873_v1  ;;  %vm2128_vm4 = vcmask 883712  }
 0x269   : > { %v874_v33 = vsel %vm870_vm5, %v868_v25, %v872_v32  ;;  %vm2318_vm5 = vcmask 744448  }
 0x26a   : > { %941 = vmatmul.mubr.f32.vlgmr.msra.gmra.mrb[4].mxu1 %v874_v33  ;;  %4664 = vmatprep.mubr.f32.mxu0 %v874_v33 }
 0x26b   : > { %4668 = vmatpush3.msk.msra.mxu1 %vm526_vm1, %v1052_v59  ;;  %4665 = vmatmul.mubr.f32.vlgmr.msra.gmra.mrb[6].mxu0 %v875_v0 }
 0x26c   : > { %946 = vmatprep.mubr.f32.mxu1 %v8470_v11  ;;  %4878 = vmatpush1.bf16.msra.mxu0 %v6239_v12 }
 0x26d   : > { %4908 = vmatprep.subr.bf16.mxu1 %v6384_v14  ;;  %4880 = vmatprep.subr.bf16.mxu0 %v6253_v16 }
 0x26e   : > { %947 = vmatmul.mubr.f32.gmra.mrb[6].mxu1 %v875_v0  ;;  %1203 = vmatprep.mubr.f32.mxu0 %v8470_v11 }
 0x26f   : > { %4669 = vmatprep.mubr.msk.f32.mxu1 %vm519_vm0, %v6219_v4 }
 0x270   : > { %4882 = vmatpush1.bf16.msra.mxu0 %v6258_v18 }
 0x271   : > { %4884 = vmatprep.subr.bf16.mxu0 %v6271_v22 }
 0x272   : > { %4670 = vmatmul.mubr.msk.f32.vlgmr.msra.gmra.mrb[8].mxu1 %vm519_vm0, %v6389_v15 }
 0x273   : > { %4910 = vmatpush3.bf16.msra.mxu1 %v6384_v14 }
 0x274   : > { %4912 = vmatprep.subr.bf16.mxu1 %v6392_v17  ;;  %4886 = vmatpush1.bf16.msra.mxu0 %v6277_v24 }
 0x275   : > { %4888 = vmatprep.subr.bf16.mxu0 %v6290_v28 }
 0x277   : > { %4914 = vmatpush3.bf16.msra.mxu1 %v6392_v17 }
 0x278   : > { %4916 = vmatprep.subr.bf16.mxu1 %v6406_v21  ;;  %4890 = vmatpush1.bf16.msra.mxu0 %v6295_v30 }
 0x279   : > { %4892 = vmatprep.subr.bf16.mxu0 %v6307_v34 }
 0x27b   : > { %4918 = vmatpush3.bf16.msra.mxu1 %v6406_v21 }
 0x27c   : > { %4920 = vmatprep.subr.bf16.mxu1 %v6416_v26  ;;  %4894 = vmatpush1.bf16.msra.mxu0 %v6313_v36 }
 0x27d   : > { %4896 = vmatprep.subr.bf16.mxu0 %v6322_v39 }
 0x27f   : > { %4922 = vmatpush3.bf16.msra.mxu1 %v6416_v26 }
 0x280   : > { %4924 = vmatprep.subr.bf16.mxu1 %v6426_v31  ;;  %4898 = vmatpush1.bf16.msra.mxu0 %v6337_v44 }
 0x281   : > { %4900 = vmatprep.subr.bf16.mxu0 %v6340_v45 }
 0x283   : > { %4926 = vmatpush3.bf16.msra.mxu1 %v6426_v31 }
 0x284   : > { %4928 = vmatprep.subr.bf16.mxu1 %v6436_v35  ;;  %4902 = vmatpush1.bf16.msra.mxu0 %v6349_v48 }
 0x285   : > { %4904 = vmatprep.subr.bf16.mxu0 %v6459_v62 }
 0x287   : > { %4930 = vmatpush3.bf16.msra.mxu1 %v6436_v35 }
 0x288   : > { %4932 = vmatprep.subr.bf16.mxu1 %v6446_v40  ;;  %4906 = vmatpush1.bf16.msra.mxu0 %v6470_v5 }
 0x289   : > { %4940 = vmatprep.subr.bf16.mxu0 %v6234_v10  ;;  %v6099_v10 = vpop.eup %6098 }
 0x28a   : > { %v1315_v58 = vmul.f32 %v6099_v10, %v1313_v57 }
 0x28b   : > { %4934 = vmatpush3.bf16.msra.mxu1 %v6446_v40 }
 0x28c   : > { %4936 = vmatprep.subr.bf16.mxu1 %v6476_v8 }
 0x28f   : > { %4938 = vmatpush3.bf16.msra.mxu1 %v6476_v8 }
 0x290   : > { %4707 = vmatprep.subr.msk.mxu1 %vm526_vm1, %v1315_v58 }
 0x2d5   : > { %v6585_v59 = vpop.permute.xlu1 %5356 }
 0x2d9   : > { %v5362_v60 = vpop.permute.xlu1 %5361 }
 0x2da   : > { %v6587_v61 = vunpack.i.h.bf16 %v5362_v60  ;;  %v6589_v54 = vunpack.i.l.bf16 %v5362_v60 }
 0x2dc   : > { %v1677_v56 = vsel %vm1572_vm6, 0.0, %v6587_v61  ;;  %v1676_v63 = vsel %vm1572_vm6, 0.0, %v6589_v54  ;;  %v5005_v2 = vpack.c.bf16 %v6587_v61, %v6589_v54 }
 0x2dd   : > { %v5370_v3 = vpack.i.bf16 %v1677_v56, %v1676_v63 }
 0x2df   : > { %5371 = vrot.lane.b32.xlu1 %v5370_v3, %s6115_s26  ;;  %5376 = vrot.lane.b32.xlu0 %v5370_v3, %s6116_s16 }
 0x2e3   : > { %5381 = vrot.lane.b32.xlu1 %v5370_v3, %s6117_s17  ;;  %5386 = vrot.lane.b32.xlu0 %v5370_v3, %s6118_s18 }
 0x2e7   : > { %5391 = vrot.lane.b32.xlu1 %v5370_v3, %s6119_s19  ;;  %5396 = vrot.lane.b32.xlu0 %v5370_v3, %s6120_s20 }
 0x2eb   : > { %5401 = vrot.lane.b32.xlu1 %v5370_v3, %s6121_s24  ;;  %5406 = vrot.lane.b32.xlu0 %v5370_v3, %s6122_s25 }
 0x33d   : > { %v942_v6 = vpop.f32.mrb[4].mxu1 }
 0x33e   : > { %v944_v7 = vpop.f32.mrb[5].mxu1  ;;  %v4666_v9 = vpop.f32.mrb[6].mxu0 }
 0x33f   : > { %v1019_v13 = vpop.f32.mrb[7].mxu0 }
 0x340   : > { %v5410_v19 = vpack.i.bf16 %v1019_v13, %v944_v7 }
 0x341   : > { %v948_v20 = vpop.f32.mrb[6].mxu1 }
 0x342   : > { %v5415_v23 = vpack.i.bf16 %v948_v20, %v942_v6  ;;  %5411 = vrot.lane.b32.xlu1 %v5410_v19, %s6123_s27  ;;  %v950_v25 = vpop.f32.mrb[7].mxu1 }
 0x343   : > { %v5420_v1 = vpack.i.bf16 %v4666_v9, %v950_v25 }
 0x344   : > { %5416 = vrot.lane.b32.xlu0 %v5415_v23, %s6123_s27 }
 0x345   : > { %v4671_v32 = vpop.f32.mrb[8].mxu1 }
 0x346   : > { %v1132_v33 = vadd.f32 %v4671_v32, %v6495_v27  ;;  %v1122_v0 = vpop.f32.mrb[9].mxu1 }
 0x347   : > { %v1131_v37 = vadd.f32 %v1122_v0, %v6497_v29 }
 0x348   : > { %v1136_v38 = vmul.f32 0.2, %v1132_v33  ;;  %5421 = vrot.lane.b32.xlu0 %v5420_v1, %s6123_s27  ;;  %vm1134_vm7 = vcmp.ge.f32.partialorder %v1132_v33, 0.0 }
 0x349   : > { %vm1133_vm8 = vcmp.ge.f32.partialorder %v1131_v37, 0.0  ;;  %v1135_v41 = vmul.f32 0.2, %v1131_v37 }
 0x34a   : > { %v1138_v43 = vsel %vm1134_vm7, %v1132_v33, %v1136_v38  ;;  %vm1632_vm7 = vcmask 842752  }
 0x34b   : > { %v1137_v42 = vsel %vm1133_vm8, %v1131_v37, %v1135_v41  ;;  %vm1663_vm8 = vcmask 662528  }
 0x34c   : > { %1204 = vmatmul.mubr.f32.vlgmr.msra.gmra.mrb[8].mxu0 %v1137_v42  ;;  %4704 = vmatprep.mubr.f32.mxu1 %v1137_v42 }
 0x34d   : > { %4942 = vmatpush1.bf16.msra.mxu0 %v6239_v12  ;;  %4705 = vmatmul.mubr.f32.vlgmr.msra.gmra.mrb[10].mxu1 %v1138_v43 }
 0x34e   : > { %1209 = vmatprep.mubr.f32.mxu0 %v8470_v11  ;;  %4708 = vmatpush3.msk.msra.mxu1 %vm526_vm1, %v1315_v58  ;;  %vm2033_vm1 = vcmask 891904  }
 0x34f   : > { %4944 = vmatprep.subr.bf16.mxu0 %v6253_v16  ;;  %4709 = vmatprep.mubr.msk.f32.mxu1 %vm519_vm0, %v6219_v4  ;;  %v5367_v4 = vpop.permute.xlu0 %5366  ;;  %v5358_v16 = vunpack.i.l.bf16 %v6585_v59 }
 0x350   : > { %1210 = vmatmul.mubr.f32.gmra.mrb[10].mxu0 %v1138_v43  ;;  %4972 = vmatprep.subr.bf16.mxu1 %v6384_v14  ;;  %v5368_v12 = vunpack.i.l.bf16 %v5367_v4 }
 0x351   : > { %4946 = vmatpush1.bf16.msra.mxu0 %v6258_v18  ;;  %4710 = vmatmul.mubr.msk.f32.vlgmr.msra.gmra.mrb[12].mxu1 %vm519_vm0, %v6389_v15  ;;  %v1573_v18 = vsel %vm1572_vm6, %v6589_v54, %v5358_v16  ;;  %vm1843_vm0 = vcmask 1031168  }
 0x352   : > { %4948 = vmatprep.subr.bf16.mxu0 %v6271_v22  ;;  %4974 = vmatpush3.bf16.msra.mxu1 %v6384_v14  ;;  %v1575_v22 = vsel %vm1572_vm6, %v6587_v61, %v5368_v12 }
 0x353   : > { %4976 = vmatprep.subr.bf16.mxu1 %v6392_v17  ;;  %1466 = vmatprep.mubr.f32.mxu0 %v8470_v11 }
 0x355   : > { %4950 = vmatpush1.bf16.msra.mxu0 %v6277_v24  ;;  %v5003_v24 = vpack.c.bf16 %v1575_v22, %v1573_v18 }
 0x356   : > { %4952 = vmatprep.subr.bf16.mxu0 %v6290_v28  ;;  %4978 = vmatpush3.bf16.msra.mxu1 %v6392_v17  ;;  %v6650_v28 = vpop.permute.xlu0 %5376 }
 0x357   : > { %4980 = vmatprep.subr.bf16.mxu1 %v6406_v21 }
 0x359   : > { %4954 = vmatpush1.bf16.msra.mxu0 %v6295_v30  ;;  %v6652_v30 = vpop.permute.xlu1 %5371 }
 0x35a   : > { %4956 = vmatprep.subr.bf16.mxu0 %v6307_v34  ;;  %4982 = vmatpush3.bf16.msra.mxu1 %v6406_v21  ;;  %v6654_v34 = vpop.permute.xlu0 %5386 }
 0x35b   : > { %4984 = vmatprep.subr.bf16.mxu1 %v6416_v26 }
 0x35d   : > { %4958 = vmatpush1.bf16.msra.mxu0 %v6313_v36  ;;  %v6656_v36 = vpop.permute.xlu1 %5381 }
 0x35e   : > { %4960 = vmatprep.subr.bf16.mxu0 %v6322_v39  ;;  %4986 = vmatpush3.bf16.msra.mxu1 %v6416_v26  ;;  %v6658_v39 = vpop.permute.xlu0 %5396 }
 0x35f   : > { %4988 = vmatprep.subr.bf16.mxu1 %v6426_v31 }
 0x361   : > { %4962 = vmatpush1.bf16.msra.mxu0 %v6337_v44  ;;  %v6660_v44 = vpop.permute.xlu1 %5391 }
 0x362   : > { %4964 = vmatprep.subr.bf16.mxu0 %v6340_v45  ;;  %4990 = vmatpush3.bf16.msra.mxu1 %v6426_v31  ;;  %v6662_v45 = vpop.permute.xlu0 %5406 }
 0x363   : > { %4992 = vmatprep.subr.bf16.mxu1 %v6436_v35 }
 0x365   : > { %4966 = vmatpush1.bf16.msra.mxu0 %v6349_v48  ;;  %v5359_v48 = vunpack.i.h.bf16 %v6585_v59  ;;  %v6665_v14 = vpop.permute.xlu1 %5401 }
 0x366   : > { %4968 = vmatprep.subr.bf16.mxu0 %v6459_v62  ;;  %4994 = vmatpush3.bf16.msra.mxu1 %v6436_v35  ;;  %v5369_v35 = vunpack.i.h.bf16 %v5367_v4 }
 0x367   : > { %4996 = vmatprep.subr.bf16.mxu1 %v6446_v40  ;;  %v1574_v21 = vsel %vm1572_vm6, %v5358_v16, %v5359_v48 }
 0x368   : > { %v1576_v10 = vsel %vm1572_vm6, %v5368_v12, %v5369_v35  ;;  %v5378_v35 = vunpack.i.l.bf16 %v6650_v28  ;;  %vm2413_vm6 = vcmask 736256  }
 0x369   : > { %4970 = vmatpush1.bf16.msra.mxu0 %v6470_v5 }
 0x36a   : > { %5004 = vmatprep.subr.bf16.mxu0 %v5003_v24  ;;  %4998 = vmatpush3.bf16.msra.mxu1 %v6446_v40 }
 0x36b   : > { %5000 = vmatprep.subr.bf16.mxu1 %v6476_v8 }
 0x36e   : > { %5002 = vmatpush3.bf16.msra.mxu1 %v6476_v8 }
 0x3b4   : > { %v6668_v26 = vpop.permute.xlu1 %5411 }
 0x3b5   : > { %v5413_v5 = vunpack.i.l.bf16 %v6668_v26  ;;  %v8473_v49 = vunpack.i.h.bf16 %v6668_v26 }
 0x3b6   : > { %v5417_v15 = vpop.permute.xlu0 %5416 }
 0x3b7   : > { %v5418_v17 = vunpack.i.l.bf16 %v5417_v15  ;;  %v5419_v8 = vunpack.i.h.bf16 %v5417_v15  ;;  %v6698_v60 = vsel %vm1601_vm9, %v5413_v5, %v8473_v49 }
 0x3b9   : > { %v6671_v31 = vsel %vm1601_vm9, %v1574_v21, %v5418_v17  ;;  %v1602_v52 = vsel %vm1601_vm9, %v5418_v17, %v5413_v5  ;;  %v6686_v58 = vsel %vm1601_vm9, %v1576_v10, %v5419_v8  ;;  %v5374_v17 = vunpack.i.h.bf16 %v6652_v30 }
 0x3ba   : > { %v6673_v40 = vpop.permute.xlu0 %5421  ;;  %v5430_v62 = vpack.i.bf16 %v6671_v31, %v1573_v18  ;;  %v6701_v56 = vpack.i.bf16 %v6698_v60, %v1602_v52  ;;  %v5042_v3 = vpack.c.bf16 %v6686_v58, %v6671_v31  ;;  %v5490_v7 = vpack.i.bf16 %v6686_v58, %v1575_v22 }
 0x3bb   : > { %v8472_v46 = vunpack.i.h.bf16 %v6673_v40  ;;  %v5423_v47 = vunpack.i.l.bf16 %v6673_v40  ;;  %v5373_v21 = vunpack.i.l.bf16 %v6652_v30  ;;  %v5379_v31 = vunpack.i.h.bf16 %v6650_v28 }
 0x3bc   : > { %5431 = vrot.lane.b32.xlu0 %v5430_v62, %s6116_s16  ;;  %5426 = vrot.lane.b32.xlu1 %v5430_v62, %s6115_s26  ;;  %v5393_v30 = vunpack.i.l.bf16 %v6660_v44  ;;  %v5398_v58 = vunpack.i.l.bf16 %v6658_v39 }
 0x3bd   : > { %v1604_v55 = vsel %vm1601_vm9, %v5419_v8, %v5423_v47  ;;  %v6691_v59 = vsel %vm1601_vm9, %v5423_v47, %v8472_v46  ;;  %v5384_v8 = vunpack.i.h.bf16 %v6656_v36  ;;  %v5383_v47 = vunpack.i.l.bf16 %v6656_v36 }
 0x3be   : > { %v5040_v57 = vpack.c.bf16 %v1604_v55, %v1602_v52  ;;  %v6704_v63 = vpack.i.bf16 %v6691_v59, %v1604_v55  ;;  %v5389_v52 = vunpack.i.h.bf16 %v6654_v34  ;;  %v5388_v55 = vunpack.i.l.bf16 %v6654_v34 }
 0x3bf   : > { %vm1684_vm9 = vcmask 482304  }
 0x3c0   : > { %5441 = vrot.lane.b32.xlu0 %v5430_v62, %s6118_s18  ;;  %5436 = vrot.lane.b32.xlu1 %v5430_v62, %s6117_s17  ;;  %vm5185_vm10 = vmpackc.low %vm1684_vm9, %vm1684_vm9 }
 0x3c1   : > { %5041 = vmatprep.subr.bf16.mxu1 %v5040_v57 }
 0x3c4   : > { %5451 = vrot.lane.b32.xlu0 %v5430_v62, %s6120_s20  ;;  %5446 = vrot.lane.b32.xlu1 %v5430_v62, %s6119_s19 }
 0x3c8   : > { %5461 = vrot.lane.b32.xlu0 %v5430_v62, %s6122_s25  ;;  %5456 = vrot.lane.b32.xlu1 %v5430_v62, %s6121_s24 }
 0x3cc   : > { %5471 = vrot.lane.b32.xlu0 %v6701_v56, %s6116_s16  ;;  %5466 = vrot.lane.b32.xlu1 %v6701_v56, %s6115_s26 }
 0x3d0   : > { %5481 = vrot.lane.b32.xlu0 %v6701_v56, %s6118_s18  ;;  %5476 = vrot.lane.b32.xlu1 %v6701_v56, %s6117_s17 }
 0x3d4   : > { %5486 = vrot.lane.b32.xlu1 %v6701_v56, %s6119_s19  ;;  %5491 = vrot.lane.b32.xlu0 %v5490_v7, %s6115_s26 }
 0x3d8   : > { %5496 = vrot.lane.b32.xlu1 %v5490_v7, %s6116_s16  ;;  %5501 = vrot.lane.b32.xlu0 %v5490_v7, %s6117_s17 }
 0x3dc   : > { %5506 = vrot.lane.b32.xlu1 %v5490_v7, %s6118_s18  ;;  %5511 = vrot.lane.b32.xlu0 %v5490_v7, %s6119_s19 }
 0x3e0   : > { %5516 = vrot.lane.b32.xlu1 %v5490_v7, %s6120_s20  ;;  %5521 = vrot.lane.b32.xlu0 %v5490_v7, %s6121_s24 }
 0x3e4   : > { %5526 = vrot.lane.b32.xlu1 %v5490_v7, %s6122_s25  ;;  %5531 = vrot.lane.b32.xlu0 %v6704_v63, %s6115_s26 }
 0x3e8   : > { %5536 = vrot.lane.b32.xlu1 %v6704_v63, %s6116_s16  ;;  %5541 = vrot.lane.b32.xlu0 %v6704_v63, %s6117_s17 }
 0x3ec   : > { %5546 = vrot.lane.b32.xlu1 %v6704_v63, %s6118_s18 }
 0x41f   : > { %v1205_v9 = vpop.f32.mrb[8].mxu0 }
 0x420   : > { %v1207_v13 = vpop.f32.mrb[9].mxu0  ;;  %v4706_v19 = vpop.f32.mrb[10].mxu1 }
 0x421   : > { %v5550_v20 = vpack.i.bf16 %v1207_v13, %v1205_v9  ;;  %v1282_v23 = vpop.f32.mrb[11].mxu1 }
 0x422   : > { %v5555_v25 = vpack.i.bf16 %v4706_v19, %v1282_v23 }
 0x423   : > { %v1211_v1 = vpop.f32.mrb[10].mxu0  ;;  %5551 = vrot.lane.b32.xlu1 %v5550_v20, %s6124_s28 }
 0x424   : > { %v1213_v32 = vpop.f32.mrb[11].mxu0  ;;  %v4711_v33 = vpop.f32.mrb[12].mxu1 }
 0x425   : > { %v5560_v0 = vpack.i.bf16 %v1213_v32, %v1211_v1  ;;  %v1395_v37 = vadd.f32 %v4711_v33, %v6495_v27  ;;  %v1385_v38 = vpop.f32.mrb[13].mxu1 }
 0x426   : > { %v1394_v41 = vadd.f32 %v1385_v38, %v6497_v29  ;;  %v6754_v29 = vld [vmem:[%s8460_s3 + $0x8] sm:$0xff] }
 0x427   : > { %5556 = vrot.lane.b32.xlu1 %v5555_v25, %s6124_s28  ;;  %5561 = vrot.lane.b32.xlu0 %v5560_v0, %s6124_s28  ;;  %v1399_v42 = vmul.f32 0.2, %v1395_v37  ;;  %vm1397_vm12 = vcmp.ge.f32.partialorder %v1395_v37, 0.0 }
 0x428   : > { %vm1396_vm11 = vcmp.ge.f32.partialorder %v1394_v41, 0.0  ;;  %v1398_v43 = vmul.f32 0.2, %v1394_v41 }
 0x429   : > { %v1401_v27 = vsel %vm1397_vm12, %v1395_v37, %v1399_v42 }
 0x42a   : > { %v1400_v4 = vsel %vm1396_vm11, %v1394_v41, %v1398_v43 }
 0x42b   : > { %1467 = vmatmul.mubr.f32.vlgmr.msra.gmra.mrb[12].mxu0 %v1400_v4  ;;  %4744 = vmatprep.mubr.f32.mxu1 %v1400_v4 }
 0x42c   : > { %5571 = vrot.lane.b32.xlu1 %v6701_v56, %s6120_s20  ;;  %5566 = vrot.lane.b32.xlu0 %v6704_v63, %s6119_s19 }
 0x42d   : > { %5007 = vmatpush1.bf16.msk.msra.mxu0 %vm5006_vm13, %v5005_v2  ;;  %4745 = vmatmul.mubr.f32.vlgmr.msra.gmra.mrb[14].mxu1 %v1401_v27 }
 0x42e   : > { %5043 = vmatpush1.bf16.msra.mxu1 %v5042_v3  ;;  %1472 = vmatprep.mubr.f32.mxu0 %v8470_v11  ;;  %v6757_v12 = vpop.permute.xlu0 %5431  ;;  %v6759_v16 = vpop.permute.xlu1 %5426 }
 0x42f   : > { %1473 = vmatmul.mubr.f32.gmra.mrb[14].mxu0 %v1401_v27  ;;  %4480 = vmatprep.mubr.msk.f32.mxu1 %vm2465_vm14, %v6754_v29  ;;  %v5428_v28 = vunpack.i.l.bf16 %v6759_v16  ;;  %v5429_v7 = vunpack.i.h.bf16 %v6759_v16  ;;  %v5433_v13 = vunpack.i.l.bf16 %v6757_v12  ;;  %v5434_v1 = vunpack.i.h.bf16 %v6757_v12 }
 0x430   : > { %5576 = vrot.lane.b32.xlu0 %v6704_v63, %s6120_s20  ;;  %4479 = vmatprep.mubr.msk.f32.mxu0 %vm2465_vm14, %v6754_v29 }
 0x431   : > { %v1749_v32 = vsel %vm1748_vm15, %v5373_v21, %v5428_v28  ;;  %v1750_v38 = vsel %vm1748_vm15, %v5428_v28, %v5429_v7  ;;  %v1844_v42 = vsel %vm1843_vm0, %v5378_v35, %v5433_v13 }
 0x432   : > { %v6767_v61 = vpop.permute.xlu0 %5441  ;;  %v6769_v54 = vpop.permute.xlu1 %5436 }
 0x433   : > { %v5443_v33 = vunpack.i.l.bf16 %v6767_v61  ;;  %v5438_v0 = vunpack.i.l.bf16 %v6769_v54  ;;  %v8476_v43 = vunpack.i.h.bf16 %v6769_v54 }
 0x435   : > { %v6833_v35 = vsel %vm2033_vm1, %v5388_v55, %v5443_v33 }
 0x436   : > { %v6771_v2 = vpop.permute.xlu0 %5451  ;;  %v6773_v18 = vpop.permute.xlu1 %5446 }
 0x437   : > { %v5453_v49 = vunpack.i.l.bf16 %v6771_v2  ;;  %v8480_v9 = vunpack.i.h.bf16 %v6771_v2 }
 0x43a   : > { %v6775_v22 = vpop.permute.xlu0 %5461  ;;  %v6777_v24 = vpop.permute.xlu1 %5456 }
 0x43e   : > { %v6779_v48 = vpop.permute.xlu0 %5471  ;;  %v6781_v15 = vpop.permute.xlu1 %5466 }
 0x43f   : > { %v8483_v10 = vunpack.i.h.bf16 %v6779_v48 }
 0x442   : > { %v6787_v62 = vpop.permute.xlu0 %5481  ;;  %v6789_v5 = vpop.permute.xlu1 %5476 }
 0x446   : > { %v6804_v19 = vpop.permute.xlu1 %5486  ;;  %v6806_v20 = vpop.permute.xlu0 %5491 }
 0x447   : > { %v8479_v23 = vunpack.i.h.bf16 %v6806_v20  ;;  %v5493_v25 = vunpack.i.l.bf16 %v6806_v20 }
 0x449   : > { %v1760_v37 = vsel %vm1748_vm15, %v5374_v17, %v5493_v25  ;;  %v1761_v41 = vsel %vm1748_vm15, %v5493_v25, %v8479_v23  ;;  %v8477_v25 = vunpack.i.h.bf16 %v6767_v61  ;;  %v5464_v23 = vunpack.i.h.bf16 %v6775_v22 }
 0x44a   : > { %v6823_v4 = vpop.permute.xlu1 %5496  ;;  %v6825_v27 = vpop.permute.xlu0 %5501  ;;  %v5008_v21 = vpack.c.bf16 %v1761_v41, %v1750_v38  ;;  %v5010_v11 = vpack.c.bf16 %v1760_v37, %v1749_v32  ;;  %v1845_v32 = vsel %vm1843_vm0, %v5433_v13, %v5434_v1  ;;  %v1939_v37 = vsel %vm1938_vm2, %v5383_v47, %v5438_v0 }
 0x44b   : > { %v8475_v17 = vunpack.i.h.bf16 %v6823_v4  ;;  %v5498_v6 = vunpack.i.l.bf16 %v6823_v4  ;;  %v8474_v28 = vunpack.i.h.bf16 %v6825_v27  ;;  %v5503_v46 = vunpack.i.l.bf16 %v6825_v27 }
 0x44c   : > { %5009 = vmatprep.subr.bf16.mxu0 %v5008_v21 }
 0x44d   : > { %v1855_v38 = vsel %vm1843_vm0, %v5379_v31, %v5498_v6  ;;  %5011 = vmatpush1.bf16.msra.mxu0 %v5010_v11  ;;  %v1856_v41 = vsel %vm1843_vm0, %v5498_v6, %v8475_v17  ;;  %v1951_v55 = vsel %vm1938_vm2, %v5503_v46, %v8474_v28  ;;  %v1940_v11 = vsel %vm1938_vm2, %v5438_v0, %v8476_v43 }
 0x44e   : > { %v6848_v21 = vpop.permute.xlu1 %5506  ;;  %v6850_v3 = vpop.permute.xlu0 %5511  ;;  %v5012_v13 = vpack.c.bf16 %v1856_v41, %v1845_v32  ;;  %v5014_v57 = vpack.c.bf16 %v1855_v38, %v1844_v42  ;;  %v8487_v31 = vunpack.i.h.bf16 %v6773_v18  ;;  %v5448_v6 = vunpack.i.l.bf16 %v6773_v18 }
 0x44f   : > { %v8478_v47 = vunpack.i.h.bf16 %v6848_v21  ;;  %v5508_v28 = vunpack.i.l.bf16 %v6848_v21  ;;  %v6860_v17 = vsel %vm2223_vm3, %v5398_v58, %v5453_v49  ;;  %v1950_v32 = vsel %vm1938_vm2, %v5384_v8, %v5503_v46 }
 0x450   : > { %5013 = vmatprep.subr.bf16.mxu0 %v5012_v13  ;;  %v5016_v42 = vpack.c.bf16 %v1951_v55, %v1940_v11  ;;  %v2035_v0 = vsel %vm2033_vm1, %v5443_v33, %v8477_v25  ;;  %v8482_v38 = vunpack.i.h.bf16 %v6777_v24  ;;  %v8486_v41 = vunpack.i.h.bf16 %v6850_v3 }
 0x451   : > { %v5513_v43 = vunpack.i.l.bf16 %v6850_v3  ;;  %5015 = vmatpush1.bf16.msra.mxu0 %v5014_v57  ;;  %v2046_v58 = vsel %vm2033_vm1, %v5508_v28, %v8478_v47  ;;  %v5473_v46 = vunpack.i.l.bf16 %v6779_v48  ;;  %v8481_v8 = vunpack.i.h.bf16 %v6781_v15 }
 0x452   : > { %v5468_v55 = vunpack.i.l.bf16 %v6781_v15  ;;  %v6878_v33 = vpop.permute.xlu1 %5516  ;;  %v6880_v13 = vpop.permute.xlu0 %5521  ;;  %5017 = vmatprep.subr.bf16.mxu0 %v5016_v42  ;;  %v2129_v57 = vsel %vm2128_vm4, %v5393_v30, %v5448_v6  ;;  %v5018_v11 = vpack.c.bf16 %v1950_v32, %v1939_v37  ;;  %v2130_v25 = vsel %vm2128_vm4, %v5448_v6, %v8487_v31 }
 0x453   : > { %v2225_v47 = vsel %vm2223_vm3, %v5453_v49, %v8480_v9  ;;  %v2045_v42 = vsel %vm2033_vm1, %v5389_v52, %v5508_v28  ;;  %v5020_v36 = vpack.c.bf16 %v2046_v58, %v2035_v0  ;;  %v8485_v37 = vunpack.i.h.bf16 %v6878_v33 }
 0x454   : > { %v5518_v32 = vunpack.i.l.bf16 %v6878_v33  ;;  %v2141_v49 = vsel %vm2128_vm4, %v5513_v43, %v8486_v41  ;;  %v1846_v6 = vsel %vm1843_vm0, %v5434_v1, %v5473_v46  ;;  %v1751_v34 = vsel %vm1748_vm15, %v5429_v7, %v5468_v55 }
 0x455   : > { %5019 = vmatpush1.bf16.msra.mxu0 %v5018_v11  ;;  %v1752_v0 = vsel %vm1748_vm15, %v5468_v55, %v8481_v8  ;;  %v8498_v58 = vunpack.i.l.bf16 %v6777_v24  ;;  %v8499_v1 = vunpack.i.h.bf16 %v6660_v44  ;;  %v5524_v9 = vunpack.i.h.bf16 %v6880_v13 }
 0x456   : > { %v6908_v52 = vpop.permute.xlu1 %5526  ;;  %v6910_v28 = vpop.permute.xlu0 %5531  ;;  %5021 = vmatprep.subr.bf16.mxu0 %v5020_v36  ;;  %v5022_v36 = vpack.c.bf16 %v2045_v42, %v6833_v35  ;;  %v5523_v55 = vunpack.i.l.bf16 %v6880_v13  ;;  %v5024_v8 = vpack.c.bf16 %v2141_v49, %v2130_v25  ;;  %v5479_v44 = vunpack.i.h.bf16 %v6789_v5 }
 0x457   : > { %v2320_v12 = vsel %vm2318_vm5, %v8498_v58, %v8482_v38  ;;  %v2140_v16 = vsel %vm2128_vm4, %v8499_v1, %v5513_v43  ;;  %v8484_v7 = vunpack.i.h.bf16 %v6910_v28  ;;  %v5533_v11 = vunpack.i.l.bf16 %v6910_v28 }
 0x458   : > { %v1847_v58 = vsel %vm1843_vm0, %v5473_v46, %v8483_v10  ;;  %v8500_v43 = vunpack.i.h.bf16 %v6806_v20  ;;  %v2236_v42 = vsel %vm2223_vm3, %v5518_v32, %v8485_v37  ;;  %v5478_v25 = vunpack.i.l.bf16 %v6789_v5 }
 0x459   : > { %5023 = vmatpush1.bf16.msra.mxu0 %v5022_v36  ;;  %v1763_v35 = vsel %vm1748_vm15, %v5533_v11, %v8484_v7  ;;  %v5026_v20 = vpack.c.bf16 %v2140_v16, %v2129_v57  ;;  %v5484_v37 = vunpack.i.h.bf16 %v6787_v62  ;;  %v8501_v41 = vunpack.i.h.bf16 %v6658_v39 }
 0x45a   : > { %v1762_v1 = vsel %vm1748_vm15, %v8500_v43, %v5533_v11  ;;  %v6942_v49 = vpop.permute.xlu1 %5536  ;;  %v6944_v46 = vpop.permute.xlu0 %5541  ;;  %5025 = vmatprep.subr.bf16.mxu0 %v5024_v8  ;;  %v5044_v38 = vpack.c.bf16 %v1763_v35, %v1752_v0  ;;  %v5028_v30 = vpack.c.bf16 %v2236_v42, %v2225_v47  ;;  %v2331_v8 = vsel %vm2318_vm5, %v5523_v55, %v5524_v9 }
 0x45b   : > { %v5046_v10 = vpack.c.bf16 %v1762_v1, %v1751_v34  ;;  %v5539_v36 = vunpack.i.h.bf16 %v6942_v49  ;;  %v5538_v43 = vunpack.i.l.bf16 %v6942_v49  ;;  %v5544_v11 = vunpack.i.h.bf16 %v6944_v46 }
 0x45c   : > { %v5543_v7 = vunpack.i.l.bf16 %v6944_v46  ;;  %v2235_v31 = vsel %vm2223_vm3, %v8501_v41, %v5518_v32  ;;  %5045 = vmatprep.subr.bf16.mxu1 %v5044_v38  ;;  %v5529_v57 = vunpack.i.h.bf16 %v6908_v52  ;;  %v5528_v34 = vunpack.i.l.bf16 %v6908_v52 }
 0x45d   : > { %v8502_v0 = vunpack.i.h.bf16 %v6823_v4  ;;  %5027 = vmatpush1.bf16.msra.mxu0 %v5026_v20  ;;  %5047 = vmatpush1.bf16.msra.mxu1 %v5046_v10  ;;  %v1858_v39 = vsel %vm1843_vm0, %v5538_v43, %v5539_v36  ;;  %v5483_v47 = vunpack.i.l.bf16 %v6787_v62  ;;  %v5030_v10 = vpack.c.bf16 %v2235_v31, %v6860_v17 }
 0x45e   : > { %v6966_v38 = vpop.permute.xlu1 %5546  ;;  %5029 = vmatprep.subr.bf16.mxu0 %v5028_v30  ;;  %v5048_v41 = vpack.c.bf16 %v1858_v39, %v1847_v58  ;;  %v1953_v1 = vsel %vm1938_vm2, %v5543_v7, %v5544_v11  ;;  %v1942_v42 = vsel %vm1938_vm2, %v5478_v25, %v5479_v44  ;;  %v8503_v20 = vunpack.i.h.bf16 %v6665_v14 }
 0x45f   : > { %v1857_v16 = vsel %vm1843_vm0, %v8502_v0, %v5538_v43  ;;  %v5549_v4 = vunpack.i.h.bf16 %v6966_v38  ;;  %v5548_v35 = vunpack.i.l.bf16 %v6966_v38  ;;  %v5032_v43 = vpack.c.bf16 %v2331_v8, %v2320_v12 }
 0x460   : > { %v5050_v32 = vpack.c.bf16 %v1857_v16, %v1846_v6  ;;  %v2330_v30 = vsel %vm2318_vm5, %v8503_v20, %v5523_v55  ;;  %v8504_v6 = vunpack.i.h.bf16 %v6825_v27  ;;  %5049 = vmatprep.subr.bf16.mxu1 %v5048_v41  ;;  %v5052_v0 = vpack.c.bf16 %v1953_v1, %v1942_v42 }
 0x461   : > { %5031 = vmatpush1.bf16.msra.mxu0 %v5030_v10  ;;  %v2426_v17 = vsel %vm2413_vm6, %v5528_v34, %v5529_v57  ;;  %v2048_v31 = vsel %vm2033_vm1, %v5548_v35, %v5549_v4  ;;  %v5409_v16 = vunpack.i.h.bf16 %v6662_v45  ;;  %v5408_v55 = vunpack.i.l.bf16 %v6662_v45 }
 0x462   : > { %v1952_v58 = vsel %vm1938_vm2, %v8504_v6, %v5543_v7  ;;  %5051 = vmatpush1.bf16.msra.mxu1 %v5050_v32  ;;  %v8505_v27 = vunpack.i.l.bf16 %v6777_v24  ;;  %v8506_v7 = vunpack.i.l.bf16 %v6665_v14  ;;  %v8507_v8 = vunpack.i.h.bf16 %v6769_v54  ;;  %5033 = vmatprep.subr.bf16.mxu0 %v5032_v43 }
 0x463   : > { %5053 = vmatprep.subr.bf16.mxu1 %v5052_v0  ;;  %v8508_v1 = vunpack.i.l.bf16 %v6775_v22  ;;  %v2037_v14 = vsel %vm2033_vm1, %v5483_v47, %v5484_v37  ;;  %v2425_v10 = vsel %vm2413_vm6, %v5409_v16, %v5528_v34  ;;  %v8509_v54 = vunpack.i.h.bf16 %v6848_v21  ;;  %v7020_v21 = vld [vmem:[%s8460_s3] sm:$0xff] }
 0x464   : > { %v2319_v12 = vsel %vm2318_vm5, %v8506_v7, %v8505_v27  ;;  %v1941_v39 = vsel %vm1938_vm2, %v8507_v8, %v5478_v25  ;;  %v5056_v20 = vpack.c.bf16 %v2048_v31, %v2037_v14  ;;  %v8512_v31 = vunpack.i.h.bf16 %v6668_v26 }
 0x465   : > { %v5034_v41 = vpack.c.bf16 %v2330_v30, %v2319_v12  ;;  %v5054_v32 = vpack.c.bf16 %v1952_v58, %v1941_v39  ;;  %v2415_v45 = vsel %vm2413_vm6, %v8508_v1, %v5464_v23  ;;  %v2047_v25 = vsel %vm2033_vm1, %v8509_v54, %v5548_v35 }
 0x466   : > { %v5036_v42 = vpack.c.bf16 %v2426_v17, %v2415_v45  ;;  %v8510_v30 = vmov %v8508_v1  ;;  %v8511_v58 = vunpack.i.h.bf16 %v6767_v61  ;;  %v5488_v27 = vunpack.i.l.bf16 %v6804_v19 }
 0x467   : > { %5035 = vmatpush1.bf16.msra.mxu0 %v5034_v41  ;;  %5055 = vmatpush1.bf16.msra.mxu1 %v5054_v32  ;;  %v2414_v6 = vsel %vm2413_vm6, %v5408_v55, %v8510_v30  ;;  %v5489_v55 = vunpack.i.h.bf16 %v6804_v19 }
 0x468   : > { %v2036_v43 = vsel %vm2033_vm1, %v8511_v58, %v5483_v47  ;;  %5037 = vmatprep.subr.bf16.mxu0 %v5036_v42  ;;  %5057 = vmatprep.subr.bf16.mxu1 %v5056_v20  ;;  %v5038_v0 = vpack.c.bf16 %v2425_v10, %v2414_v6  ;;  %v8513_v10 = vunpack.i.h.bf16 %v6673_v40  ;;  %v8514_v6 = vunpack.i.h.bf16 %v6773_v18 }
 0x469   : > { %v5058_v34 = vpack.c.bf16 %v2047_v25, %v2036_v43  ;;  %v2132_v40 = vsel %vm2128_vm4, %v5488_v27, %v5489_v55 }
 0x46a   : > { %v2131_v58 = vsel %vm2128_vm4, %v8514_v6, %v5488_v27 }
 0x46b   : > { %5039 = vmatpush1.bf16.msra.mxu0 %v5038_v0  ;;  %5059 = vmatpush1.bf16.msra.mxu1 %v5058_v34 }
 0x46e   : > { %2534 = vmatmul.mubr.f32.vlgmr.msra.gmra.mrb[16].mxu0 %v7020_v21 }
 0x46f   : > { %4481 = vmatprep.mubr.msk.f32.mxu0 %vm2465_vm14, %v6754_v29 }
 0x495   : > { %v5552_v61 = vpop.permute.xlu1 %5551 }
 0x496   : > { %v5554_v35 = vunpack.i.h.bf16 %v5552_v61  ;;  %v5553_v47 = vunpack.i.l.bf16 %v5552_v61 }
 0x498   : > { %v7026_v17 = vsel %vm1632_vm7, %v5553_v47, %v5554_v35  ;;  %v1680_v16 = vsel %vm1632_vm7, %v8512_v31, %v5553_v47  ;;  %v8515_v47 = vunpack.i.h.bf16 %v6850_v3  ;;  %v8517_v3 = vunpack.i.h.bf16 %v6771_v2 }
 0x499   : > { %v7033_v7 = vpop.permute.xlu1 %5556  ;;  %v5562_v12 = vpop.permute.xlu0 %5561  ;;  %v7036_v8 = vpack.i.bf16 %v7026_v17, %v1680_v16 }
 0x49a   : > { %v5559_v39 = vunpack.i.h.bf16 %v7033_v7  ;;  %v5558_v41 = vunpack.i.l.bf16 %v7033_v7  ;;  %v5564_v32 = vunpack.i.h.bf16 %v5562_v12  ;;  %v5563_v1 = vunpack.i.l.bf16 %v5562_v12 }
 0x49b   : > { %5581 = vrot.lane.b32.xlu1 %v7036_v8, %s6115_s26 }
 0x49c   : > { %v7045_v26 = vsel %vm1632_vm7, %v5554_v35, %v5558_v41  ;;  %v7050_v45 = vsel %vm1632_vm7, %v5564_v32, %v5559_v39  ;;  %v7053_v14 = vsel %vm1632_vm7, %v5563_v1, %v5564_v32  ;;  %v1681_v54 = vsel %vm1632_vm7, %v8513_v10, %v5563_v1 }
 0x49d   : > { %v7059_v25 = vpack.i.bf16 %v7053_v14, %v1681_v54  ;;  %v5076_v42 = vpack.c.bf16 %v1681_v54, %v1680_v16  ;;  %v5112_v18 = vpack.c.bf16 %v7050_v45, %v7045_v26  ;;  %v8516_v16 = vpack.c.bf16 %v6691_v59, %v6698_v60 }
 0x49e   : > { %v7061_v20 = vpop.permute.xlu1 %5571  ;;  %v7063_v30 = vpop.permute.xlu0 %5566  ;;  %v8518_v60 = vunpack.i.h.bf16 %v6878_v33 }
 0x49f   : > { %v8493_v43 = vunpack.i.h.bf16 %v7063_v30  ;;  %v5568_v0 = vunpack.i.l.bf16 %v7063_v30  ;;  %5586 = vrot.lane.b32.xlu1 %v7036_v8, %s6116_s16  ;;  %5591 = vrot.lane.b32.xlu0 %v7059_v25, %s6115_s26  ;;  %v8492_v61 = vunpack.i.h.bf16 %v7061_v20  ;;  %v5573_v35 = vunpack.i.l.bf16 %v7061_v20 }
 0x4a0   : > { %5077 = vmatprep.subr.bf16.mxu0 %v5076_v42 }
 0x4a1   : > { %v2142_v31 = vsel %vm2128_vm4, %v8515_v47, %v5568_v0  ;;  %5079 = vmatpush1.bf16.msra.mxu0 %v8516_v16  ;;  %v2143_v27 = vsel %vm2128_vm4, %v5568_v0, %v8493_v43  ;;  %v2226_v59 = vsel %vm2223_vm3, %v8517_v3, %v5573_v35  ;;  %v2227_v6 = vsel %vm2223_vm3, %v5573_v35, %v8492_v61 }
 0x4a2   : > { %v7092_v12 = vpop.permute.xlu0 %5576  ;;  %v5060_v32 = vpack.c.bf16 %v2143_v27, %v2132_v40  ;;  %v5062_v1 = vpack.c.bf16 %v2142_v31, %v2131_v58  ;;  %v8522_v43 = vunpack.i.h.bf16 %v6777_v24 }
 0x4a3   : > { %v8491_v10 = vunpack.i.h.bf16 %v7092_v12  ;;  %v5578_v54 = vunpack.i.l.bf16 %v7092_v12  ;;  %5611 = vrot.lane.b32.xlu1 %v6701_v56, %s6121_s24 }
 0x4a4   : > { %5061 = vmatprep.subr.bf16.mxu1 %v5060_v32 }
 0x4a5   : > { %v2237_v42 = vsel %vm2223_vm3, %v8518_v60, %v5578_v54  ;;  %5063 = vmatpush1.bf16.msra.mxu1 %v5062_v1  ;;  %v2238_v58 = vsel %vm2223_vm3, %v5578_v54, %v8491_v10 }
 0x4a6   : > { %v5064_v0 = vpack.c.bf16 %v2238_v58, %v2227_v6  ;;  %v5066_v40 = vpack.c.bf16 %v2237_v42, %v2226_v59  ;;  %v8519_v6 = vunpack.i.h.bf16 %v6781_v15 }
 0x4a7   : > { %5621 = vrot.lane.b32.xlu1 %v7036_v8, %s6117_s17 }
 0x4a8   : > { %5065 = vmatprep.subr.bf16.mxu1 %v5064_v0  ;;  %v8520_v0 = vunpack.i.h.bf16 %v6910_v28 }
 0x4a9   : > { %5067 = vmatpush1.bf16.msra.mxu1 %v5066_v40 }
 0x4ab   : > { %5631 = vrot.lane.b32.xlu1 %v6701_v56, %s6122_s25 }
 0x4af   : > { %5641 = vrot.lane.b32.xlu1 %v7036_v8, %s6118_s18 }
 0x4fe   : > { %v1468_v2 = vpop.f32.mrb[12].mxu0 }
 0x4ff   : > { %v1470_v33 = vpop.f32.mrb[13].mxu0 }
 0x500   : > { %v4746_v35 = vpop.f32.mrb[14].mxu1 }
 0x501   : > { %v1545_v47 = vpop.f32.mrb[15].mxu1 }
 0x502   : > { %v5595_v31 = vpack.i.bf16 %v1545_v47, %v1470_v33  ;;  %v1474_v16 = vpop.f32.mrb[14].mxu0 }
 0x503   : > { %v5600_v27 = vpack.i.bf16 %v1474_v16, %v1468_v2  ;;  %v1476_v32 = vpop.f32.mrb[15].mxu0 }
 0x504   : > { %v5650_v1 = vpack.i.bf16 %v4746_v35, %v1476_v32  ;;  %5596 = vrot.lane.b32.xlu0 %v5595_v31, %s6125_s15 }
 0x506   : > { %5651 = vrot.lane.b32.xlu1 %v5650_v1, %s6125_s15 }
 0x508   : > { %5601 = vrot.lane.b32.xlu0 %v5600_v27, %s6125_s15  ;;  %s6127_s15 = smov 14  }
 0x50a   : > { %5656 = vrot.lane.b32.xlu1 %v7036_v8, %s6119_s19 }
 0x50c   : > { %5606 = vrot.lane.b32.xlu0 %v7059_v25, %s6116_s16 }
 0x50d   : > { %v7120_v56 = vpop.permute.xlu1 %5581 }
 0x50e   : > { %5666 = vrot.lane.b32.xlu1 %v7036_v8, %s6120_s20  ;;  %v8489_v54 = vunpack.i.h.bf16 %v7120_v56  ;;  %v5583_v3 = vunpack.i.l.bf16 %v7120_v56 }
 0x510   : > { %5616 = vrot.lane.b32.xlu0 %v6704_v63, %s6121_s24  ;;  %v1753_v58 = vsel %vm1748_vm15, %v8519_v6, %v5583_v3  ;;  %v1754_v2 = vsel %vm1748_vm15, %v5583_v3, %v8489_v54 }
 0x511   : > { %v7128_v59 = vpop.permute.xlu0 %5591  ;;  %v7162_v15 = vpop.permute.xlu1 %5586 }
 0x512   : > { %v8488_v60 = vunpack.i.h.bf16 %v7128_v59  ;;  %v5593_v42 = vunpack.i.l.bf16 %v7128_v59  ;;  %5676 = vrot.lane.b32.xlu1 %v7036_v8, %s6121_s24 }
 0x514   : > { %v1764_v40 = vsel %vm1748_vm15, %v8520_v0, %v5593_v42  ;;  %5626 = vrot.lane.b32.xlu0 %v7059_v25, %s6117_s17  ;;  %v1765_v33 = vsel %vm1748_vm15, %v5593_v42, %v8488_v60  ;;  %v5588_v42 = vunpack.i.l.bf16 %v7162_v15  ;;  %v8521_v60 = vunpack.i.h.bf16 %v6779_v48 }
 0x515   : > { %v5080_v35 = vpack.c.bf16 %v1765_v33, %v1754_v2  ;;  %v5082_v47 = vpack.c.bf16 %v1764_v40, %v1753_v58  ;;  %v7164_v28 = vpop.permute.xlu1 %5611 }
 0x516   : > { %5686 = vrot.lane.b32.xlu1 %v7036_v8, %s6122_s25  ;;  %v1848_v7 = vsel %vm1843_vm0, %v8521_v60, %v5588_v42 }
 0x517   : > { %5081 = vmatprep.subr.bf16.mxu0 %v5080_v35 }
 0x518   : > { %5636 = vrot.lane.b32.xlu0 %v6704_v63, %s6122_s25  ;;  %5083 = vmatpush1.bf16.msra.mxu0 %v5082_v47 }
 0x519   : > { %v7166_v63 = vpop.permute.xlu1 %5621 }
 0x51c   : > { %5646 = vrot.lane.b32.xlu0 %v7059_v25, %s6118_s18 }
 0x51d   : > { %v7168_v31 = vpop.permute.xlu1 %5631 }
 0x51e   : > { %v5634_v13 = vunpack.i.h.bf16 %v7168_v31 }
 0x520   : > { %5661 = vrot.lane.b32.xlu0 %v7059_v25, %s6119_s19 }
 0x521   : > { %v7178_v6 = vpop.permute.xlu1 %5641 }
 0x524   : > { %5671 = vrot.lane.b32.xlu0 %v7059_v25, %s6120_s20 }
 0x528   : > { %5681 = vrot.lane.b32.xlu0 %v7059_v25, %s6121_s24 }
 0x52c   : > { %5691 = vrot.lane.b32.xlu0 %v7059_v25, %s6122_s25  ;;  %v8495_v25 = vunpack.i.h.bf16 %v7162_v15 }
 0x576   : > { %v5597_v8 = vpop.permute.xlu0 %5596 }
 0x577   : > { %v7170_v16 = vunpack.i.h.bf16 %v5597_v8  ;;  %v5598_v27 = vunpack.i.l.bf16 %v5597_v8 }
 0x579   : > { %v7182_v58 = vsel %vm1663_vm8, %v5598_v27, %v7170_v16 }
 0x57a   : > { %v7172_v32 = vpop.permute.xlu0 %5601 }
 0x57b   : > { %v8490_v1 = vunpack.i.h.bf16 %v7172_v32  ;;  %v5603_v3 = vunpack.i.l.bf16 %v7172_v32 }
 0x57d   : > { %v7185_v0 = vsel %vm1663_vm8, %v5603_v3, %v5598_v27  ;;  %v7190_v40 = vsel %vm1663_vm8, %v5558_v41, %v5603_v3  ;;  %v7207_v47 = vsel %vm1663_vm8, %v5559_v39, %v8490_v1  ;;  %v8496_v27 = vunpack.i.h.bf16 %v7164_v28  ;;  %v7220_v39 = vpop.permute.xlu1 %5651 }
 0x57e   : > { %v7192_v2 = vpop.permute.xlu0 %5606  ;;  %v7196_v33 = vpack.i.bf16 %v7190_v40, %v7045_v26  ;;  %v7200_v35 = vpack.i.bf16 %v7182_v58, %v7185_v0  ;;  %v5613_v3 = vunpack.i.l.bf16 %v7164_v28  ;;  %v1849_v1 = vsel %vm1843_vm0, %v5588_v42, %v8495_v25 }
 0x57f   : > { %v8494_v41 = vunpack.i.h.bf16 %v7192_v2  ;;  %v5608_v8 = vunpack.i.l.bf16 %v7192_v2  ;;  %v7235_v48 = vpack.i.bf16 %v7207_v47, %v7050_v45 }
 0x580   : > { %5696 = vrot.lane.b32.xlu1 %v7196_v33, %s6115_s26  ;;  %5766 = vrot.lane.b32.xlu0 %v7200_v35, %s6120_s20  ;;  %v2321_v42 = vsel %vm2318_vm5, %v8522_v43, %v5613_v3 }
 0x581   : > { %v1859_v54 = vsel %vm1843_vm0, %v5539_v36, %v5608_v8  ;;  %v1860_v10 = vsel %vm1843_vm0, %v5608_v8, %v8494_v41  ;;  %v2322_v8 = vsel %vm2318_vm5, %v5613_v3, %v8496_v27  ;;  %v7259_v25 = vpop.permute.xlu1 %5656 }
 0x582   : > { %v7231_v61 = vpop.permute.xlu0 %5616  ;;  %v5084_v60 = vpack.c.bf16 %v1860_v10, %v1849_v1  ;;  %v5086_v34 = vpack.c.bf16 %v1859_v54, %v1848_v7  ;;  %v5624_v10 = vunpack.i.h.bf16 %v7166_v63  ;;  %v5623_v54 = vunpack.i.l.bf16 %v7166_v63 }
 0x583   : > { %v5619_v49 = vunpack.i.h.bf16 %v7231_v61  ;;  %v5618_v36 = vunpack.i.l.bf16 %v7231_v61  ;;  %v8528_v61 = vunpack.i.h.bf16 %v7172_v32 }
 0x584   : > { %5701 = vrot.lane.b32.xlu1 %v7196_v33, %s6116_s16  ;;  %5771 = vrot.lane.b32.xlu0 %v7235_v48, %s6115_s26 }
 0x585   : > { %v2332_v24 = vsel %vm2318_vm5, %v5524_v9, %v5618_v36  ;;  %5085 = vmatprep.subr.bf16.mxu0 %v5084_v60  ;;  %v2333_v43 = vsel %vm2318_vm5, %v5618_v36, %v5619_v49  ;;  %v5633_v9 = vunpack.i.l.bf16 %v7168_v31  ;;  %v1944_v36 = vsel %vm1938_vm2, %v5623_v54, %v5624_v10  ;;  %v7300_v22 = vpop.permute.xlu1 %5666 }
 0x586   : > { %5087 = vmatpush1.bf16.msra.mxu0 %v5086_v34  ;;  %v7257_v1 = vpop.permute.xlu0 %5626  ;;  %v5068_v7 = vpack.c.bf16 %v2333_v43, %v2322_v8  ;;  %v5070_v41 = vpack.c.bf16 %v2332_v24, %v2321_v42  ;;  %v1943_v34 = vsel %vm1938_vm2, %v5479_v44, %v5623_v54  ;;  %v5643_v43 = vunpack.i.l.bf16 %v7178_v6 }
 0x587   : > { %v8497_v3 = vunpack.i.h.bf16 %v7257_v1  ;;  %v5628_v27 = vunpack.i.l.bf16 %v7257_v1  ;;  %v7298_v54 = vunpack.i.h.bf16 %v7220_v39 }
 0x588   : > { %5706 = vrot.lane.b32.xlu1 %v7196_v33, %s6117_s17  ;;  %5776 = vrot.lane.b32.xlu0 %v7235_v48, %s6116_s16 }
 0x589   : > { %v1954_v60 = vsel %vm1938_vm2, %v5544_v11, %v5628_v27  ;;  %5069 = vmatprep.subr.bf16.mxu1 %v5068_v7  ;;  %v1955_v42 = vsel %vm1938_vm2, %v5628_v27, %v8497_v3  ;;  %v2416_v11 = vsel %vm2413_vm6, %v5464_v23, %v5633_v9  ;;  %v5644_v27 = vunpack.i.h.bf16 %v7178_v6 }
 0x58a   : > { %5071 = vmatpush1.bf16.msra.mxu1 %v5070_v41  ;;  %v7281_v8 = vpop.permute.xlu0 %5636  ;;  %v5088_v24 = vpack.c.bf16 %v1955_v42, %v1944_v36  ;;  %v5090_v5 = vpack.c.bf16 %v1954_v60, %v1943_v34  ;;  %v2417_v41 = vsel %vm2413_vm6, %v5633_v9, %v5634_v13  ;;  %v5653_v36 = vunpack.i.l.bf16 %v7220_v39 }
 0x58b   : > { %v5639_v44 = vunpack.i.h.bf16 %v7281_v8  ;;  %v5638_v46 = vunpack.i.l.bf16 %v7281_v8  ;;  %v5658_v42 = vunpack.i.l.bf16 %v7259_v25  ;;  %v5184_v45 = vpack.c.bf16 %v7298_v54, %v7170_v16 }
 0x58c   : > { %5711 = vrot.lane.b32.xlu1 %v7196_v33, %s6118_s18  ;;  %5781 = vrot.lane.b32.xlu0 %v7235_v48, %s6117_s17  ;;  %v7337_v38 = vsel %vm1663_vm8, %v5653_v36, %v7298_v54  ;;  %v5150_v8 = vpack.c.bf16 %v7207_v47, %v7190_v40  ;;  %v1685_v40 = vsel %vm1684_vm9, %v7170_v16, 0.0 }
 0x58d   : > { %v2427_v23 = vsel %vm2413_vm6, %v5529_v57, %v5638_v46  ;;  %5089 = vmatprep.subr.bf16.mxu0 %v5088_v24  ;;  %v2428_v7 = vsel %vm2413_vm6, %v5638_v46, %v5639_v44  ;;  %v2038_v57 = vsel %vm2033_vm1, %v5484_v37, %v5643_v43  ;;  %v5659_v24 = vunpack.i.h.bf16 %v7259_v25 }
 0x58e   : > { %5091 = vmatpush1.bf16.msra.mxu0 %v5090_v5  ;;  %v7308_v34 = vpop.permute.xlu0 %5646  ;;  %v5072_v9 = vpack.c.bf16 %v2428_v7, %v2417_v41  ;;  %v5074_v60 = vpack.c.bf16 %v2427_v23, %v2416_v11  ;;  %v2039_v46 = vsel %vm2033_vm1, %v5643_v43, %v5644_v27  ;;  %v7342_v43 = vpop.permute.xlu1 %5676 }
 0x58f   : > { %v5649_v3 = vunpack.i.h.bf16 %v7308_v34  ;;  %v5648_v52 = vunpack.i.l.bf16 %v7308_v34  ;;  %v2134_v19 = vsel %vm2128_vm4, %v5658_v42, %v5659_v24 }
 0x590   : > { %5716 = vrot.lane.b32.xlu1 %v7196_v33, %s6119_s19  ;;  %5786 = vrot.lane.b32.xlu0 %v7235_v48, %s6118_s18 }
 0x591   : > { %v2049_v5 = vsel %vm2033_vm1, %v5549_v4, %v5648_v52  ;;  %5073 = vmatprep.subr.bf16.mxu1 %v5072_v9  ;;  %v2050_v62 = vsel %vm2033_vm1, %v5648_v52, %v5649_v3  ;;  %v2133_v4 = vsel %vm2128_vm4, %v5489_v55, %v5658_v42  ;;  %v5668_v9 = vunpack.i.l.bf16 %v7300_v22 }
 0x592   : > { %5075 = vmatpush1.bf16.msra.mxu1 %v5074_v60  ;;  %v7331_v37 = vpop.permute.xlu0 %5661  ;;  %v5092_v11 = vpack.c.bf16 %v2050_v62, %v2039_v46  ;;  %v5094_v41 = vpack.c.bf16 %v2049_v5, %v2038_v57  ;;  %v5669_v55 = vunpack.i.h.bf16 %v7300_v22  ;;  %v8523_v60 = vunpack.i.h.bf16 %v7063_v30 }
 0x593   : > { %v5664_v23 = vunpack.i.h.bf16 %v7331_v37  ;;  %v5663_v7 = vunpack.i.l.bf16 %v7331_v37  ;;  %5113 = vmatprep.subr.bf16.mxu1 %v5112_v18  ;;  %v8524_v18 = vpack.c.bf16 %v7053_v14, %v7026_v17  ;;  %v5187_v5 = vpack.c.bf16 %v7337_v38, %v7182_v58 }
 0x594   : > { %5721 = vrot.lane.b32.xlu1 %v7196_v33, %s6120_s20  ;;  %5791 = vrot.lane.b32.xlu0 %v7235_v48, %s6119_s19  ;;  %v5678_v17 = vunpack.i.l.bf16 %v7342_v43  ;;  %v5679_v14 = vunpack.i.h.bf16 %v7342_v43 }
 0x595   : > { %v2144_v52 = vsel %vm2128_vm4, %v8523_v60, %v5663_v7  ;;  %2605 = vmatmul.mubr.f32.vlgmr.msra.gmra.mrb[16].mxu1 %v7020_v21  ;;  %5093 = vmatprep.subr.bf16.mxu0 %v5092_v11  ;;  %v2145_v26 = vsel %vm2128_vm4, %v5663_v7, %v5664_v23  ;;  %v8525_v11 = vunpack.i.h.bf16 %v7061_v20  ;;  %v8526_v7 = vunpack.i.h.bf16 %v7092_v12 }
 0x596   : > { %5095 = vmatpush1.bf16.msra.mxu0 %v5094_v41  ;;  %5115 = vmatpush1.bf16.msra.mxu1 %v8524_v18  ;;  %v7370_v42 = vpop.permute.xlu0 %5671  ;;  %v5096_v30 = vpack.c.bf16 %v2145_v26, %v2134_v19  ;;  %v5098_v57 = vpack.c.bf16 %v2144_v52, %v2133_v4  ;;  %v7387_v4 = vpop.permute.xlu1 %5686  ;;  %v2229_v20 = vsel %vm2223_vm3, %v5668_v9, %v5669_v55 }
 0x597   : > { %v5674_v46 = vunpack.i.h.bf16 %v7370_v42  ;;  %v5673_v62 = vunpack.i.l.bf16 %v7370_v42  ;;  %4482 = vmatprep.mubr.msk.f32.mxu1 %vm2465_vm14, %v6754_v29  ;;  %v2228_v41 = vsel %vm2223_vm3, %v8525_v11, %v5668_v9  ;;  %v8527_v11 = vunpack.i.h.bf16 %v7164_v28 }
 0x598   : > { %5726 = vrot.lane.b32.xlu1 %v7196_v33, %s6121_s24  ;;  %5796 = vrot.lane.b32.xlu0 %v7235_v48, %s6120_s20  ;;  %v5688_v9 = vunpack.i.l.bf16 %v7387_v4  ;;  %v2324_v28 = vsel %vm2318_vm5, %v5678_v17, %v5679_v14 }
 0x599   : > { %v2239_v29 = vsel %vm2223_vm3, %v8526_v7, %v5673_v62  ;;  %5097 = vmatprep.subr.bf16.mxu0 %v5096_v30  ;;  %v2240_v19 = vsel %vm2223_vm3, %v5673_v62, %v5674_v46  ;;  %v2323_v30 = vsel %vm2318_vm5, %v8527_v11, %v5678_v17  ;;  %v5689_v7 = vunpack.i.h.bf16 %v7387_v4 }
 0x59a   : > { %5099 = vmatpush1.bf16.msra.mxu0 %v5098_v57  ;;  %v7398_v60 = vpop.permute.xlu0 %5681  ;;  %v5100_v52 = vpack.c.bf16 %v2240_v19, %v2229_v20  ;;  %v5102_v26 = vpack.c.bf16 %v2239_v29, %v2228_v41  ;;  %v2418_v17 = vsel %vm2413_vm6, %v5634_v13, %v5688_v9 }
 0x59b   : > { %v5684_v18 = vunpack.i.h.bf16 %v7398_v60  ;;  %v5683_v12 = vunpack.i.l.bf16 %v7398_v60  ;;  %v2419_v39 = vsel %vm2413_vm6, %v5688_v9, %v5689_v7 }
 0x59c   : > { %5731 = vrot.lane.b32.xlu1 %v7196_v33, %s6122_s25  ;;  %5801 = vrot.lane.b32.xlu0 %v7235_v48, %s6121_s24 }
 0x59d   : > { %v2334_v57 = vsel %vm2318_vm5, %v5619_v49, %v5683_v12  ;;  %5101 = vmatprep.subr.bf16.mxu0 %v5100_v52  ;;  %v2335_v62 = vsel %vm2318_vm5, %v5683_v12, %v5684_v18  ;;  %v1666_v49 = vsel %vm1663_vm8, %v8528_v61, %v5653_v36  ;;  %v8529_v61 = vunpack.i.h.bf16 %v7120_v56 }
 0x59e   : > { %5103 = vmatpush1.bf16.msra.mxu0 %v5102_v26  ;;  %v7420_v33 = vpop.permute.xlu0 %5691  ;;  %v5104_v41 = vpack.c.bf16 %v2335_v62, %v2324_v28  ;;  %v5106_v29 = vpack.c.bf16 %v2334_v57, %v2323_v30  ;;  %v5810_v36 = vpack.i.bf16 %v7337_v38, %v1666_v49  ;;  %v5148_v13 = vpack.c.bf16 %v1666_v49, %v7185_v0  ;;  %v1689_v26 = vld [vmem:[%s8461_s4] sm:$0xff] }
 0x59f   : > { %v5694_v20 = vunpack.i.h.bf16 %v7420_v33  ;;  %v5693_v19 = vunpack.i.l.bf16 %v7420_v33  ;;  %v1686_v0 = vsel %vm1684_vm9, %v7298_v54, 0.0 }
 0x5a0   : > { %5806 = vrot.lane.b32.xlu0 %v7235_v48, %s6122_s25  ;;  %5736 = vrot.lane.b32.xlu1 %v7200_v35, %s6115_s26  ;;  %v5760_v47 = vpack.i.bf16 %v1686_v0, %v1685_v40  ;;  %v8531_v0 = vunpack.i.h.bf16 %v7162_v15 }
 0x5a1   : > { %v2429_v32 = vsel %vm2413_vm6, %v5639_v44, %v5693_v19  ;;  %5105 = vmatprep.subr.bf16.mxu0 %v5104_v41  ;;  %v2430_v48 = vsel %vm2413_vm6, %v5693_v19, %v5694_v20  ;;  %v7459_v44 = vld [vmem:[%s8460_s3 + $0x8] sm:$0xff] }
 0x5a2   : > { %5107 = vmatpush1.bf16.msra.mxu0 %v5106_v29  ;;  %v5108_v52 = vpack.c.bf16 %v2430_v48, %v2419_v39  ;;  %v5110_v31 = vpack.c.bf16 %v2429_v32, %v2418_v17  ;;  %v8530_v32 = vunpack.i.h.bf16 %v7128_v59 }
 0x5a4   : > { %5811 = vrot.lane.b32.xlu0 %v5810_v36, %s6115_s26  ;;  %5741 = vrot.lane.b32.xlu1 %v7200_v35, %s6116_s16 }
 0x5a5   : > { %5109 = vmatprep.subr.bf16.mxu0 %v5108_v52 }
 0x5a6   : > { %5111 = vmatpush1.bf16.msra.mxu0 %v5110_v31 }
 0x5a7   : > { %5149 = vmatprep.subr.bf16.mxu0 %v5148_v13 }
 0x5a8   : > { %5816 = vrot.lane.b32.xlu0 %v5810_v36, %s6116_s16  ;;  %5746 = vrot.lane.b32.xlu1 %v7200_v35, %s6117_s17 }
 0x5a9   : > { %2676 = vmatmul.mubr.f32.vlgmr.msra.gmra.mrb[18].mxu0 %v7020_v21 }
 0x5aa   : > { %5151 = vmatpush1.bf16.msra.mxu0 %v5150_v8  ;;  %4483 = vmatprep.mubr.msk.f32.mxu0 %vm2465_vm14, %v7459_v44 }
 0x5ac   : > { %5821 = vrot.lane.b32.xlu0 %v5810_v36, %s6117_s17  ;;  %5751 = vrot.lane.b32.xlu1 %v7200_v35, %s6118_s18 }
 0x5b0   : > { %5826 = vrot.lane.b32.xlu0 %v5810_v36, %s6118_s18  ;;  %5756 = vrot.lane.b32.xlu1 %v7200_v35, %s6119_s19 }
 0x5b4   : > { %5831 = vrot.lane.b32.xlu0 %v5810_v36, %s6119_s19  ;;  %5761 = vrot.lane.b32.xlu1 %v5760_v47, %s6115_s26 }
 0x5b8   : > { %5836 = vrot.lane.b32.xlu0 %v5760_v47, %s6116_s16  ;;  %5841 = vrot.lane.b32.xlu1 %v7200_v35, %s6121_s24 }
 0x5bc   : > { %5856 = vrot.lane.b32.xlu0 %v5810_v36, %s6121_s24  ;;  %5846 = vrot.lane.b32.xlu1 %v5810_v36, %s6120_s20 }
 0x5c0   : > { %5861 = vrot.lane.b32.xlu0 %v7200_v35, %s6122_s25  ;;  %5851 = vrot.lane.b32.xlu1 %v5760_v47, %s6117_s17  ;;  %v7492_v35 = vpop.f32.mrb[16].mxu0 }
 0x5c1   : > { %v7494_v12 = vpop.f32.mrb[17].mxu0 }
 0x5c4   : > { %5871 = vrot.lane.b32.xlu0 %v5760_v47, %s6118_s18  ;;  %5866 = vrot.lane.b32.xlu1 %v5810_v36, %s6122_s25 }
 0x5c8   : > { %5881 = vrot.lane.b32.xlu0 %v5760_v47, %s6120_s20  ;;  %5876 = vrot.lane.b32.xlu1 %v5760_v47, %s6119_s19 }
 0x5cc   : > { %5891 = vrot.lane.b32.xlu0 %v5760_v47, %s6122_s25  ;;  %5886 = vrot.lane.b32.xlu1 %v5760_v47, %s6121_s24 }
 0x5d0   : > { %2462 = vperm.xlu1 %5895, %v1689_v26  }
 0x5f2   : > { %v7496_v11 = vpop.permute.xlu1 %5696  ;;  %v7498_v30 = vpop.permute.xlu0 %5766 }
 0x5f3   : > { %v5698_v9 = vunpack.i.l.bf16 %v7496_v11  ;;  %v5699_v57 = vunpack.i.h.bf16 %v7496_v11 }
 0x5f5   : > { %v1755_v49 = vsel %vm1748_vm15, %v8529_v61, %v5698_v9  ;;  %v1756_v48 = vsel %vm1748_vm15, %v5698_v9, %v5699_v57  ;;  %v8532_v9 = vunpack.i.h.bf16 %v7192_v2 }
 0x5f6   : > { %v7502_v28 = vpop.permute.xlu1 %5701  ;;  %v7504_v62 = vpop.permute.xlu0 %5771 }
 0x5f7   : > { %v5774_v41 = vunpack.i.h.bf16 %v7504_v62  ;;  %v5773_v29 = vunpack.i.l.bf16 %v7504_v62  ;;  %v5703_v19 = vunpack.i.l.bf16 %v7502_v28  ;;  %v5704_v17 = vunpack.i.h.bf16 %v7502_v28 }
 0x5f9   : > { %v1766_v39 = vsel %vm1748_vm15, %v8530_v32, %v5773_v29  ;;  %v1767_v36 = vsel %vm1748_vm15, %v5773_v29, %v5774_v41  ;;  %v1850_v40 = vsel %vm1843_vm0, %v8531_v0, %v5703_v19  ;;  %v1851_v61 = vsel %vm1843_vm0, %v5703_v19, %v5704_v17 }
 0x5fa   : > { %v7522_v52 = vpop.permute.xlu1 %5706  ;;  %v7524_v56 = vpop.permute.xlu0 %5776  ;;  %v5116_v31 = vpack.c.bf16 %v1767_v36, %v1756_v48  ;;  %v5118_v13 = vpack.c.bf16 %v1766_v39, %v1755_v49 }
 0x5fb   : > { %v5779_v8 = vunpack.i.h.bf16 %v7524_v56  ;;  %v5778_v59 = vunpack.i.l.bf16 %v7524_v56  ;;  %v5708_v47 = vunpack.i.l.bf16 %v7522_v52  ;;  %v5709_v26 = vunpack.i.h.bf16 %v7522_v52 }
 0x5fc   : > { %5117 = vmatprep.subr.bf16.mxu1 %v5116_v31 }
 0x5fd   : > { %v1861_v29 = vsel %vm1843_vm0, %v8532_v9, %v5778_v59  ;;  %5119 = vmatpush1.bf16.msra.mxu1 %v5118_v13  ;;  %v1862_v15 = vsel %vm1843_vm0, %v5778_v59, %v5779_v8  ;;  %v1945_v31 = vsel %vm1938_vm2, %v5624_v10, %v5708_v47  ;;  %v8533_v59 = vunpack.i.h.bf16 %v7257_v1 }
 0x5fe   : > { %v7542_v49 = vpop.permute.xlu1 %5711  ;;  %v7544_v32 = vpop.permute.xlu0 %5781  ;;  %v5120_v39 = vpack.c.bf16 %v1862_v15, %v1851_v61  ;;  %v5122_v48 = vpack.c.bf16 %v1861_v29, %v1850_v40  ;;  %v1946_v40 = vsel %vm1938_vm2, %v5708_v47, %v5709_v26 }
 0x5ff   : > { %v5784_v36 = vunpack.i.h.bf16 %v7544_v32  ;;  %v5783_v2 = vunpack.i.l.bf16 %v7544_v32  ;;  %v5713_v19 = vunpack.i.l.bf16 %v7542_v49  ;;  %v5714_v13 = vunpack.i.h.bf16 %v7542_v49 }
 0x600   : > { %5121 = vmatprep.subr.bf16.mxu1 %v5120_v39 }
 0x601   : > { %v1956_v0 = vsel %vm1938_vm2, %v8533_v59, %v5783_v2  ;;  %5123 = vmatpush1.bf16.msra.mxu1 %v5122_v48  ;;  %v1957_v63 = vsel %vm1938_vm2, %v5783_v2, %v5784_v36  ;;  %v2040_v39 = vsel %vm2033_vm1, %v5644_v27, %v5713_v19 }
 0x602   : > { %v7562_v9 = vpop.permute.xlu1 %5716  ;;  %v7564_v10 = vpop.permute.xlu0 %5786  ;;  %v5124_v29 = vpack.c.bf16 %v1957_v63, %v1946_v40  ;;  %v5126_v61 = vpack.c.bf16 %v1956_v0, %v1945_v31  ;;  %v2041_v31 = vsel %vm2033_vm1, %v5713_v19, %v5714_v13 }
 0x603   : > { %v5789_v15 = vunpack.i.h.bf16 %v7564_v10  ;;  %v5788_v1 = vunpack.i.l.bf16 %v7564_v10  ;;  %v5718_v47 = vunpack.i.l.bf16 %v7562_v9  ;;  %v5719_v48 = vunpack.i.h.bf16 %v7562_v9 }
 0x604   : > { %5125 = vmatprep.subr.bf16.mxu1 %v5124_v29  ;;  %v5769_v9 = vunpack.i.h.bf16 %v7498_v30 }
 0x605   : > { %v2051_v2 = vsel %vm2033_vm1, %v5649_v3, %v5788_v1  ;;  %5127 = vmatpush1.bf16.msra.mxu1 %v5126_v61  ;;  %v2052_v6 = vsel %vm2033_vm1, %v5788_v1, %v5789_v15  ;;  %v2135_v3 = vsel %vm2128_vm4, %v5659_v24, %v5718_v47  ;;  %v2136_v1 = vsel %vm2128_vm4, %v5718_v47, %v5719_v48 }
 0x606   : > { %v7582_v59 = vpop.permute.xlu1 %5721  ;;  %v7584_v27 = vpop.permute.xlu0 %5791  ;;  %v5128_v0 = vpack.c.bf16 %v2052_v6, %v2041_v31  ;;  %v5130_v40 = vpack.c.bf16 %v2051_v2, %v2040_v39 }
 0x607   : > { %v5794_v63 = vunpack.i.h.bf16 %v7584_v27  ;;  %v5793_v34 = vunpack.i.l.bf16 %v7584_v27  ;;  %v5723_v19 = vunpack.i.l.bf16 %v7582_v59  ;;  %v5724_v29 = vunpack.i.h.bf16 %v7582_v59 }
 0x608   : > { %5129 = vmatprep.subr.bf16.mxu1 %v5128_v0 }
 0x609   : > { %v2146_v61 = vsel %vm2128_vm4, %v5664_v23, %v5793_v34  ;;  %5131 = vmatpush1.bf16.msra.mxu1 %v5130_v40  ;;  %v2147_v25 = vsel %vm2128_vm4, %v5793_v34, %v5794_v63  ;;  %v2230_v23 = vsel %vm2223_vm3, %v5669_v55, %v5723_v19  ;;  %v2231_v34 = vsel %vm2223_vm3, %v5723_v19, %v5724_v29 }
 0x60a   : > { %v7602_v39 = vpop.permute.xlu1 %5726  ;;  %v7604_v24 = vpop.permute.xlu0 %5796  ;;  %v5132_v2 = vpack.c.bf16 %v2147_v25, %v2136_v1  ;;  %v5134_v31 = vpack.c.bf16 %v2146_v61, %v2135_v3 }
 0x60b   : > { %v5799_v6 = vunpack.i.h.bf16 %v7604_v24  ;;  %v5798_v37 = vunpack.i.l.bf16 %v7604_v24  ;;  %v5728_v47 = vunpack.i.l.bf16 %v7602_v39  ;;  %v5729_v0 = vunpack.i.h.bf16 %v7602_v39 }
 0x60c   : > { %5133 = vmatprep.subr.bf16.mxu1 %v5132_v2 }
 0x60d   : > { %v2241_v40 = vsel %vm2223_vm3, %v5674_v46, %v5798_v37  ;;  %5135 = vmatpush1.bf16.msra.mxu1 %v5134_v31  ;;  %v2242_v22 = vsel %vm2223_vm3, %v5798_v37, %v5799_v6  ;;  %v2325_v46 = vsel %vm2318_vm5, %v5679_v14, %v5728_v47  ;;  %v2326_v37 = vsel %vm2318_vm5, %v5728_v47, %v5729_v0 }
 0x60e   : > { %v5138_v3 = vpack.c.bf16 %v2241_v40, %v2230_v23  ;;  %v7622_v55 = vpop.permute.xlu1 %5731  ;;  %v7624_v61 = vpop.permute.xlu0 %5801  ;;  %v5136_v1 = vpack.c.bf16 %v2242_v22, %v2231_v34 }
 0x60f   : > { %v5804_v25 = vunpack.i.h.bf16 %v7624_v61  ;;  %v5803_v42 = vunpack.i.l.bf16 %v7624_v61  ;;  %v5733_v19 = vunpack.i.l.bf16 %v7622_v55  ;;  %v5734_v2 = vunpack.i.h.bf16 %v7622_v55 }
 0x610   : > { %5137 = vmatprep.subr.bf16.mxu1 %v5136_v1 }
 0x611   : > { %v2336_v31 = vsel %vm2318_vm5, %v5684_v18, %v5803_v42  ;;  %5139 = vmatpush1.bf16.msra.mxu1 %v5138_v3  ;;  %v2337_v43 = vsel %vm2318_vm5, %v5803_v42, %v5804_v25  ;;  %v2420_v18 = vsel %vm2413_vm6, %v5689_v7, %v5733_v19  ;;  %v2421_v42 = vsel %vm2413_vm6, %v5733_v19, %v5734_v2 }
 0x612   : > { %v5142_v23 = vpack.c.bf16 %v2336_v31, %v2325_v46  ;;  %v7642_v14 = vpop.permute.xlu0 %5806  ;;  %v7644_v40 = vpop.permute.xlu1 %5736  ;;  %v5140_v34 = vpack.c.bf16 %v2337_v43, %v2326_v37 }
 0x613   : > { %v5809_v22 = vunpack.i.h.bf16 %v7642_v14  ;;  %v5808_v60 = vunpack.i.l.bf16 %v7642_v14  ;;  %v5738_v47 = vunpack.i.l.bf16 %v7644_v40  ;;  %v5739_v1 = vunpack.i.h.bf16 %v7644_v40 }
 0x614   : > { %5141 = vmatprep.subr.bf16.mxu1 %v5140_v34 }
 0x615   : > { %v2431_v3 = vsel %vm2413_vm6, %v5694_v20, %v5808_v60  ;;  %5143 = vmatpush1.bf16.msra.mxu1 %v5142_v23  ;;  %v2432_v4 = vsel %vm2413_vm6, %v5808_v60, %v5809_v22  ;;  %v1757_v19 = vsel %vm1748_vm15, %v5699_v57, %v5738_v47  ;;  %v1758_v60 = vsel %vm1748_vm15, %v5738_v47, %v5739_v1 }
 0x616   : > { %v5146_v46 = vpack.c.bf16 %v2431_v3, %v2420_v18  ;;  %v7662_v7 = vpop.permute.xlu0 %5811  ;;  %v7664_v31 = vpop.permute.xlu1 %5741  ;;  %v5144_v37 = vpack.c.bf16 %v2432_v4, %v2421_v42 }
 0x617   : > { %v5814_v33 = vunpack.i.h.bf16 %v7662_v7  ;;  %v5813_v20 = vunpack.i.l.bf16 %v7662_v7  ;;  %v5743_v43 = vunpack.i.l.bf16 %v7664_v31  ;;  %v5744_v34 = vunpack.i.h.bf16 %v7664_v31 }
 0x618   : > { %5145 = vmatprep.subr.bf16.mxu1 %v5144_v37 }
 0x619   : > { %v1768_v23 = vsel %vm1748_vm15, %v5774_v41, %v5813_v20  ;;  %5147 = vmatpush1.bf16.msra.mxu1 %v5146_v46  ;;  %v1769_v11 = vsel %vm1748_vm15, %v5813_v20, %v5814_v33  ;;  %v1852_v47 = vsel %vm1843_vm0, %v5704_v17, %v5743_v43  ;;  %v1853_v54 = vsel %vm1843_vm0, %v5743_v43, %v5744_v34 }
 0x61a   : > { %v5154_v18 = vpack.c.bf16 %v1768_v23, %v1757_v19  ;;  %v7684_v57 = vpop.permute.xlu0 %5816  ;;  %v7686_v3 = vpop.permute.xlu1 %5746  ;;  %5186 = vmatprep.subr.msk.bf16.mxu1 %vm5185_vm10, %v5184_v45  ;;  %v5152_v62 = vpack.c.bf16 %v1769_v11, %v1758_v60 }
 0x61b   : > { %v5819_v41 = vunpack.i.h.bf16 %v7684_v57  ;;  %v5818_v42 = vunpack.i.l.bf16 %v7684_v57  ;;  %v5749_v4 = vunpack.i.h.bf16 %v7686_v3  ;;  %v5748_v46 = vunpack.i.l.bf16 %v7686_v3 }
 0x61c   : > { %2747 = vmatmul.mubr.f32.vlgmr.msra.gmra.mrb[18].mxu1 %v7020_v21  ;;  %5153 = vmatprep.subr.bf16.mxu0 %v5152_v62 }
 0x61d   : > { %v1863_v16 = vsel %vm1843_vm0, %v5779_v8, %v5818_v42  ;;  %5155 = vmatpush1.bf16.msra.mxu0 %v5154_v18  ;;  %5188 = vmatpush1.bf16.msra.mxu1 %v5187_v5  ;;  %v1864_v45 = vsel %vm1843_vm0, %v5818_v42, %v5819_v41  ;;  %v1947_v5 = vsel %vm1938_vm2, %v5709_v26, %v5748_v46 }
 0x61e   : > { %v5158_v28 = vpack.c.bf16 %v1863_v16, %v1852_v47  ;;  %v7711_v21 = vpop.permute.xlu0 %5821  ;;  %v7713_v17 = vpop.permute.xlu1 %5751  ;;  %v5156_v56 = vpack.c.bf16 %v1864_v45, %v1853_v54  ;;  %4486 = vmatprep.mubr.msk.f32.mxu1 %vm2465_vm14, %v7459_v44  ;;  %v1948_v8 = vsel %vm1938_vm2, %v5748_v46, %v5749_v4 }
 0x61f   : > { %v5824_v58 = vunpack.i.h.bf16 %v7711_v21  ;;  %v5823_v38 = vunpack.i.l.bf16 %v7711_v21  ;;  %v5754_v20 = vunpack.i.h.bf16 %v7713_v17  ;;  %v5753_v44 = vunpack.i.l.bf16 %v7713_v17 }
 0x620   : > { %5157 = vmatprep.subr.bf16.mxu0 %v5156_v56 }
 0x621   : > { %v1958_v37 = vsel %vm1938_vm2, %v5784_v36, %v5823_v38  ;;  %5159 = vmatpush1.bf16.msra.mxu0 %v5158_v28  ;;  %v1959_v52 = vsel %vm1938_vm2, %v5823_v38, %v5824_v58  ;;  %v2042_v36 = vsel %vm2033_vm1, %v5714_v13, %v5753_v44  ;;  %v2043_v18 = vsel %vm2033_vm1, %v5753_v44, %v5754_v20 }
 0x622   : > { %v5162_v19 = vpack.c.bf16 %v1958_v37, %v1947_v5  ;;  %v7733_v26 = vpop.permute.xlu0 %5826  ;;  %v7735_v43 = vpop.permute.xlu1 %5756  ;;  %v5160_v23 = vpack.c.bf16 %v1959_v52, %v1948_v8 }
 0x623   : > { %v5829_v60 = vunpack.i.h.bf16 %v7733_v26  ;;  %v5828_v32 = vunpack.i.l.bf16 %v7733_v26  ;;  %v5759_v47 = vunpack.i.h.bf16 %v7735_v43  ;;  %v5758_v49 = vunpack.i.l.bf16 %v7735_v43  ;;  %v6101_v43 = vld [vmem:[%s8460_s3] sm:$0xff] }
 0x624   : > { %5161 = vmatprep.subr.bf16.mxu0 %v5160_v23 }
 0x625   : > { %v2053_v11 = vsel %vm2033_vm1, %v5789_v15, %v5828_v32  ;;  %5163 = vmatpush1.bf16.msra.mxu0 %v5162_v19  ;;  %v2054_v62 = vsel %vm2033_vm1, %v5828_v32, %v5829_v60  ;;  %v2137_v8 = vsel %vm2128_vm4, %v5719_v48, %v5758_v49  ;;  %v2138_v40 = vsel %vm2128_vm4, %v5758_v49, %v5759_v47 }
 0x626   : > { %v5166_v42 = vpack.c.bf16 %v2053_v11, %v2042_v36  ;;  %v7753_v46 = vpop.permute.xlu0 %5831  ;;  %v5762_v13 = vpop.permute.xlu1 %5761  ;;  %v5164_v10 = vpack.c.bf16 %v2054_v62, %v2043_v18  ;;  %v5768_v48 = vunpack.i.l.bf16 %v7498_v30 }
 0x627   : > { %v5834_v15 = vunpack.i.h.bf16 %v7753_v46  ;;  %v5833_v16 = vunpack.i.l.bf16 %v7753_v46  ;;  %v5764_v54 = vunpack.i.h.bf16 %v5762_v13  ;;  %v5763_v45 = vunpack.i.l.bf16 %v5762_v13 }
 0x628   : > { %5165 = vmatprep.subr.bf16.mxu0 %v5164_v10  ;;  %v2233_v49 = vsel %vm2223_vm3, %v5768_v48, %v5769_v9  ;;  %v2232_v13 = vsel %vm2223_vm3, %v5724_v29, %v5768_v48 }
 0x629   : > { %v2148_v28 = vsel %vm2128_vm4, %v5794_v63, %v5833_v16  ;;  %v1770_v56 = vsel %vm1748_vm15, %v5814_v33, %v5764_v54  ;;  %v1759_v38 = vsel %vm1748_vm15, %v5739_v1, %v5763_v45  ;;  %v5189_v5 = vpack.c.bf16 %v5764_v54, %v5763_v45  ;;  %5167 = vmatpush1.bf16.msra.mxu0 %v5166_v42 }
 0x62a   : > { %v5191_v37 = vpack.c.bf16 %v1770_v56, %v1759_v38  ;;  %v5837_v44 = vpop.permute.xlu0 %5836  ;;  %v7769_v52 = vpop.permute.xlu1 %5841  ;;  %v2149_v27 = vsel %vm2128_vm4, %v5833_v16, %v5834_v15  ;;  %v5170_v63 = vpack.c.bf16 %v2148_v28, %v2137_v8 }
 0x62b   : > { %v5839_v7 = vunpack.i.h.bf16 %v5837_v44  ;;  %v5838_v33 = vunpack.i.l.bf16 %v5837_v44  ;;  %5190 = vmatprep.subr.bf16.mxu1 %v5189_v5  ;;  %v5168_v1 = vpack.c.bf16 %v2149_v27, %v2138_v40  ;;  %v5844_v11 = vunpack.i.h.bf16 %v7769_v52 }
 0x62c   : > { %5192 = vmatpush1.bf16.msra.mxu1 %v5191_v37  ;;  %v5843_v18 = vunpack.i.l.bf16 %v7769_v52 }
 0x62d   : > { %v1854_v19 = vsel %vm1843_vm0, %v5744_v34, %v5838_v33  ;;  %v1865_v23 = vsel %vm1843_vm0, %v5819_v41, %v5839_v7  ;;  %v5193_v32 = vpack.c.bf16 %v5839_v7, %v5838_v33  ;;  %5169 = vmatprep.subr.bf16.mxu0 %v5168_v1 }
 0x62e   : > { %v5195_v36 = vpack.c.bf16 %v1865_v23, %v1854_v19  ;;  %v7787_v62 = vpop.permute.xlu0 %5856  ;;  %v7789_v42 = vpop.permute.xlu1 %5846  ;;  %5171 = vmatpush1.bf16.msra.mxu0 %v5170_v63  ;;  %v2327_v8 = vsel %vm2318_vm5, %v5729_v0, %v5843_v18 }
 0x62f   : > { %v5859_v31 = vunpack.i.h.bf16 %v7787_v62  ;;  %v5858_v34 = vunpack.i.l.bf16 %v7787_v62  ;;  %v5849_v57 = vunpack.i.h.bf16 %v7789_v42  ;;  %v5848_v41 = vunpack.i.l.bf16 %v7789_v42  ;;  %5194 = vmatprep.subr.bf16.mxu1 %v5193_v32 }
 0x630   : > { %5196 = vmatpush1.bf16.msra.mxu1 %v5195_v36 }
 0x631   : > { %v2243_v10 = vsel %vm2223_vm3, %v5799_v6, %v5848_v41  ;;  %v2244_v16 = vsel %vm2223_vm3, %v5848_v41, %v5849_v57  ;;  %v2339_v54 = vsel %vm2318_vm5, %v5858_v34, %v5859_v31  ;;  %v2338_v59 = vsel %vm2318_vm5, %v5804_v25, %v5858_v34 }
 0x632   : > { %v5174_v45 = vpack.c.bf16 %v2243_v10, %v2232_v13  ;;  %v7810_v28 = vpop.permute.xlu0 %5861  ;;  %v5852_v56 = vpop.permute.xlu1 %5851  ;;  %v5172_v38 = vpack.c.bf16 %v2244_v16, %v2233_v49  ;;  %v2328_v6 = vsel %vm2318_vm5, %v5843_v18, %v5844_v11  ;;  %v5178_v44 = vpack.c.bf16 %v2338_v59, %v2327_v8 }
 0x633   : > { %v5854_v29 = vunpack.i.h.bf16 %v5852_v56  ;;  %v5853_v24 = vunpack.i.l.bf16 %v5852_v56  ;;  %v5176_v5 = vpack.c.bf16 %v2339_v54, %v2328_v6  ;;  %v5864_v27 = vunpack.i.h.bf16 %v7810_v28 }
 0x634   : > { %5173 = vmatprep.subr.bf16.mxu0 %v5172_v38  ;;  %v5863_v63 = vunpack.i.l.bf16 %v7810_v28 }
 0x635   : > { %v1960_v37 = vsel %vm1938_vm2, %v5824_v58, %v5854_v29  ;;  %v1949_v61 = vsel %vm1938_vm2, %v5749_v4, %v5853_v24  ;;  %v5197_v25 = vpack.c.bf16 %v5854_v29, %v5853_v24  ;;  %5175 = vmatpush1.bf16.msra.mxu0 %v5174_v45 }
 0x636   : > { %v5199_v7 = vpack.c.bf16 %v1960_v37, %v1949_v61  ;;  %v5872_v33 = vpop.permute.xlu0 %5871  ;;  %v5867_v39 = vpop.permute.xlu1 %5866  ;;  %5177 = vmatprep.subr.bf16.mxu0 %v5176_v5  ;;  %v2422_v19 = vsel %vm2413_vm6, %v5734_v2, %v5863_v63  ;;  %v2423_v17 = vsel %vm2413_vm6, %v5863_v63, %v5864_v27  ;;  %v2945_v37 = vsub.s32 2, %v6353_v50 }
 0x637   : > { %v5874_v0 = vunpack.i.h.bf16 %v5872_v33  ;;  %v5873_v40 = vunpack.i.l.bf16 %v5872_v33  ;;  %v5869_v21 = vunpack.i.h.bf16 %v5867_v39  ;;  %v5868_v48 = vunpack.i.l.bf16 %v5867_v39  ;;  %5198 = vmatprep.subr.bf16.mxu1 %v5197_v25 }
 0x638   : > { %5200 = vmatpush1.bf16.msra.mxu1 %v5199_v7  ;;  %v2949_v61 = vsub.s32 3, %v6353_v50 }
 0x639   : > { %v2044_v3 = vsel %vm2033_vm1, %v5754_v20, %v5873_v40  ;;  %v2055_v4 = vsel %vm2033_vm1, %v5829_v60, %v5874_v0  ;;  %v5201_v58 = vpack.c.bf16 %v5874_v0, %v5873_v40  ;;  %v2433_v1 = vsel %vm2413_vm6, %v5809_v22, %v5868_v48  ;;  %5179 = vmatpush1.bf16.msra.mxu0 %v5178_v44 }
 0x63a   : > { %v5203_v23 = vpack.c.bf16 %v2055_v4, %v2044_v3  ;;  %v5882_v32 = vpop.permute.xlu0 %5881  ;;  %v5877_v36 = vpop.permute.xlu1 %5876  ;;  %v2434_v20 = vsel %vm2413_vm6, %v5868_v48, %v5869_v21  ;;  %v5182_v26 = vpack.c.bf16 %v2433_v1, %v2422_v19 }
 0x63b   : > { %v5883_v18 = vunpack.i.l.bf16 %v5882_v32  ;;  %v5879_v60 = vunpack.i.h.bf16 %v5877_v36  ;;  %v5878_v34 = vunpack.i.l.bf16 %v5877_v36  ;;  %5202 = vmatprep.subr.bf16.mxu1 %v5201_v58  ;;  %v5884_v14 = vunpack.i.h.bf16 %v5882_v32 }
 0x63c   : > { %v5180_v41 = vpack.c.bf16 %v2434_v20, %v2423_v17  ;;  %5204 = vmatpush1.bf16.msra.mxu1 %v5203_v23  ;;  %v2953_v36 = vsub.s32 4, %v6353_v50  ;;  %v2957_v17 = vsub.s32 5, %v6353_v50 }
 0x63d   : > { %v2150_v55 = vsel %vm2128_vm4, %v5834_v15, %v5879_v60  ;;  %v2139_v2 = vsel %vm2128_vm4, %v5759_v47, %v5878_v34  ;;  %v5205_v22 = vpack.c.bf16 %v5879_v60, %v5878_v34  ;;  %v2234_v13 = vsel %vm2223_vm3, %v5769_v9, %v5883_v18 }
 0x63e   : > { %5181 = vmatprep.subr.bf16.mxu0 %v5180_v41  ;;  %v5887_v49 = vpop.permute.xlu1 %5886  ;;  %v5207_v10 = vpack.c.bf16 %v2150_v55, %v2139_v2  ;;  %v2245_v16 = vsel %vm2223_vm3, %v5849_v57, %v5884_v14  ;;  %v5209_v46 = vpack.c.bf16 %v5884_v14, %v5883_v18  ;;  %v5892_v54 = vpop.permute.xlu0 %5891  ;;  %v8534_v9 = vmov 0.0  }
 0x63f   : > { %5183 = vmatpush1.bf16.msra.mxu0 %v5182_v26  ;;  %v5889_v15 = vunpack.i.h.bf16 %v5887_v49  ;;  %v5888_v45 = vunpack.i.l.bf16 %v5887_v49  ;;  %5206 = vmatprep.subr.bf16.mxu1 %v5205_v22  ;;  %v5211_v30 = vpack.c.bf16 %v2245_v16, %v2234_v13  ;;  %v5894_v47 = vunpack.i.h.bf16 %v5892_v54 }
 0x640   : > { %5208 = vmatpush1.bf16.msra.mxu1 %v5207_v10  ;;  %v5893_v28 = vunpack.i.l.bf16 %v5892_v54 }
 0x641   : > { %5210 = vmatprep.subr.bf16.mxu1 %v5209_v46  ;;  %v2340_v42 = vsel %vm2318_vm5, %v5859_v31, %v5889_v15  ;;  %v2329_v57 = vsel %vm2318_vm5, %v5844_v11, %v5888_v45  ;;  %v5213_v56 = vpack.c.bf16 %v5889_v15, %v5888_v45  ;;  %v2435_v29 = vsel %vm2413_vm6, %v5869_v21, %v5894_v47  ;;  %v7877_v31 = vld [vmem:[%s8467_s10] sm:$0xff] }
 0x642   : > { %2818 = vmatmul.mubr.f32.vlgmr.msra.gmra.mrb[20].mxu0 %v6101_v43  ;;  %v5215_v38 = vpack.c.bf16 %v2340_v42, %v2329_v57  ;;  %v2424_v59 = vsel %vm2413_vm6, %v5864_v27, %v5893_v28  ;;  %v5217_v24 = vpack.c.bf16 %v5894_v47, %v5893_v28  ;;  %v2942_v25 = vrot.slane %v7877_v31, %v6362_v53 }
 0x643   : > { %3470 = vmatprep.mubr.f32.mxu0 %v8534_v9  ;;  %v5219_v6 = vpack.c.bf16 %v2435_v29, %v2424_v59  ;;  %v2946_v33 = vrot.slane %v7877_v31, %v2945_v37  ;;  %v2950_v40 = vrot.slane %v7877_v31, %v2949_v61  ;;  %v2954_v60 = vrot.slane %v7877_v31, %v2953_v36 }
 0x644   : > { %5212 = vmatpush1.bf16.msra.mxu1 %v5211_v30  ;;  %v2958_v41 = vrot.slane %v7877_v31, %v2957_v17 }
 0x645   : > { %5214 = vmatprep.subr.bf16.mxu1 %v5213_v56 }
 0x648   : > { %5216 = vmatpush1.bf16.msra.mxu1 %v5215_v38 }
 0x649   : > { %5218 = vmatprep.subr.bf16.mxu1 %v5217_v24 }
 0x64c   : > { %5220 = vmatpush1.bf16.msra.mxu1 %v5219_v6 }
 0x64f   : > { %2889 = vmatmul.mubr.f32.vlgmr.msra.gmra.mrb[20].mxu1 %v6101_v43  ;;  %v7868_v62 = vpop.permute.xlu1 %2462 }
 0x650   : > { %3541 = vmatprep.mubr.f32.mxu1 %v8534_v9  ;;  %v2538_v52 = vadd.f32 %v7494_v12, %v7868_v62  ;;  %v2536_v11 = vadd.f32 %v7492_v35, %v7868_v62  ;;  %v2938_v35 = vrot.slane %v7877_v31, %v6356_v51 }
 0x652   : > { %v2908_v5 = vmul.f32 0.2, %v2538_v52  ;;  %v2907_v8 = vmul.f32 0.2, %v2536_v11  ;;  %vm2896_vm11 = vcmp.ge.f32.partialorder %v2538_v52, 0.0  ;;  %vm2895_vm12 = vcmp.ge.f32.partialorder %v2536_v11, 0.0 }
 0x654   : > { %v2920_v44 = vsel %vm2896_vm11, %v2538_v52, %v2908_v5  ;;  %v2919_v7 = vsel %vm2895_vm12, %v2536_v11, %v2907_v8  ;;  %v2961_v5 = vsub.s32 6, %v6353_v50  ;;  %v2965_v8 = vsub.s32 7, %v6353_v50 }
 0x655   : > { %v7893_v21 = vmul.f32 %v2942_v25, %v2920_v44  ;;  %v7895_v3 = vmul.f32 %v2938_v35, %v2919_v7  ;;  %vm3402_vm11 = vcmask 588800  }
 0x656   : > { %v2962_v7 = vrot.slane %v7877_v31, %v2961_v5 }
 0x668   : > { %v2606_v12 = vpop.f32.mrb[16].mxu1 }
 0x669   : > { %v2607_v27 = vadd.f32 %v2606_v12, %v7868_v62  ;;  %v2608_v63 = vpop.f32.mrb[17].mxu1 }
 0x66a   : > { %v2609_v39 = vadd.f32 %v2608_v63, %v7868_v62 }
 0x66b   : > { %vm2897_vm13 = vcmp.ge.f32.partialorder %v2607_v27, 0.0  ;;  %v2909_v0 = vmul.f32 0.2, %v2607_v27 }
 0x66c   : > { %vm2898_vm14 = vcmp.ge.f32.partialorder %v2609_v39, 0.0  ;;  %v2910_v48 = vmul.f32 0.2, %v2609_v39 }
 0x66d   : > { %v2921_v4 = vsel %vm2897_vm13, %v2607_v27, %v2909_v0 }
 0x66e   : > { %v7897_v58 = vmul.f32 %v2946_v33, %v2921_v4  ;;  %v2922_v1 = vsel %vm2898_vm14, %v2609_v39, %v2910_v48  ;;  %v2966_v39 = vrot.slane %v7877_v31, %v2965_v8 }
 0x66f   : > { %v7899_v19 = vmul.f32 %v2950_v40, %v2922_v1 }
 0x670   : > { %v5896_v23 = vpack.i.bf16 %v7897_v58, %v7893_v21 }
 0x671   : > { %v5901_v32 = vpack.i.bf16 %v7899_v19, %v7895_v3 }
 0x672   : > { %5897 = vrot.lane.b32.xlu0 %v5896_v23, %s6115_s26 }
 0x673   : > { %5902 = vrot.lane.b32.xlu1 %v5901_v32, %s6115_s26 }
 0x676   : > { %5912 = vrot.lane.b32.xlu0 %v5896_v23, %s6117_s17 }
 0x677   : > { %5907 = vrot.lane.b32.xlu1 %v5896_v23, %s6116_s16 }
 0x67a   : > { %5932 = vrot.lane.b32.xlu0 %v5896_v23, %s6119_s19 }
 0x67b   : > { %5917 = vrot.lane.b32.xlu1 %v5901_v32, %s6116_s16 }
 0x67c   : > { %v2677_v20 = vpop.f32.mrb[18].mxu0 }
 0x67d   : > { %v2678_v26 = vadd.f32 %v2677_v20, %v7868_v62  ;;  %v2679_v18 = vpop.f32.mrb[19].mxu0 }
 0x67e   : > { %5952 = vrot.lane.b32.xlu0 %v5896_v23, %s6121_s24  ;;  %v2680_v34 = vadd.f32 %v2679_v18, %v7868_v62 }
 0x67f   : > { %vm2899_vm7 = vcmp.ge.f32.partialorder %v2678_v26, 0.0  ;;  %v2911_v14 = vmul.f32 0.2, %v2678_v26  ;;  %5922 = vrot.lane.b32.xlu1 %v5901_v32, %s6117_s17 }
 0x680   : > { %vm2900_vm8 = vcmp.ge.f32.partialorder %v2680_v34, 0.0  ;;  %v2912_v55 = vmul.f32 0.2, %v2680_v34 }
 0x681   : > { %v2923_v2 = vsel %vm2899_vm7, %v2678_v26, %v2911_v14 }
 0x682   : > { %v7919_v22 = vmul.f32 %v2954_v60, %v2923_v2  ;;  %v2924_v49 = vsel %vm2900_vm8, %v2680_v34, %v2912_v55  ;;  %3352 = vrot.lane.b32.xlu0 %v7893_v21, %s6122_s25 }
 0x683   : > { %v7923_v13 = vmul.f32 %v2958_v41, %v2924_v49  ;;  %5927 = vrot.lane.b32.xlu1 %v5896_v23, %s6118_s18 }
 0x685   : > { %v5966_v10 = vpack.i.bf16 %v7923_v13, %v7919_v22 }
 0x686   : > { %3356 = vrot.lane.b32.xlu0 %v7899_v19, %s6122_s25 }
 0x687   : > { %5937 = vrot.lane.b32.xlu1 %v5901_v32, %s6118_s18 }
 0x68a   : > { %5967 = vrot.lane.b32.xlu0 %v5966_v10, %s6115_s26 }
 0x68b   : > { %5942 = vrot.lane.b32.xlu1 %v5901_v32, %s6119_s19 }
 0x68e   : > { %5972 = vrot.lane.b32.xlu0 %v5966_v10, %s6116_s16 }
 0x68f   : > { %5947 = vrot.lane.b32.xlu1 %v5896_v23, %s6120_s20 }
 0x692   : > { %5977 = vrot.lane.b32.xlu0 %v5966_v10, %s6117_s17 }
 0x693   : > { %5957 = vrot.lane.b32.xlu1 %v5901_v32, %s6120_s20 }
 0x696   : > { %5982 = vrot.lane.b32.xlu0 %v5966_v10, %s6118_s18 }
 0x697   : > { %5962 = vrot.lane.b32.xlu1 %v5901_v32, %s6121_s24 }
 0x69a   : > { %5987 = vrot.lane.b32.xlu0 %v5966_v10, %s6119_s19 }
 0x69b   : > { %3354 = vrot.lane.b32.xlu1 %v7897_v58, %s6122_s25 }
 0x69e   : > { %5992 = vrot.lane.b32.xlu0 %v5966_v10, %s6120_s20 }
 0x69f   : > { %3350 = vrot.lane.b32.xlu1 %v7895_v3, %s6122_s25 }
 0x6a2   : > { %5997 = vrot.lane.b32.xlu0 %v5966_v10, %s6121_s24 }
 0x6a3   : > { %3358 = vrot.lane.b32.xlu1 %v7919_v22, %s6122_s25 }
 0x6e4   : > { %v7948_v16 = vpop.permute.xlu0 %5897 }
 0x6e5   : > { %v5900_v46 = vunpack.i.h.bf16 %v7948_v16  ;;  %v5899_v54 = vunpack.i.l.bf16 %v7948_v16  ;;  %v7952_v15 = vpop.permute.xlu1 %5902 }
 0x6e6   : > { %v5904_v45 = vunpack.i.l.bf16 %v7952_v15  ;;  %v5905_v41 = vunpack.i.h.bf16 %v7952_v15 }
 0x6e7   : > { %v3046_v43 = vsel %vm1748_vm15, %v5899_v54, %v5900_v46 }
 0x6e8   : > { %v3045_v30 = vsel %vm1748_vm15, %v5904_v45, %v5899_v54  ;;  %v7959_v47 = vpop.permute.xlu0 %5912  ;;  %v5221_v28 = vpack.c.bf16 %v3046_v43, %v7893_v21  ;;  %v3047_v45 = vsel %vm1748_vm15, %v5900_v46, %v5905_v41 }
 0x6e9   : > { %v5223_v42 = vpack.c.bf16 %v3045_v30, %v7895_v3  ;;  %v5915_v57 = vunpack.i.h.bf16 %v7959_v47  ;;  %v5914_v56 = vunpack.i.l.bf16 %v7959_v47  ;;  %v7965_v38 = vpop.permute.xlu1 %5907  ;;  %v5239_v16 = vpack.c.bf16 %v3047_v45, %v7897_v58 }
 0x6ea   : > { %v5910_v59 = vunpack.i.h.bf16 %v7965_v38  ;;  %v5909_v29 = vunpack.i.l.bf16 %v7965_v38  ;;  %5222 = vmatprep.subr.bf16.mxu0 %v5221_v28 }
 0x6eb   : > { %5224 = vmatpush1.bf16.msra.mxu0 %v5223_v42  ;;  %v3140_v24 = vsel %vm1938_vm2, %v5914_v56, %v5915_v57 }
 0x6ec   : > { %v7972_v6 = vpop.permute.xlu0 %5932  ;;  %v3093_v52 = vsel %vm1843_vm0, %v5909_v29, %v5910_v59 }
 0x6ed   : > { %v7977_v11 = vpop.permute.xlu1 %5917  ;;  %v5225_v25 = vpack.c.bf16 %v3140_v24, %v3093_v52  ;;  %v5935_v3 = vunpack.i.h.bf16 %v7972_v6  ;;  %v5934_v4 = vunpack.i.l.bf16 %v7972_v6 }
 0x6ee   : > { %v5919_v12 = vunpack.i.l.bf16 %v7977_v11  ;;  %v5920_v46 = vunpack.i.h.bf16 %v7977_v11 }
 0x6ef   : > { %v2748_v35 = vpop.f32.mrb[18].mxu1  ;;  %5226 = vmatprep.subr.bf16.mxu0 %v5225_v25  ;;  %v3234_v14 = vsel %vm2128_vm4, %v5934_v4, %v5935_v3 }
 0x6f0   : > { %v2749_v44 = vadd.f32 %v2748_v35, %v7868_v62  ;;  %v7983_v27 = vpop.permute.xlu0 %5952  ;;  %v2750_v63 = vpop.f32.mrb[19].mxu1  ;;  %v3092_v40 = vsel %vm1843_vm0, %v5919_v12, %v5909_v29 }
 0x6f1   : > { %v2751_v33 = vadd.f32 %v2750_v63, %v7868_v62  ;;  %v7988_v0 = vpop.permute.xlu1 %5922  ;;  %v5954_v29 = vunpack.i.l.bf16 %v7983_v27 }
 0x6f2   : > { %vm2901_vm9 = vcmp.ge.f32.partialorder %v2749_v44, 0.0  ;;  %v2913_v21 = vmul.f32 0.2, %v2749_v44  ;;  %v5924_v48 = vunpack.i.l.bf16 %v7988_v0  ;;  %v5925_v25 = vunpack.i.h.bf16 %v7988_v0 }
 0x6f3   : > { %vm2902_vm10 = vcmp.ge.f32.partialorder %v2751_v33, 0.0  ;;  %v2914_v1 = vmul.f32 0.2, %v2751_v33 }
 0x6f4   : > { %v2925_v23 = vsel %vm2901_vm9, %v2749_v44, %v2913_v21  ;;  %v3139_v32 = vsel %vm1938_vm2, %v5924_v48, %v5914_v56  ;;  %v7995_v36 = vpop.permute.xlu0 %3352  ;;  %v5955_v56 = vunpack.i.h.bf16 %v7983_v27  ;;  %v3141_v21 = vsel %vm1938_vm2, %v5915_v57, %v5925_v25 }
 0x6f5   : > { %v7997_v31 = vmul.f32 %v2962_v7, %v2925_v23  ;;  %v2926_v17 = vsel %vm2902_vm10, %v2751_v33, %v2914_v1  ;;  %v5227_v20 = vpack.c.bf16 %v3139_v32, %v3092_v40  ;;  %v7999_v26 = vpop.permute.xlu1 %5927  ;;  %v3094_v40 = vsel %vm1843_vm0, %v5910_v59, %v5920_v46 }
 0x6f6   : > { %v8001_v18 = vmul.f32 %v2966_v39, %v2926_v17  ;;  %v5930_v60 = vunpack.i.h.bf16 %v7999_v26  ;;  %v5929_v34 = vunpack.i.l.bf16 %v7999_v26  ;;  %v3328_v0 = vsel %vm2318_vm5, %v5954_v29, %v5955_v56 }
 0x6f7   : > { %5228 = vmatpush1.bf16.msra.mxu0 %v5227_v20  ;;  %v5243_v20 = vpack.c.bf16 %v3141_v21, %v3094_v40 }
 0x6f8   : > { %v8009_v55 = vpop.permute.xlu0 %3356  ;;  %v8013_v2 = vpack.i.bf16 %v8001_v18, %v7997_v31  ;;  %v3187_v10 = vsel %vm2033_vm1, %v5929_v34, %v5930_v60 }
 0x6f9   : > { %v8015_v49 = vpop.permute.xlu1 %5937  ;;  %v5229_v15 = vpack.c.bf16 %v3234_v14, %v3187_v10 }
 0x6fa   : > { %v5939_v54 = vunpack.i.l.bf16 %v8015_v49  ;;  %6007 = vrot.lane.b32.xlu0 %v8013_v2, %s6116_s16  ;;  %6002 = vrot.lane.b32.xlu1 %v8013_v2, %s6115_s26 }
 0x6fb   : > { %5230 = vmatprep.subr.bf16.mxu0 %v5229_v15 }
 0x6fc   : > { %v8028_v43 = vpop.permute.xlu0 %5967  ;;  %v3186_v24 = vsel %vm2033_vm1, %v5939_v54, %v5929_v34  ;;  %v5940_v34 = vunpack.i.h.bf16 %v8015_v49 }
 0x6fd   : > { %v5970_v30 = vunpack.i.h.bf16 %v8028_v43  ;;  %v5969_v28 = vunpack.i.l.bf16 %v8028_v43  ;;  %v8032_v42 = vpop.permute.xlu1 %5942 }
 0x6fe   : > { %v5944_v52 = vunpack.i.l.bf16 %v8032_v42  ;;  %6017 = vrot.lane.b32.xlu0 %v8013_v2, %s6118_s18  ;;  %6012 = vrot.lane.b32.xlu1 %v8013_v2, %s6117_s17  ;;  %v5945_v14 = vunpack.i.h.bf16 %v8032_v42  ;;  %v3188_v42 = vsel %vm2033_vm1, %v5930_v60, %v5940_v34 }
 0x6ff   : > { %v8047_v5 = vsel %vm1748_vm15, %v5969_v28, %v5970_v30  ;;  %v3048_v8 = vsel %vm1748_vm15, %v5905_v41, %v5969_v28 }
 0x700   : > { %v3233_v12 = vsel %vm2128_vm4, %v5944_v52, %v5934_v4  ;;  %v8052_v35 = vpop.permute.xlu0 %5972  ;;  %v5237_v44 = vpack.c.bf16 %v3048_v8, %v7899_v19 }
 0x701   : > { %v5231_v63 = vpack.c.bf16 %v3233_v12, %v3186_v24  ;;  %v5975_v58 = vunpack.i.h.bf16 %v8052_v35  ;;  %v5974_v11 = vunpack.i.l.bf16 %v8052_v35  ;;  %v8057_v7 = vpop.permute.xlu1 %5947 }
 0x702   : > { %v5950_v33 = vunpack.i.h.bf16 %v8057_v7  ;;  %v5949_v39 = vunpack.i.l.bf16 %v8057_v7  ;;  %5238 = vmatprep.subr.bf16.mxu1 %v5237_v44  ;;  %6027 = vrot.lane.b32.xlu0 %v8013_v2, %s6120_s20 }
 0x703   : > { %v8069_v19 = vsel %vm1843_vm0, %v5974_v11, %v5975_v58  ;;  %6022 = vrot.lane.b32.xlu1 %v8013_v2, %s6119_s19  ;;  %5240 = vmatpush1.bf16.msra.mxu1 %v5239_v16  ;;  %v3095_v38 = vsel %vm1843_vm0, %v5920_v46, %v5974_v11  ;;  %v3235_v16 = vsel %vm2128_vm4, %v5935_v3, %v5945_v14 }
 0x704   : > { %v8079_v48 = vpop.permute.xlu0 %5977  ;;  %5232 = vmatpush1.bf16.msra.mxu0 %v5231_v63  ;;  %v3281_v4 = vsel %vm2223_vm3, %v5949_v39, %v5950_v33  ;;  %v5247_v60 = vpack.c.bf16 %v3235_v16, %v3188_v42 }
 0x705   : > { %v5980_v1 = vunpack.i.h.bf16 %v8079_v48  ;;  %v5979_v23 = vunpack.i.l.bf16 %v8079_v48  ;;  %v5958_v32 = vpop.permute.xlu1 %5957  ;;  %v5233_v17 = vpack.c.bf16 %v3328_v0, %v3281_v4 }
 0x706   : > { %v5959_v59 = vunpack.i.l.bf16 %v5958_v32 }
 0x707   : > { %v8090_v47 = vsel %vm1938_vm2, %v5979_v23, %v5980_v1  ;;  %5234 = vmatprep.subr.bf16.mxu0 %v5233_v17  ;;  %v3142_v57 = vsel %vm1938_vm2, %v5925_v25, %v5979_v23 }
 0x708   : > { %v5259_v41 = vpack.c.bf16 %v8090_v47, %v8069_v19  ;;  %v8097_v10 = vpop.permute.xlu0 %5982  ;;  %v5241_v54 = vpack.c.bf16 %v3142_v57, %v3095_v38  ;;  %v3280_v24 = vsel %vm2223_vm3, %v5959_v59, %v5949_v39  ;;  %v8136_v38 = vld [vmem:[%s8462_s5] sm:$0xff] }
 0x709   : > { %v5985_v15 = vunpack.i.h.bf16 %v8097_v10  ;;  %v5984_v45 = vunpack.i.l.bf16 %v8097_v10  ;;  %v5963_v28 = vpop.permute.xlu1 %5962 }
 0x70a   : > { %v5964_v52 = vunpack.i.l.bf16 %v5963_v28  ;;  %5242 = vmatprep.subr.bf16.mxu1 %v5241_v54  ;;  %v5965_v39 = vunpack.i.h.bf16 %v5963_v28 }
 0x70b   : > { %v8105_v49 = vsel %vm2033_vm1, %v5984_v45, %v5985_v15  ;;  %5244 = vmatpush1.bf16.msra.mxu1 %v5243_v20  ;;  %v3189_v11 = vsel %vm2033_vm1, %v5940_v34, %v5984_v45  ;;  %v2932_v20 = vld [vmem:[%s8467_s10 + $0x8] sm:$0xf] }
 0x70c   : > { %v3327_v46 = vsel %vm2318_vm5, %v5964_v52, %v5954_v29  ;;  %v8114_v8 = vpop.permute.xlu0 %5987  ;;  %v5960_v29 = vunpack.i.h.bf16 %v5958_v32  ;;  %v2970_v27 = vrot.slane %v2932_v20, %v6356_v51 }
 0x70d   : > { %v5235_v25 = vpack.c.bf16 %v3327_v46, %v3280_v24  ;;  %v5990_v12 = vunpack.i.h.bf16 %v8114_v8  ;;  %v5989_v44 = vunpack.i.l.bf16 %v8114_v8  ;;  %v3355_v63 = vpop.permute.xlu1 %3354 }
 0x70e   : > { %v3375_v26 = vsel %vm2413_vm6, %v7995_v36, %v3355_v63  ;;  %v3282_v57 = vsel %vm2223_vm3, %v5950_v33, %v5960_v29 }
 0x70f   : > { %v8124_v6 = vsel %vm2128_vm4, %v5989_v44, %v5990_v12  ;;  %5236 = vmatpush1.bf16.msra.mxu0 %v5235_v25  ;;  %v3236_v3 = vsel %vm2128_vm4, %v5945_v14, %v5989_v44 }
 0x710   : > { %v5263_v0 = vpack.c.bf16 %v8124_v6, %v8105_v49  ;;  %v8129_v40 = vpop.permute.xlu0 %5992  ;;  %3422 = vmatprep.subr.mxu0 %v3375_v26  ;;  %v5245_v21 = vpack.c.bf16 %v3236_v3, %v3189_v11 }
 0x711   : > { %v5995_v4 = vunpack.i.h.bf16 %v8129_v40  ;;  %v5994_v23 = vunpack.i.l.bf16 %v8129_v40  ;;  %v3351_v17 = vpop.permute.xlu1 %3350 }
 0x712   : > { %v3374_v32 = vsel %vm2413_vm6, %v3351_v17, %v7995_v36  ;;  %5246 = vmatprep.subr.bf16.mxu1 %v5245_v21  ;;  %v3329_v36 = vsel %vm2318_vm5, %v5955_v56, %v5965_v39  ;;  %v2974_v56 = vrot.slane %v2932_v20, %v6362_v53 }
 0x713   : > { %v8143_v59 = vsel %vm2223_vm3, %v5994_v23, %v5995_v4  ;;  %3423 = vmatpush1.msra.mxu0 %v3374_v32  ;;  %5248 = vmatpush1.bf16.msra.mxu1 %v5247_v60  ;;  %v3283_v28 = vsel %vm2223_vm3, %v5960_v29, %v5994_v23  ;;  %v5251_v52 = vpack.c.bf16 %v3329_v36, %v3282_v57 }
 0x714   : > { %v8154_v34 = vpop.permute.xlu0 %5997  ;;  %4487 = vmatmul.mubr.msk.f32.vlgmr.msra.gmra.mrb[22].mxu0 %vm3402_vm11, %v8136_v38  ;;  %v3376_v29 = vsel %vm2413_vm6, %v3355_v63, %v8009_v55 }
 0x715   : > { %v2819_v14 = vpop.f32.mrb[20].mxu0  ;;  %v6000_v54 = vunpack.i.h.bf16 %v8154_v34  ;;  %v5999_v45 = vunpack.i.l.bf16 %v8154_v34  ;;  %3612 = vmatprep.mubr.f32.mxu0 %v8534_v9  ;;  %v8165_v24 = vpop.permute.xlu1 %3358 }
 0x716   : > { %v2820_v7 = vadd.f32 %v2819_v14, %v7868_v62  ;;  %v2821_v33 = vpop.f32.mrb[21].mxu0  ;;  %v3377_v11 = vsel %vm2413_vm6, %v8009_v55, %v8165_v24 }
 0x717   : > { %v8170_v42 = vsel %vm2318_vm5, %v5999_v45, %v6000_v54  ;;  %v2822_v16 = vadd.f32 %v2821_v33, %v7868_v62  ;;  %v3330_v46 = vsel %vm2318_vm5, %v5965_v39, %v5999_v45 }
 0x718   : > { %vm2903_vm12 = vcmp.ge.f32.partialorder %v2820_v7, 0.0  ;;  %v2915_v25 = vmul.f32 0.2, %v2820_v7  ;;  %v5267_v51 = vpack.c.bf16 %v8170_v42, %v8143_v59  ;;  %v5249_v44 = vpack.c.bf16 %v3330_v46, %v3283_v28 }
 0x719   : > { %vm2904_vm13 = vcmp.ge.f32.partialorder %v2822_v16, 0.0  ;;  %v2916_v53 = vmul.f32 0.2, %v2822_v16  ;;  %v5255_v46 = vpack.c.bf16 %v8047_v5, %v7919_v22 }
 0x71a   : > { %v2927_v26 = vsel %vm2903_vm12, %v2820_v7, %v2915_v25  ;;  %5250 = vmatprep.subr.bf16.mxu1 %v5249_v44 }
 0x71b   : > { %v8179_v60 = vmul.f32 %v2970_v27, %v2927_v26  ;;  %v2928_v3 = vsel %vm2904_vm13, %v2822_v16, %v2916_v53  ;;  %5252 = vmatpush1.bf16.msra.mxu1 %v5251_v52 }
 0x71c   : > { %v8183_v39 = vmul.f32 %v2974_v56, %v2928_v3  ;;  %3493 = vmatprep.subr.mxu1 %v3377_v11 }
 0x71d   : > { %3272 = vrot.lane.b32.xlu0 %v8179_v60, %s6120_s20  ;;  %3225 = vrot.lane.b32.xlu1 %v8179_v60, %s6119_s19 }
 0x71e   : > { %v6036_v21 = vpack.i.bf16 %v8183_v39, %v8179_v60 }
 0x71f   : > { %3494 = vmatpush1.msra.mxu1 %v3376_v29 }
 0x720   : > { %4488 = vmatmul.mubr.msk.f32.vlgmr.msra.gmra.mrb[22].mxu1 %vm3402_vm11, %v8136_v38 }
 0x721   : > { %6037 = vrot.lane.b32.xlu0 %v6036_v21, %s6115_s26  ;;  %6032 = vrot.lane.b32.xlu1 %v8013_v2, %s6121_s24  ;;  %v2978_v2 = vrot.slane %v2932_v20, %v2945_v37 }
 0x722   : > { %3683 = vmatprep.mubr.f32.mxu1 %v8534_v9  ;;  %v2890_v55 = vpop.f32.mrb[20].mxu1 }
 0x723   : > { %v2891_v63 = vadd.f32 %v2890_v55, %v7868_v62  ;;  %v2892_v23 = vpop.f32.mrb[21].mxu1 }
 0x724   : > { %v2893_v17 = vadd.f32 %v2892_v23, %v7868_v62  ;;  %v2982_v62 = vrot.slane %v2932_v20, %v2949_v61  ;;  %v3008_v61 = vld [vmem:[%s8463_s6] sm:$0xff] }
 0x725   : > { %6042 = vrot.lane.b32.xlu0 %v6036_v21, %s6116_s16  ;;  %3319 = vrot.lane.b32.xlu1 %v8179_v60, %s6121_s24  ;;  %v2917_v32 = vmul.f32 0.2, %v2891_v63  ;;  %vm2905_vm14 = vcmp.ge.f32.partialorder %v2891_v63, 0.0 }
 0x726   : > { %v2918_v57 = vmul.f32 0.2, %v2893_v17  ;;  %vm2906_vm7 = vcmp.ge.f32.partialorder %v2893_v17, 0.0 }
 0x727   : > { %v2929_v36 = vsel %vm2905_vm14, %v2891_v63, %v2917_v32  ;;  %vm4356_vm14 = vcmask 556032  }
 0x728   : > { %v2930_v14 = vsel %vm2906_vm7, %v2893_v17, %v2918_v57  ;;  %v8212_v45 = vmul.f32 %v2978_v2, %v2929_v36  ;;  %vm4333_vm7 = vcmask 424960  }
 0x729   : > { %3362 = vrot.lane.b32.xlu0 %v7997_v31, %s6122_s25  ;;  %6047 = vrot.lane.b32.xlu1 %v6036_v21, %s6117_s17  ;;  %v8214_v28 = vmul.f32 %v2982_v62, %v2930_v14 }
 0x72a   : > { %v6056_v50 = vpack.i.bf16 %v8212_v45, %v8183_v39 }
 0x72b   : > { %v6066_v37 = vpack.i.bf16 %v8214_v28, %v8212_v45 }
 0x72d   : > { %6052 = vrot.lane.b32.xlu0 %v6036_v21, %s6118_s18  ;;  %3360 = vrot.lane.b32.xlu1 %v7923_v13, %s6122_s25 }
 0x731   : > { %3366 = vrot.lane.b32.xlu0 %v8179_v60, %s6122_s25  ;;  %3364 = vrot.lane.b32.xlu1 %v8001_v18, %s6122_s25 }
 0x735   : > { %6057 = vrot.lane.b32.xlu0 %v6056_v50, %s6119_s19  ;;  %6067 = vrot.lane.b32.xlu1 %v6066_v37, %s6116_s16 }
 0x739   : > { %6062 = vrot.lane.b32.xlu0 %v6066_v37, %s6115_s26  ;;  %6082 = vrot.lane.b32.xlu1 %v6056_v50, %s6121_s24 }
 0x73d   : > { %6072 = vrot.lane.b32.xlu0 %v6066_v37, %s6117_s17  ;;  %6087 = vrot.lane.b32.xlu1 %v6066_v37, %s6118_s18 }
 0x741   : > { %6077 = vrot.lane.b32.xlu0 %v6056_v50, %s6120_s20  ;;  %3231 = vrot.lane.b32.xlu1 %v8214_v28, %s6119_s19 }
 0x745   : > { %3278 = vrot.lane.b32.xlu0 %v8214_v28, %s6120_s20  ;;  %3325 = vrot.lane.b32.xlu1 %v8214_v28, %s6121_s24  ;;  %s5317_s24 = smul.u32 44, %s8536_s22  ;;  %s6126_s22 = smov 52  }
 0x747   : > { %s8438_s14 = scalar_lea.vmem %s8469_s12, %s5317_s24 }
 0x749   : > { %3368 = vrot.lane.b32.xlu0 %v8183_v39, %s6122_s25  ;;  %3370 = vrot.lane.b32.xlu1 %v8212_v45, %s6122_s25 }
 0x74d   : > { %3372 = vrot.lane.b32.xlu0 %v8214_v28, %s6122_s25  ;;  %3399 = vperm.xlu1 %5895, %v3008_v61  }
 0x76c   : > { %v6008_v20 = vpop.permute.xlu0 %6007  ;;  %v6003_v7 = vpop.permute.xlu1 %6002 }
 0x76d   : > { %v6004_v27 = vunpack.i.l.bf16 %v6003_v7  ;;  %v6009_v33 = vunpack.i.l.bf16 %v6008_v20  ;;  %v6005_v47 = vunpack.i.h.bf16 %v6003_v7  ;;  %v6010_v40 = vunpack.i.h.bf16 %v6008_v20 }
 0x76f   : > { %v3050_v56 = vsel %vm1748_vm15, %v5970_v30, %v6004_v27  ;;  %v3097_v53 = vsel %vm1843_vm0, %v5975_v58, %v6009_v33  ;;  %v3869_v58 = vld [vmem:[%s8465_s8] sm:$0x7] }
 0x770   : > { %v6013_v52 = vpop.permute.xlu1 %6012  ;;  %v5253_v16 = vpack.c.bf16 %v3050_v56, %v7923_v13  ;;  %v8252_v25 = vpop.permute.xlu0 %6017  ;;  %3872 = vperm.xlu0 %6091, %v3869_v58  }
 0x771   : > { %v6014_v44 = vunpack.i.l.bf16 %v6013_v52  ;;  %v6019_v30 = vunpack.i.l.bf16 %v8252_v25  ;;  %v6015_v17 = vunpack.i.h.bf16 %v6013_v52  ;;  %v6020_v59 = vunpack.i.h.bf16 %v8252_v25 }
 0x772   : > { %5254 = vmatprep.subr.bf16.mxu0 %v5253_v16 }
 0x773   : > { %5256 = vmatpush1.bf16.msra.mxu0 %v5255_v46  ;;  %v3144_v43 = vsel %vm1938_vm2, %v5980_v1, %v6014_v44  ;;  %v3191_v22 = vsel %vm2033_vm1, %v5985_v15, %v6019_v30  ;;  %v3145_v32 = vsel %vm1938_vm2, %v6014_v44, %v6015_v17  ;;  %v3192_v52 = vsel %vm2033_vm1, %v6019_v30, %v6020_v59 }
 0x774   : > { %v5257_v11 = vpack.c.bf16 %v3144_v43, %v3097_v53  ;;  %v8278_v19 = vpop.permute.xlu0 %6027 }
 0x775   : > { %v6023_v13 = vpop.permute.xlu1 %6022 }
 0x776   : > { %v6024_v26 = vunpack.i.l.bf16 %v6023_v13  ;;  %5258 = vmatprep.subr.bf16.mxu0 %v5257_v11  ;;  %v6025_v57 = vunpack.i.h.bf16 %v6023_v13 }
 0x777   : > { %5260 = vmatpush1.bf16.msra.mxu0 %v5259_v41  ;;  %v6029_v41 = vunpack.i.l.bf16 %v8278_v19 }
 0x778   : > { %v3238_v5 = vsel %vm2128_vm4, %v5990_v12, %v6024_v26  ;;  %v3051_v12 = vsel %vm1748_vm15, %v6004_v27, %v6005_v47  ;;  %v3239_v7 = vsel %vm2128_vm4, %v6024_v26, %v6025_v57  ;;  %v6030_v27 = vunpack.i.h.bf16 %v8278_v19 }
 0x779   : > { %v5261_v35 = vpack.c.bf16 %v3238_v5, %v3191_v22  ;;  %v3285_v6 = vsel %vm2223_vm3, %v5995_v4, %v6029_v41  ;;  %v5271_v23 = vpack.c.bf16 %v3051_v12, %v7997_v31  ;;  %v3098_v31 = vsel %vm1843_vm0, %v6009_v33, %v6010_v40 }
 0x77a   : > { %v5275_v42 = vpack.c.bf16 %v3145_v32, %v3098_v31  ;;  %v5279_v53 = vpack.c.bf16 %v3239_v7, %v3192_v52  ;;  %v3286_v30 = vsel %vm2223_vm3, %v6029_v41, %v6030_v27 }
 0x77b   : > { %5262 = vmatprep.subr.bf16.mxu0 %v5261_v35 }
 0x77c   : > { %5264 = vmatpush1.bf16.msra.mxu0 %v5263_v0 }
 0x78f   : > { %v8280_v48 = vpop.permute.xlu0 %3272  ;;  %v8282_v1 = vpop.permute.xlu1 %3225 }
 0x790   : > { %v3240_v33 = vsel %vm2128_vm4, %v6025_v57, %v8282_v1  ;;  %v3287_v43 = vsel %vm2223_vm3, %v6030_v27, %v8280_v48 }
 0x793   : > { %v8285_v10 = vpop.permute.xlu0 %6037  ;;  %v6033_v15 = vpop.permute.xlu1 %6032 }
 0x794   : > { %v6039_v49 = vunpack.i.l.bf16 %v8285_v10  ;;  %v6034_v8 = vunpack.i.l.bf16 %v6033_v15  ;;  %v6035_v50 = vunpack.i.h.bf16 %v6033_v15  ;;  %v6040_v11 = vunpack.i.h.bf16 %v8285_v10 }
 0x796   : > { %v3332_v0 = vsel %vm2318_vm5, %v6000_v54, %v6034_v8  ;;  %v3052_v3 = vsel %vm1748_vm15, %v6005_v47, %v6039_v49  ;;  %v3333_v13 = vsel %vm2318_vm5, %v6034_v8, %v6035_v50  ;;  %v3053_v5 = vsel %vm1748_vm15, %v6039_v49, %v6040_v11 }
 0x797   : > { %v8296_v29 = vpop.permute.xlu0 %6042  ;;  %v8298_v21 = vpop.permute.xlu1 %3319  ;;  %v5265_v55 = vpack.c.bf16 %v3332_v0, %v3285_v6  ;;  %v5269_v63 = vpack.c.bf16 %v3052_v3, %v8001_v18  ;;  %v5283_v35 = vpack.c.bf16 %v3333_v13, %v3286_v30  ;;  %v5287_v10 = vpack.c.bf16 %v3053_v5, %v8179_v60 }
 0x798   : > { %v6044_v4 = vunpack.i.l.bf16 %v8296_v29  ;;  %v3334_v56 = vsel %vm2318_vm5, %v6035_v50, %v8298_v21  ;;  %v6045_v19 = vunpack.i.h.bf16 %v8296_v29 }
 0x799   : > { %5266 = vmatprep.subr.bf16.mxu0 %v5265_v55  ;;  %5270 = vmatprep.subr.bf16.mxu1 %v5269_v63  ;;  %v5281_v25 = vpack.c.bf16 %v3334_v56, %v3287_v43 }
 0x79a   : > { %5268 = vmatpush1.bf16.msra.mxu0 %v5267_v51  ;;  %5272 = vmatpush1.bf16.msra.mxu1 %v5271_v23  ;;  %v3099_v2 = vsel %vm1843_vm0, %v6010_v40, %v6044_v4  ;;  %v3100_v23 = vsel %vm1843_vm0, %v6044_v4, %v6045_v19 }
 0x79b   : > { %v3363_v34 = vpop.permute.xlu0 %3362  ;;  %v8306_v54 = vpop.permute.xlu1 %6047 }
 0x79c   : > { %v6049_v18 = vunpack.i.l.bf16 %v8306_v54  ;;  %v6050_v58 = vunpack.i.h.bf16 %v8306_v54 }
 0x79e   : > { %v3146_v62 = vsel %vm1938_vm2, %v6015_v17, %v6049_v18  ;;  %v3147_v41 = vsel %vm1938_vm2, %v6049_v18, %v6050_v58 }
 0x79f   : > { %v8316_v51 = vpop.permute.xlu0 %6052  ;;  %v3361_v36 = vpop.permute.xlu1 %3360  ;;  %v5273_v14 = vpack.c.bf16 %v3146_v62, %v3099_v2  ;;  %v5291_v54 = vpack.c.bf16 %v3147_v41, %v3100_v23 }
 0x7a0   : > { %v6054_v37 = vunpack.i.l.bf16 %v8316_v51  ;;  %v3378_v61 = vsel %vm2413_vm6, %v8165_v24, %v3361_v36  ;;  %v3379_v20 = vsel %vm2413_vm6, %v3361_v36, %v3363_v34  ;;  %v6055_v32 = vunpack.i.h.bf16 %v8316_v51 }
 0x7a1   : > { %3564 = vmatprep.subr.mxu0 %v3379_v20  ;;  %5274 = vmatprep.subr.bf16.mxu1 %v5273_v14 }
 0x7a2   : > { %3565 = vmatpush1.msra.mxu0 %v3378_v61  ;;  %5276 = vmatpush1.bf16.msra.mxu1 %v5275_v42  ;;  %v3193_v24 = vsel %vm2033_vm1, %v6020_v59, %v6054_v37 }
 0x7a3   : > { %v8334_v16 = vpop.permute.xlu0 %3366  ;;  %v3365_v46 = vpop.permute.xlu1 %3364  ;;  %4489 = vmatmul.mubr.msk.f32.vlgmr.msra.gmra.mrb[24].mxu0 %vm3402_vm11, %v8136_v38  ;;  %v5277_v44 = vpack.c.bf16 %v3240_v33, %v3193_v24 }
 0x7a4   : > { %3754 = vmatprep.mubr.f32.mxu0 %v8534_v9  ;;  %v3381_v47 = vsel %vm2413_vm6, %v3365_v46, %v8334_v16  ;;  %v3380_v0 = vsel %vm2413_vm6, %v3363_v34, %v3365_v46 }
 0x7a5   : > { %5278 = vmatprep.subr.bf16.mxu1 %v5277_v44 }
 0x7a6   : > { %5280 = vmatpush1.bf16.msra.mxu1 %v5279_v53  ;;  %v3194_v53 = vsel %vm2033_vm1, %v6054_v37, %v6055_v32 }
 0x7a7   : > { %v6058_v26 = vpop.permute.xlu0 %6057  ;;  %v6068_v22 = vpop.permute.xlu1 %6067  ;;  %5282 = vmatprep.subr.bf16.mxu1 %v5281_v25 }
 0x7a8   : > { %v6059_v12 = vunpack.i.l.bf16 %v6058_v26  ;;  %v6060_v3 = vunpack.i.h.bf16 %v6058_v26  ;;  %v6070_v55 = vunpack.i.h.bf16 %v6068_v22  ;;  %v6069_v63 = vunpack.i.l.bf16 %v6068_v22 }
 0x7aa   : > { %5284 = vmatpush1.bf16.msra.mxu1 %v5283_v35  ;;  %v3102_v62 = vsel %vm1843_vm0, %v6069_v63, %v6070_v55  ;;  %v3101_v59 = vsel %vm1843_vm0, %v6045_v19, %v6069_v63  ;;  %v3242_v42 = vsel %vm2128_vm4, %v6059_v12, %v6060_v3 }
 0x7ab   : > { %v6063_v15 = vpop.permute.xlu0 %6062  ;;  %v8350_v8 = vpop.permute.xlu1 %6082  ;;  %3635 = vmatprep.subr.mxu1 %v3381_v47 }
 0x7ac   : > { %v6065_v6 = vunpack.i.h.bf16 %v6063_v15  ;;  %v6064_v49 = vunpack.i.l.bf16 %v6063_v15  ;;  %v6084_v50 = vunpack.i.l.bf16 %v8350_v8 }
 0x7ae   : > { %v5301_v60 = vpack.c.bf16 %v6065_v6, %v8214_v28  ;;  %v3055_v17 = vsel %vm1748_vm15, %v6064_v49, %v6065_v6  ;;  %3636 = vmatpush1.msra.mxu1 %v3380_v0  ;;  %v3054_v40 = vsel %vm1748_vm15, %v6040_v11, %v6064_v49  ;;  %v3241_v28 = vsel %vm2128_vm4, %v8282_v1, %v6059_v12 }
 0x7af   : > { %v5303_v18 = vpack.c.bf16 %v3055_v17, %v8212_v45  ;;  %v6073_v34 = vpop.permute.xlu0 %6072  ;;  %v6088_v57 = vpop.permute.xlu1 %6087  ;;  %4490 = vmatmul.mubr.msk.f32.vlgmr.msra.gmra.mrb[24].mxu1 %vm3402_vm11, %v8136_v38  ;;  %v5285_v29 = vpack.c.bf16 %v3054_v40, %v8183_v39  ;;  %v6085_v45 = vunpack.i.h.bf16 %v8350_v8  ;;  %v5295_v13 = vpack.c.bf16 %v3241_v28, %v3194_v53 }
 0x7b0   : > { %v6075_v4 = vunpack.i.h.bf16 %v6073_v34  ;;  %v6074_v31 = vunpack.i.l.bf16 %v6073_v34  ;;  %v6089_v2 = vunpack.i.l.bf16 %v6088_v57  ;;  %5302 = vmatprep.subr.bf16.mxu1 %v5301_v60  ;;  %3825 = vmatprep.mubr.f32.mxu1 %v8534_v9  ;;  %v6090_v1 = vunpack.i.h.bf16 %v6088_v57 }
 0x7b1   : > { %5286 = vmatprep.subr.bf16.mxu0 %v5285_v29  ;;  %5304 = vmatpush1.bf16.msra.mxu1 %v5303_v18  ;;  %v3336_v51 = vsel %vm2318_vm5, %v6084_v50, %v6085_v45  ;;  %v3335_v19 = vsel %vm2318_vm5, %v8298_v21, %v6084_v50 }
 0x7b2   : > { %v3149_v39 = vsel %vm1938_vm2, %v6074_v31, %v6075_v4  ;;  %v5305_v36 = vpack.c.bf16 %v6075_v4, %v6070_v55  ;;  %5288 = vmatpush1.bf16.msra.mxu0 %v5287_v10  ;;  %v3148_v14 = vsel %vm1938_vm2, %v6050_v58, %v6074_v31  ;;  %v3195_v33 = vsel %vm2033_vm1, %v6055_v32, %v6089_v2 }
 0x7b3   : > { %v5307_v61 = vpack.c.bf16 %v3149_v39, %v3102_v62  ;;  %v6078_v20 = vpop.permute.xlu0 %6077  ;;  %v3232_v7 = vpop.permute.xlu1 %3231  ;;  %v5289_v27 = vpack.c.bf16 %v3148_v14, %v3101_v59  ;;  %v5293_v44 = vpack.c.bf16 %v3242_v42, %v3195_v33  ;;  %v3196_v43 = vsel %vm2033_vm1, %v6089_v2, %v6090_v1 }
 0x7b4   : > { %v6080_v56 = vunpack.i.h.bf16 %v6078_v20  ;;  %v6079_v24 = vunpack.i.l.bf16 %v6078_v20  ;;  %v3243_v52 = vsel %vm2128_vm4, %v6060_v3, %v3232_v7  ;;  %v5309_v46 = vpack.c.bf16 %v3232_v7, %v6090_v1  ;;  %5306 = vmatprep.subr.bf16.mxu1 %v5305_v36 }
 0x7b5   : > { %5290 = vmatprep.subr.bf16.mxu0 %v5289_v27  ;;  %5308 = vmatpush1.bf16.msra.mxu1 %v5307_v61  ;;  %v5311_v25 = vpack.c.bf16 %v3243_v52, %v3196_v43  ;;  %vm3875_vm1 = vcmask 64512  }
 0x7b6   : > { %5292 = vmatpush1.bf16.msra.mxu0 %v5291_v54  ;;  %5310 = vmatprep.subr.bf16.mxu1 %v5309_v46  ;;  %v3289_v11 = vsel %vm2223_vm3, %v6079_v24, %v6080_v56  ;;  %v3288_v37 = vsel %vm2223_vm3, %v8280_v48, %v6079_v24 }
 0x7b7   : > { %v3279_v30 = vpop.permute.xlu0 %3278  ;;  %v3326_v26 = vpop.permute.xlu1 %3325  ;;  %5294 = vmatprep.subr.bf16.mxu0 %v5293_v44  ;;  %v5297_v58 = vpack.c.bf16 %v3336_v51, %v3289_v11  ;;  %v5299_v8 = vpack.c.bf16 %v3335_v19, %v3288_v37 }
 0x7b8   : > { %v3290_v22 = vsel %vm2223_vm3, %v6080_v56, %v3279_v30  ;;  %v3337_v5 = vsel %vm2318_vm5, %v6085_v45, %v3326_v26  ;;  %v5313_v35 = vpack.c.bf16 %v3326_v26, %v3279_v30 }
 0x7b9   : > { %5312 = vmatpush1.bf16.msra.mxu1 %v5311_v25  ;;  %v5315_v47 = vpack.c.bf16 %v3337_v5, %v3290_v22 }
 0x7ba   : > { %5296 = vmatpush1.bf16.msra.mxu0 %v5295_v13  ;;  %5314 = vmatprep.subr.bf16.mxu1 %v5313_v35 }
 0x7bb   : > { %v3369_v10 = vpop.permute.xlu0 %3368  ;;  %v3371_v15 = vpop.permute.xlu1 %3370  ;;  %5298 = vmatprep.subr.bf16.mxu0 %v5297_v58 }
 0x7bc   : > { %v3383_v41 = vsel %vm2413_vm6, %v3369_v10, %v3371_v15  ;;  %v3382_v6 = vsel %vm2413_vm6, %v8334_v16, %v3369_v10 }
 0x7bd   : > { %5316 = vmatpush1.bf16.msra.mxu1 %v5315_v47 }
 0x7be   : > { %5300 = vmatpush1.bf16.msra.mxu0 %v5299_v8 }
 0x7bf   : > { %v3373_v12 = vpop.permute.xlu0 %3372  ;;  %3706 = vmatprep.subr.mxu0 %v3383_v41 }
 0x7c0   : > { %v3384_v48 = vsel %vm2413_vm6, %v3371_v15, %v3373_v12  ;;  %3777 = vmatprep.subr.mxu1 %v3373_v12 }
 0x7c1   : > { %3778 = vmatpush1.msra.mxu1 %v3384_v48 }
 0x7c2   : > { %3707 = vmatpush1.msra.mxu0 %v3382_v6  ;;  %4492 = vmatmul.mubr.msk.f32.vlgmr.msra.gmra.mrb[26].mxu1 %vm3402_vm11, %v8136_v38 }
 0x7c3   : > { %4491 = vmatmul.mubr.msk.f32.vlgmr.msra.gmra.mrb[26].mxu0 %vm3402_vm11, %v8136_v38  ;;  %4085 = vmatprep.mubr.f32.mxu1 %v8534_v9  ;;  %v8406_v38 = vld [vmem:[%s8464_s7] sm:$0x7] }
 0x7c4   : > { %3943 = vmatprep.mubr.f32.mxu0 %v8534_v9 }
 0x7cc   : > { %v8399_v21 = vpop.permute.xlu1 %3399 }
 0x7e7   : > { %v3472_v49 = vpop.f32.mrb[22].mxu0 }
 0x7e8   : > { %v3473_v0 = vadd.f32 %v3472_v49, %v8399_v21  ;;  %v3474_v3 = vpop.f32.mrb[23].mxu0 }
 0x7e9   : > { %v3475_v16 = vadd.f32 %v3474_v3, %v8399_v21 }
 0x7ea   : > { %v3844_v55 = vmul.f32 0.2, %v3473_v0  ;;  %vm3832_vm15 = vcmp.ge.f32.partialorder %v3473_v0, 0.0 }
 0x7eb   : > { %v3845_v63 = vmul.f32 0.2, %v3475_v16  ;;  %vm3833_vm0 = vcmp.ge.f32.partialorder %v3475_v16, 0.0 }
 0x7ec   : > { %v3856_v60 = vsel %vm3832_vm15, %v3473_v0, %v3844_v55  ;;  %vm4359_vm15 = vcmask 621568  }
 0x7ed   : > { %v3857_v23 = vsel %vm3833_vm0, %v3475_v16, %v3845_v63  ;;  %vm4350_vm0 = vcmask 113664  }
 0x7ee   : > { %3879 = vmatprep.subr.mxu0 %v3857_v23 }
 0x7ef   : > { %3880 = vmatpush1.msra.mxu0 %v3856_v60  ;;  %v3873_v35 = vpop.permute.xlu0 %3872 }
 0x7f0   : > { %4493 = vmatmul.mubr.msk.f32.vlgmr.msra.gmra.mrb[28].mxu0 %vm3875_vm1, %v8406_v38 }
 0x7f1   : > { %4014 = vmatprep.mubr.f32.mxu0 %v8534_v9 }
 0x7f3   : > { %v3543_v17 = vpop.f32.mrb[22].mxu1 }
 0x7f4   : > { %v3544_v40 = vadd.f32 %v3543_v17, %v8399_v21  ;;  %v3545_v54 = vpop.f32.mrb[23].mxu1 }
 0x7f5   : > { %v3546_v32 = vadd.f32 %v3545_v54, %v8399_v21 }
 0x7f6   : > { %v3846_v18 = vmul.f32 0.2, %v3544_v40  ;;  %vm3834_vm2 = vcmp.ge.f32.partialorder %v3544_v40, 0.0 }
 0x7f7   : > { %v3847_v34 = vmul.f32 0.2, %v3546_v32  ;;  %vm3835_vm3 = vcmp.ge.f32.partialorder %v3546_v32, 0.0 }
 0x7f8   : > { %v3858_v29 = vsel %vm3834_vm2, %v3544_v40, %v3846_v18 }
 0x7f9   : > { %v3859_v57 = vsel %vm3835_vm3, %v3546_v32, %v3847_v34 }
 0x7fa   : > { %3950 = vmatprep.subr.mxu0 %v3859_v57 }
 0x7fb   : > { %3951 = vmatpush1.msra.mxu0 %v3858_v29 }
 0x7fc   : > { %4494 = vmatmul.mubr.msk.f32.vlgmr.msra.gmra.mrb[30].mxu0 %vm3875_vm1, %v8406_v38 }
 0x7fd   : > { %4156 = vmatprep.mubr.f32.mxu0 %v8534_v9 }
 0x876   : > { %v3614_v28 = vpop.f32.mrb[24].mxu0 }
 0x877   : > { %v3615_v4 = vadd.f32 %v3614_v28, %v8399_v21  ;;  %v3616_v31 = vpop.f32.mrb[25].mxu0 }
 0x878   : > { %v3617_v2 = vadd.f32 %v3616_v31, %v8399_v21 }
 0x879   : > { %v3848_v62 = vmul.f32 0.2, %v3615_v4  ;;  %vm3836_vm4 = vcmp.ge.f32.partialorder %v3615_v4, 0.0 }
 0x87a   : > { %v3849_v45 = vmul.f32 0.2, %v3617_v2  ;;  %vm3837_vm5 = vcmp.ge.f32.partialorder %v3617_v2, 0.0 }
 0x87b   : > { %v3860_v42 = vsel %vm3836_vm4, %v3615_v4, %v3848_v62 }
 0x87c   : > { %v3861_v59 = vsel %vm3837_vm5, %v3617_v2, %v3849_v45 }
 0x87d   : > { %4021 = vmatprep.subr.mxu1 %v3861_v59 }
 0x87e   : > { %4022 = vmatpush1.msra.mxu1 %v3860_v42 }
 0x87f   : > { %4495 = vmatmul.mubr.msk.f32.vlgmr.msra.gmra.mrb[28].mxu1 %vm3875_vm1, %v8406_v38 }
 0x880   : > { %4227 = vmatprep.mubr.f32.mxu1 %v8534_v9 }
 0x882   : > { %v3685_v39 = vpop.f32.mrb[24].mxu1 }
 0x883   : > { %v3686_v36 = vadd.f32 %v3685_v39, %v8399_v21  ;;  %v3687_v1 = vpop.f32.mrb[25].mxu1 }
 0x884   : > { %v3688_v14 = vadd.f32 %v3687_v1, %v8399_v21 }
 0x885   : > { %v3850_v50 = vmul.f32 0.2, %v3686_v36  ;;  %vm3838_vm8 = vcmp.ge.f32.partialorder %v3686_v36, 0.0 }
 0x886   : > { %v3851_v61 = vmul.f32 0.2, %v3688_v14  ;;  %vm3839_vm9 = vcmp.ge.f32.partialorder %v3688_v14, 0.0 }
 0x887   : > { %v3862_v7 = vsel %vm3838_vm8, %v3686_v36, %v3850_v50 }
 0x888   : > { %v3863_v20 = vsel %vm3839_vm9, %v3688_v14, %v3851_v61 }
 0x889   : > { %4092 = vmatprep.subr.mxu0 %v3863_v20 }
 0x88a   : > { %4093 = vmatpush1.msra.mxu0 %v3862_v7 }
 0x88b   : > { %4496 = vmatmul.mubr.msk.f32.vlgmr.msra.gmra.mrb[32].mxu0 %vm3875_vm1, %v8406_v38 }
 0x88c   : > { %4298 = vmatprep.mubr.f32.mxu0 %v8534_v9 }
 0x895   : > { %v3827_v27 = vpop.f32.mrb[26].mxu1 }
 0x896   : > { %v3828_v33 = vadd.f32 %v3827_v27, %v8399_v21  ;;  %v3756_v56 = vpop.f32.mrb[26].mxu0  ;;  %v3829_v24 = vpop.f32.mrb[27].mxu1 }
 0x897   : > { %v3757_v52 = vadd.f32 %v3756_v56, %v8399_v21  ;;  %v3830_v46 = vadd.f32 %v3829_v24, %v8399_v21  ;;  %v3758_v44 = vpop.f32.mrb[27].mxu0 }
 0x898   : > { %v3854_v53 = vmul.f32 0.2, %v3828_v33  ;;  %v3759_v43 = vadd.f32 %v3758_v44, %v8399_v21  ;;  %vm3842_vm10 = vcmp.ge.f32.partialorder %v3828_v33, 0.0 }
 0x899   : > { %v3852_v11 = vmul.f32 0.2, %v3757_v52  ;;  %v3855_v13 = vmul.f32 0.2, %v3830_v46  ;;  %vm3843_vm11 = vcmp.ge.f32.partialorder %v3830_v46, 0.0  ;;  %vm3840_vm12 = vcmp.ge.f32.partialorder %v3757_v52, 0.0 }
 0x89a   : > { %v3853_v9 = vmul.f32 0.2, %v3759_v43  ;;  %vm3841_vm13 = vcmp.ge.f32.partialorder %v3759_v43, 0.0  ;;  %v3866_v26 = vsel %vm3842_vm10, %v3828_v33, %v3854_v53 }
 0x89b   : > { %v3867_v25 = vsel %vm3843_vm11, %v3830_v46, %v3855_v13  ;;  %v3864_v22 = vsel %vm3840_vm12, %v3757_v52, %v3852_v11 }
 0x89c   : > { %4234 = vmatprep.subr.mxu0 %v3867_v25  ;;  %v3865_v30 = vsel %vm3841_vm13, %v3759_v43, %v3853_v9 }
 0x89d   : > { %4163 = vmatprep.subr.mxu1 %v3865_v30  ;;  %4235 = vmatpush1.msra.mxu0 %v3866_v26 }
 0x89e   : > { %4164 = vmatpush1.msra.mxu1 %v3864_v22  ;;  %4498 = vmatmul.mubr.msk.f32.vlgmr.msra.gmra.mrb[34].mxu0 %vm3875_vm1, %v8406_v38 }
 0x89f   : > { %4497 = vmatmul.mubr.msk.f32.vlgmr.msra.gmra.mrb[30].mxu1 %vm3875_vm1, %v8406_v38 }
 0x8c3   : > { %v3945_v5 = vpop.f32.mrb[28].mxu0 }
 0x8c4   : > { %v3947_v51 = vpop.f32.mrb[29].mxu0  ;;  %v3946_v37 = vadd.f32 %v3945_v5, %v3873_v35 }
 0x8c5   : > { %v3948_v58 = vadd.f32 %v3947_v51, %v3873_v35 }
 0x8c7   : > { %v4366_v19 = vcombine.low %v3946_v37, %v3948_v58 }
 0x8c9   : > { %4376 = vst [vmem:[%s8438_s14] sm:$0x77] %v4366_v19 }
 0x8cf   : > { %v4016_v47 = vpop.f32.mrb[30].mxu0 }
 0x8d0   : > { %v4017_v10 = vadd.f32 %v4016_v47, %v3873_v35  ;;  %v4018_v15 = vpop.f32.mrb[31].mxu0 }
 0x8d1   : > { %v4019_v8 = vadd.f32 %v4018_v15, %v3873_v35 }
 0x8d2   : > { %4309 = vrot.lane.b32.xlu1 %v4017_v10, %s6122_s25 }
 0x8d6   : > { %4311 = vrot.lane.b32.xlu1 %v4019_v8, %s6122_s25 }
 0x944   : > { %v4310_v54 = vpop.permute.xlu1 %4309 }
 0x948   : > { %v4312_v32 = vpop.permute.xlu1 %4311 }
 0x949   : > { %v4317_v18 = vsel %vm2413_vm6, %v4310_v54, %v4312_v32 }
 0x94a   : > { %v4357_v29 = vsel %vm4356_vm14, %v4017_v10, %v4317_v18 }
 0x952   : > { %v4087_v41 = vpop.f32.mrb[28].mxu1 }
 0x953   : > { %v4088_v12 = vadd.f32 %v4087_v41, %v3873_v35  ;;  %v4089_v48 = vpop.f32.mrb[29].mxu1 }
 0x954   : > { %v4090_v6 = vadd.f32 %v4089_v48, %v3873_v35 }
 0x955   : > { %4313 = vrot.lane.b32.xlu0 %v4088_v12, %s6122_s25 }
 0x959   : > { %4325 = vrot.lane.b32.xlu0 %v4090_v6, %s6126_s22 }
 0x95e   : > { %v4158_v21 = vpop.f32.mrb[32].mxu0 }
 0x95f   : > { %v4159_v49 = vadd.f32 %v4158_v21, %v3873_v35  ;;  %v4160_v0 = vpop.f32.mrb[33].mxu0 }
 0x960   : > { %v4161_v3 = vadd.f32 %v4160_v0, %v3873_v35 }
 0x961   : > { %4327 = vrot.lane.b32.xlu1 %v4159_v49, %s6126_s22 }
 0x962   : > { %4329 = vrot.lane.b32.xlu0 %v4161_v3, %s6126_s22 }
 0x965   : > { %4315 = vrot.lane.b32.xlu1 %v4090_v6, %s6122_s25 }
 0x971   : > { %v4300_v16 = vpop.f32.mrb[34].mxu0 }
 0x972   : > { %v4229_v55 = vpop.f32.mrb[30].mxu1  ;;  %v4302_v63 = vpop.f32.mrb[35].mxu0  ;;  %v4301_v60 = vadd.f32 %v4300_v16, %v3873_v35 }
 0x973   : > { %v4230_v23 = vadd.f32 %v4229_v55, %v3873_v35  ;;  %v4231_v38 = vpop.f32.mrb[31].mxu1  ;;  %v4303_v40 = vadd.f32 %v4302_v63, %v3873_v35 }
 0x974   : > { %v4232_v17 = vadd.f32 %v4231_v38, %v3873_v35 }
 0x975   : > { %4342 = vrot.lane.b32.xlu0 %v4230_v23, %s6127_s15  ;;  %4331 = vrot.lane.b32.xlu1 %v4230_v23, %s6126_s22 }
 0x979   : > { %4346 = vrot.lane.b32.xlu0 %v4301_v60, %s6127_s15  ;;  %4344 = vrot.lane.b32.xlu1 %v4232_v17, %s6127_s15 }
 0x97d   : > { %4348 = vrot.lane.b32.xlu1 %v4303_v40, %s6127_s15 }
 0x9c7   : > { %v4314_v34 = vpop.permute.xlu0 %4313 }
 0x9c8   : > { %v4318_v57 = vsel %vm2413_vm6, %v4312_v32, %v4314_v34 }
 0x9c9   : > { %v4367_v28 = vcombine.low %v4357_v29, %v4318_v57 }
 0x9cb   : > { %4377 = vst [vmem:[%s8438_s14 + $0x8] sm:$0x77] %v4367_v28  ;;  %v4326_v31 = vpop.permute.xlu0 %4325 }
 0x9d3   : > { %v4328_v4 = vpop.permute.xlu1 %4327 }
 0x9d4   : > { %v4334_v2 = vsel %vm4333_vm7, %v4326_v31, %v4328_v4  ;;  %v4330_v39 = vpop.permute.xlu0 %4329 }
 0x9d5   : > { %v4335_v50 = vsel %vm4333_vm7, %v4328_v4, %v4330_v39 }
 0x9d7   : > { %v4316_v62 = vpop.permute.xlu1 %4315 }
 0x9d8   : > { %v4319_v45 = vsel %vm2413_vm6, %v4314_v34, %v4316_v62  ;;  %v4358_v59 = vsel %vm3875_vm1, %v4316_v62, %v4334_v2  ;;  %vm4381_vm6 = vcmask 124928  }
 0x9d9   : > { %v4368_v42 = vcombine.low %v4319_v45, %v4358_v59 }
 0x9db   : > { %4378 = vst [vmem:[%s8438_s14 + $0x10] sm:$0x77] %v4368_v42 }
 0x9e7   : > { %v4343_v36 = vpop.permute.xlu0 %4342  ;;  %v4332_v1 = vpop.permute.xlu1 %4331 }
 0x9e8   : > { %v4336_v14 = vsel %vm4333_vm7, %v4330_v39, %v4332_v1 }
 0x9e9   : > { %v4360_v61 = vsel %vm4359_vm15, %v4336_v14, %v4343_v36 }
 0x9ea   : > { %v4369_v20 = vcombine.low %v4335_v50, %v4360_v61 }
 0x9eb   : > { %v4347_v7 = vpop.permute.xlu0 %4346  ;;  %v4345_v27 = vpop.permute.xlu1 %4344 }
 0x9ec   : > { %4379 = vst [vmem:[%s8438_s14 + $0x18] sm:$0x77] %v4369_v20  ;;  %v4351_v33 = vsel %vm4350_vm0, %v4343_v36, %v4345_v27  ;;  %v4352_v56 = vsel %vm4350_vm0, %v4345_v27, %v4347_v7 }
 0x9ed   : > { %v4370_v24 = vcombine.low %v4351_v33, %v4352_v56 }
 0x9ef   : > { %4380 = vst [vmem:[%s8438_s14 + $0x20] sm:$0x77] %v4370_v24  ;;  %v4349_v52 = vpop.permute.xlu1 %4348 }
 0x9f0   : > { %v4353_v46 = vsel %vm4350_vm0, %v4347_v7, %v4349_v52 }
 0x9f1   : > { %4382 = vst.msk [vmem:[%s8438_s14 + $0x28] sm:$0x7] %vm4381_vm6, %v4353_v46 }
 0x9f2 PF: > { %s22_s21 = sadd.s32 1, %s6108_s21  }
 0x9f3   : > { %p19_p4 = scmp.ge.s32.totalorder %s22_s21, 4  }
 0x9f5   :  { %21 = sbr.rel (!%p19_p4) target bundleno = 1 (0x1), region = 104 }

</bundles_post_ra>
